<compile_context>
chip_gen: v7x
topology: tpu7x:2x2x1
jax: 0.10.0
libtpu: 0.0.40
codegen_flags: <defaults>
</compile_context>

<pallas_src>
import jax
import jax.numpy as jnp
from jax.experimental import pallas as pl
from jax.experimental.pallas import tpu as pltpu


def sarcasm_kernel(tok_ref, table_ref, w1a_ref, w1b_ref, b1_ref,
                   w2_ref, b2_ref, w3r_ref, b3_ref, out_ref):
    TB, S = tok_ref.shape
    Vp, E = table_ref.shape

    # Upcast the bf16 table once; keep all elementwise math in f32 (v5e-safe).
    table = table_ref[...].astype(jnp.float32)                    # (Vp, E)

    # ---- fused embedding gather + pooling --------------------------------
    tok = tok_ref[...]                                             # (TB, S) int32
    vocab_ids = jax.lax.broadcasted_iota(jnp.int32, (TB, S, Vp), 2)
    onehot = (tok[:, :, None] == vocab_ids).astype(jnp.float32)   # (TB, S, Vp) lane-dense
    counts = jnp.sum(onehot, axis=1)                               # (TB, Vp) token histogram

    # mean over S of table[tok[b,s], :]  ==  (counts / S) @ table   (one small MXU matmul)
    mean_pooled = jnp.dot(counts, table,
                          preferred_element_type=jnp.float32) * (1.0 / S)   # (TB, E)

    # max over S of table[tok[b,s], :]  ==  max over vocab rows present in the row
    present = counts[:, :, None] > 0.5                             # (TB, Vp, 1)
    masked = jnp.where(present, table[None, :, :], -jnp.inf)       # (TB, Vp, E)
    max_pooled = jnp.max(masked, axis=1)                           # (TB, E)

    # ---- MLP: Linear(2E,128)+ReLU, Linear(128,64)+ReLU, Linear(64,1)+Sigmoid
    # concat(mean, max) @ W1 == mean @ W1a + max @ W1b (W1 split along the in-dim).
    h1 = (jnp.dot(mean_pooled, w1a_ref[...], preferred_element_type=jnp.float32)
          + jnp.dot(max_pooled, w1b_ref[...], preferred_element_type=jnp.float32)
          + b1_ref[...])
    h1 = jnp.maximum(h1, 0.0)                                      # ReLU (Dropout = identity, eval)

    h2 = jnp.dot(h1, w2_ref[...], preferred_element_type=jnp.float32) + b2_ref[...]
    h2 = jnp.maximum(h2, 0.0)                                      # ReLU (Dropout = identity, eval)

    # Linear(64, 1): N=1 matmul replaced by VPU multiply + lane reduce; b3 from SMEM.
    logits = jnp.sum(h2 * w3r_ref[...], axis=-1, keepdims=True) + b3_ref[0, 0]   # (TB, 1)
    prob = pl.reciprocal(1.0 + jnp.exp(-logits))                   # sigmoid: exp (EUP) + recip

    # Lane-dense store: broadcast per-row prob across 128 lanes; wrapper keeps lane 0.
    out_ref[...] = jnp.broadcast_to(prob, (TB, out_ref.shape[-1]))


def _auto_block_b(batch):
    rb = ((batch + 7) // 8) * 8          # multiple of 8 (sublane group)
    return min(rb, 128)                  # cap: keeps per-step VMEM footprint small


def sarcasm_forward(x_tokens, params, block_b=None):
    """x_tokens: (B, S) int token ids.  Returns (B, 1) float32 probabilities."""
    B, S = x_tokens.shape
    table = params["embedding"]                            # (V, E) bf16
    V, E = table.shape

    if block_b is None:
        block_b = _auto_block_b(B)
    assert block_b % 8 == 0, "batch block must be a multiple of 8 sublanes"

    # Pad batch to a multiple of the batch block (padded rows sliced off below).
    num_blocks = pl.cdiv(B, block_b)
    Bp = num_blocks * block_b
    if Bp != B:
        x_tokens = jnp.pad(x_tokens, ((0, Bp - B), (0, 0)))
    tok2 = x_tokens.astype(jnp.int32)                      # (Bp, S)

    # Pad vocab to a lane-aligned multiple of 128 (zero rows; never "present").
    Vp = ((V + 127) // 128) * 128
    if Vp != V:
        table = jnp.pad(table, ((0, Vp - V), (0, 0)))

    w1a, w1b = params["w1a"], params["w1b"]                # (E, 128) each
    b1, w2, b2 = params["b1"], params["w2"], params["b2"]
    w3_row = params["w3"].reshape(1, -1)                   # (1, 64) row of Linear(64,1)
    b3 = params["b3"]                                      # (1, 1) -> SMEM scalar

    OUT_LANES = 128
    const2 = lambda b: (0, 0)                              # weights: VMEM-resident across grid

    flops = Bp * (2 * S * Vp + 5 * Vp * E + 4 * E * 128 + 2 * 128 * 64 + 4 * 64)
    bytes_accessed = (tok2.size * 4 + table.size * 2
                      + 4 * (w1a.size + w1b.size + b1.size + w2.size
                             + b2.size + w3_row.size + b3.size)
                      + Bp * OUT_LANES * 4)

    out = pl.pallas_call(
        sarcasm_kernel,
        out_shape=jax.ShapeDtypeStruct((Bp, OUT_LANES), jnp.float32),
        grid=(num_blocks,),
        in_specs=[
            pl.BlockSpec((block_b, S), lambda b: (b, 0)),          # token ids, blocked over batch
            pl.BlockSpec((Vp, E), const2),                         # bf16 embedding table
            pl.BlockSpec((E, 128), const2),                        # W1a (mean half)
            pl.BlockSpec((E, 128), const2),                        # W1b (max half)
            pl.BlockSpec((1, 128), const2),                        # b1
            pl.BlockSpec((128, 64), const2),                       # W2
            pl.BlockSpec((1, 64), const2),                         # b2
            pl.BlockSpec((1, 64), const2),                         # W3 as a row
            pl.BlockSpec((1, 1), const2,
                         memory_space=pltpu.MemorySpace.SMEM),     # b3 scalar in SMEM
        ],
        out_specs=pl.BlockSpec((block_b, OUT_LANES), lambda b: (b, 0)),
        compiler_params=pltpu.CompilerParams(
            dimension_semantics=("parallel",)),                    # v7x: split batch over 2 TCs
        cost_estimate=pl.CostEstimate(flops=flops, transcendentals=Bp,
                                      bytes_accessed=bytes_accessed),
    )(tok2, table, w1a, w1b, b1, w2, b2, w3_row, b3)

    return out[:B, :1]


def init_params(key, vocab_size, embed_dim):
    """Deterministic synthetic parameters matching the PyTorch module shapes."""
    ks = jax.random.split(key, 8)
    scale = 0.1
    # nn.Embedding(vocab_size, embed_dim) — stored bf16 (halves table HBM read).
    embedding = (scale * jax.random.normal(ks[0], (vocab_size, embed_dim), jnp.float32)
                 ).astype(jnp.bfloat16)
    # nn.Linear(embed_dim*2, 128): weight stored (in, out), split in two halves.
    w1 = scale * jax.random.normal(ks[1], (2 * embed_dim, 128), jnp.float32)
    w1a = w1[:embed_dim]                    # multiplies the mean-pool half
    w1b = w1[embed_dim:]                    # multiplies the max-pool half
    b1 = scale * jax.random.normal(ks[2], (1, 128), jnp.float32)
    # nn.Linear(128, 64)
    w2 = scale * jax.random.normal(ks[3], (128, 64), jnp.float32)
    b2 = scale * jax.random.normal(ks[4], (1, 64), jnp.float32)
    # nn.Linear(64, 1)
    w3 = scale * jax.random.normal(ks[5], (64, 1), jnp.float32)
    b3 = scale * jax.random.normal(ks[6], (1, 1), jnp.float32)
    return {"embedding": embedding, "w1a": w1a, "w1b": w1b, "b1": b1,
            "w2": w2, "b2": b2, "w3": w3, "b3": b3}


def reference_forward(x_tokens, params):
    """Pure-JAX reference mirroring the PyTorch forward (eval mode)."""
    emb = jnp.take(params["embedding"].astype(jnp.float32), x_tokens, axis=0)
    mean_p = jnp.mean(emb, axis=1)
    max_p = jnp.max(emb, axis=1)
    pooled = jnp.concatenate([mean_p, max_p], axis=-1)
    w1 = jnp.concatenate([params["w1a"], params["w1b"]], axis=0)
    h1 = jnp.maximum(pooled @ w1 + params["b1"], 0.0)
    h2 = jnp.maximum(h1 @ params["w2"] + params["b2"], 0.0)
    return jax.nn.sigmoid(h2 @ params["w3"] + params["b3"])


if __name__ == "__main__":
    key = jax.random.PRNGKey(0)
    k_param, k_tok = jax.random.split(key)

    vocab_size = 100    # padded to 128 inside the wrapper
    embed_dim = 32
    batch = 50          # with block_b=16 -> 4 blocks (exercises grid + batch padding)
    seq_len = 16

    params = init_params(k_param, vocab_size, embed_dim)
    x_tokens = jax.random.randint(k_tok, (batch, seq_len), 0, vocab_size, jnp.int32)

    out = jax.block_until_ready(sarcasm_forward(x_tokens, params, block_b=16))
    ref = jax.block_until_ready(reference_forward(x_tokens, params))

    assert out.shape == (batch, 1), out.shape
    assert jnp.allclose(out, ref, atol=5e-5, rtol=5e-5), (out, ref)

    # Also run the auto-block (single grid step) path once.
    out2 = jax.block_until_ready(sarcasm_forward(x_tokens, params))
    assert jnp.allclose(out2, ref, atol=5e-5, rtol=5e-5)

    print("KERNEL_OK")
</pallas_src>

<mosaic_0001>
module attributes {stable_mosaic.version = 11 : i64} {
  func.func @sarcasm_kernel(%arg0: i32, %arg1: memref<16x16xi32, #tpu.memory_space<vmem>>, %arg2: memref<128x32xbf16, #tpu.memory_space<vmem>>, %arg3: memref<32x128xf32, #tpu.memory_space<vmem>>, %arg4: memref<32x128xf32, #tpu.memory_space<vmem>>, %arg5: memref<1x128xf32, #tpu.memory_space<vmem>>, %arg6: memref<128x64xf32, #tpu.memory_space<vmem>>, %arg7: memref<1x64xf32, #tpu.memory_space<vmem>>, %arg8: memref<1x64xf32, #tpu.memory_space<vmem>>, %arg9: memref<1x1xf32, #tpu.memory_space<smem>>, %arg10: memref<16x128xf32, #tpu.memory_space<vmem>>) attributes {dimension_semantics = [#tpu.dimension_semantics<parallel>], iteration_bounds = array<i64: 4>, scalar_prefetch = 0 : i64, scratch_operands = 0 : i64, tpu.core_type = #tpu.core_type<tc>, window_params = [{transform_indices = @transform_0, window_bounds = array<i64: 16, 16>}, {pipeline_mode = #tpu.pipeline_mode<synchronous>, transform_indices = @transform_1, window_bounds = array<i64: 128, 32>}, {pipeline_mode = #tpu.pipeline_mode<synchronous>, transform_indices = @transform_2, window_bounds = array<i64: 32, 128>}, {pipeline_mode = #tpu.pipeline_mode<synchronous>, transform_indices = @transform_3, window_bounds = array<i64: 32, 128>}, {pipeline_mode = #tpu.pipeline_mode<synchronous>, transform_indices = @transform_4, window_bounds = array<i64: 1, 128>}, {pipeline_mode = #tpu.pipeline_mode<synchronous>, transform_indices = @transform_5, window_bounds = array<i64: 128, 64>}, {pipeline_mode = #tpu.pipeline_mode<synchronous>, transform_indices = @transform_6, window_bounds = array<i64: 1, 64>}, {pipeline_mode = #tpu.pipeline_mode<synchronous>, transform_indices = @transform_7, window_bounds = array<i64: 1, 64>}, {transform_indices = @transform_8, window_bounds = array<i64: 1, 1>}, {transform_indices = @transform_9, window_bounds = array<i64: 16, 128>}]} {
    %c0 = arith.constant 0 : index
    %c0_0 = arith.constant 0 : index
    %0 = vector.load %arg2[%c0, %c0_0] : memref<128x32xbf16, #tpu.memory_space<vmem>>, vector<128x32xbf16>
    %1 = arith.extf %0 : vector<128x32xbf16> to vector<128x32xf32>
    %c0_1 = arith.constant 0 : index
    %c0_2 = arith.constant 0 : index
    %2 = vector.load %arg1[%c0_1, %c0_2] : memref<16x16xi32, #tpu.memory_space<vmem>>, vector<16x16xi32>
    %3 = tpu.iota {dimensions = array<i32: 2>} : vector<16x16x128xi32>
    %4 = vector.shape_cast %2 : vector<16x16xi32> to vector<16x16x1xi32>
    %5 = vector.broadcast %4 : vector<16x16x1xi32> to vector<16x16x128xi32>
    %6 = arith.cmpi eq, %5, %3 : vector<16x16x128xi32>
    %7 = arith.extui %6 : vector<16x16x128xi1> to vector<16x16x128xi32>
    %8 = arith.sitofp %7 : vector<16x16x128xi32> to vector<16x16x128xf32>
    %cst = arith.constant dense<0.000000e+00> : vector<16x128xf32>
    %9 = vector.multi_reduction <add>, %8, %cst [1] : vector<16x16x128xf32> to vector<16x128xf32>
    %cst_3 = arith.constant dense<0.000000e+00> : vector<16x32xf32>
    %10 = tpu.matmul %9, %1, %cst_3 {dimension_numbers = #tpu.dot_dimension_numbers<[1], [0], [0], [1], [0, 0, 1, 1], [], []>} : vector<16x128xf32>, vector<128x32xf32>, vector<16x32xf32> -> vector<16x32xf32>
    %cst_4 = arith.constant 6.250000e-02 : f32
    %11 = vector.broadcast %cst_4 : f32 to vector<16x32xf32>
    %12 = arith.mulf %10, %11 : vector<16x32xf32>
    %13 = vector.shape_cast %9 : vector<16x128xf32> to vector<16x128x1xf32>
    %cst_5 = arith.constant 5.000000e-01 : f32
    %14 = vector.broadcast %cst_5 : f32 to vector<16x128x1xf32>
    %15 = arith.cmpf ogt, %13, %14 : vector<16x128x1xf32>
    %16 = vector.shape_cast %1 : vector<128x32xf32> to vector<1x128x32xf32>
    %cst_6 = arith.constant 0xFF800000 : f32
    %17 = vector.shape_cast %15 : vector<16x128x1xi1> to vector<16x128x1xi1>
    %18 = vector.broadcast %17 : vector<16x128x1xi1> to vector<16x128x32xi1>
    %19 = vector.shape_cast %16 : vector<1x128x32xf32> to vector<1x128x32xf32>
    %20 = vector.broadcast %19 : vector<1x128x32xf32> to vector<16x128x32xf32>
    %21 = vector.broadcast %cst_6 : f32 to vector<16x128x32xf32>
    %22 = arith.select %18, %20, %21 : vector<16x128x32xi1>, vector<16x128x32xf32>
    %cst_7 = arith.constant dense<0xFF800000> : vector<16x32xf32>
    %23 = vector.multi_reduction <maximumf>, %22, %cst_7 [1] : vector<16x128x32xf32> to vector<16x32xf32>
    %c0_8 = arith.constant 0 : index
    %c0_9 = arith.constant 0 : index
    %24 = vector.load %arg3[%c0_8, %c0_9] : memref<32x128xf32, #tpu.memory_space<vmem>>, vector<32x128xf32>
    %cst_10 = arith.constant dense<0.000000e+00> : vector<16x128xf32>
    %25 = tpu.matmul %12, %24, %cst_10 {dimension_numbers = #tpu.dot_dimension_numbers<[1], [0], [0], [1], [0, 0, 1, 1], [], []>} : vector<16x32xf32>, vector<32x128xf32>, vector<16x128xf32> -> vector<16x128xf32>
    %c0_11 = arith.constant 0 : index
    %c0_12 = arith.constant 0 : index
    %26 = vector.load %arg4[%c0_11, %c0_12] : memref<32x128xf32, #tpu.memory_space<vmem>>, vector<32x128xf32>
    %cst_13 = arith.constant dense<0.000000e+00> : vector<16x128xf32>
    %27 = tpu.matmul %23, %26, %cst_13 {dimension_numbers = #tpu.dot_dimension_numbers<[1], [0], [0], [1], [0, 0, 1, 1], [], []>} : vector<16x32xf32>, vector<32x128xf32>, vector<16x128xf32> -> vector<16x128xf32>
    %28 = arith.addf %25, %27 : vector<16x128xf32>
    %c0_14 = arith.constant 0 : index
    %c0_15 = arith.constant 0 : index
    %29 = vector.load %arg5[%c0_14, %c0_15] : memref<1x128xf32, #tpu.memory_space<vmem>>, vector<1x128xf32>
    %30 = vector.broadcast %29 : vector<1x128xf32> to vector<16x128xf32>
    %31 = arith.addf %28, %30 : vector<16x128xf32>
    %cst_16 = arith.constant 0.000000e+00 : f32
    %32 = vector.broadcast %cst_16 : f32 to vector<16x128xf32>
    %33 = arith.maximumf %31, %32 : vector<16x128xf32>
    %c0_17 = arith.constant 0 : index
    %c0_18 = arith.constant 0 : index
    %34 = vector.load %arg6[%c0_17, %c0_18] : memref<128x64xf32, #tpu.memory_space<vmem>>, vector<128x64xf32>
    %cst_19 = arith.constant dense<0.000000e+00> : vector<16x64xf32>
    %35 = tpu.matmul %33, %34, %cst_19 {dimension_numbers = #tpu.dot_dimension_numbers<[1], [0], [0], [1], [0, 0, 1, 1], [], []>} : vector<16x128xf32>, vector<128x64xf32>, vector<16x64xf32> -> vector<16x64xf32>
    %c0_20 = arith.constant 0 : index
    %c0_21 = arith.constant 0 : index
    %36 = vector.load %arg7[%c0_20, %c0_21] : memref<1x64xf32, #tpu.memory_space<vmem>>, vector<1x64xf32>
    %37 = vector.broadcast %36 : vector<1x64xf32> to vector<16x64xf32>
    %38 = arith.addf %35, %37 : vector<16x64xf32>
    %cst_22 = arith.constant 0.000000e+00 : f32
    %39 = vector.broadcast %cst_22 : f32 to vector<16x64xf32>
    %40 = arith.maximumf %38, %39 : vector<16x64xf32>
    %c0_23 = arith.constant 0 : index
    %c0_24 = arith.constant 0 : index
    %41 = vector.load %arg8[%c0_23, %c0_24] : memref<1x64xf32, #tpu.memory_space<vmem>>, vector<1x64xf32>
    %42 = vector.broadcast %41 : vector<1x64xf32> to vector<16x64xf32>
    %43 = arith.mulf %40, %42 : vector<16x64xf32>
    %cst_25 = arith.constant dense<0.000000e+00> : vector<16xf32>
    %44 = vector.multi_reduction <add>, %43, %cst_25 [1] : vector<16x64xf32> to vector<16xf32>
    %45 = vector.shape_cast %44 : vector<16xf32> to vector<16x1xf32>
    %c0_26 = arith.constant 0 : index
    %c0_27 = arith.constant 0 : index
    %46 = memref.load %arg9[%c0_26, %c0_27] : memref<1x1xf32, #tpu.memory_space<smem>>
    %47 = vector.broadcast %46 : f32 to vector<16x1xf32>
    %48 = arith.addf %45, %47 : vector<16x1xf32>
    %cst_28 = arith.constant 0.000000e+00 : f32
    %49 = vector.broadcast %cst_28 : f32 to vector<16x1xf32>
    %50 = arith.subf %49, %48 : vector<16x1xf32>
    %51 = math.exp %50 : vector<16x1xf32>
    %cst_29 = arith.constant 1.000000e+00 : f32
    %52 = vector.broadcast %cst_29 : f32 to vector<16x1xf32>
    %53 = arith.addf %52, %51 : vector<16x1xf32>
    %54 = tpu.reciprocal %53 : vector<16x1xf32> -> vector<16x1xf32>
    %55 = vector.shape_cast %54 : vector<16x1xf32> to vector<16x1xf32>
    %56 = vector.broadcast %55 : vector<16x1xf32> to vector<16x128xf32>
    %c0_30 = arith.constant 0 : index
    %c0_31 = arith.constant 0 : index
    %57 = vector.load %arg10[%c0_30, %c0_31] : memref<16x128xf32, #tpu.memory_space<vmem>>, vector<16x128xf32>
    tpu.vector_store %arg10[%c0_30, %c0_31], %56 {strides = array<i32>} : memref<16x128xf32, #tpu.memory_space<vmem>>, vector<16x128xf32>,
    return
  }
  func.func @transform_0(%arg0: i32) -> (i32, i32) {
    %c0_i32 = arith.constant 0 : i32
    %c0_i32_0 = arith.constant 0 : i32
    return %arg0, %c0_i32 : i32, i32
  }
  func.func @transform_1(%arg0: i32) -> (i32, i32) {
    %c0_i32 = arith.constant 0 : i32
    %c0_i32_0 = arith.constant 0 : i32
    %c0_i32_1 = arith.constant 0 : i32
    return %c0_i32, %c0_i32_0 : i32, i32
  }
  func.func @transform_2(%arg0: i32) -> (i32, i32) {
    %c0_i32 = arith.constant 0 : i32
    %c0_i32_0 = arith.constant 0 : i32
    %c0_i32_1 = arith.constant 0 : i32
    return %c0_i32, %c0_i32_0 : i32, i32
  }
  func.func @transform_3(%arg0: i32) -> (i32, i32) {
    %c0_i32 = arith.constant 0 : i32
    %c0_i32_0 = arith.constant 0 : i32
    %c0_i32_1 = arith.constant 0 : i32
    return %c0_i32, %c0_i32_0 : i32, i32
  }
  func.func @transform_4(%arg0: i32) -> (i32, i32) {
    %c0_i32 = arith.constant 0 : i32
    %c0_i32_0 = arith.constant 0 : i32
    %c0_i32_1 = arith.constant 0 : i32
    return %c0_i32, %c0_i32_0 : i32, i32
  }
  func.func @transform_5(%arg0: i32) -> (i32, i32) {
    %c0_i32 = arith.constant 0 : i32
    %c0_i32_0 = arith.constant 0 : i32
    %c0_i32_1 = arith.constant 0 : i32
    return %c0_i32, %c0_i32_0 : i32, i32
  }
  func.func @transform_6(%arg0: i32) -> (i32, i32) {
    %c0_i32 = arith.constant 0 : i32
    %c0_i32_0 = arith.constant 0 : i32
    %c0_i32_1 = arith.constant 0 : i32
    return %c0_i32, %c0_i32_0 : i32, i32
  }
  func.func @transform_7(%arg0: i32) -> (i32, i32) {
    %c0_i32 = arith.constant 0 : i32
    %c0_i32_0 = arith.constant 0 : i32
    %c0_i32_1 = arith.constant 0 : i32
    return %c0_i32, %c0_i32_0 : i32, i32
  }
  func.func @transform_8(%arg0: i32) -> (i32, i32) {
    %c0_i32 = arith.constant 0 : i32
    %c0_i32_0 = arith.constant 0 : i32
    %c0_i32_1 = arith.constant 0 : i32
    return %c0_i32, %c0_i32_0 : i32, i32
  }
  func.func @transform_9(%arg0: i32) -> (i32, i32) {
    %c0_i32 = arith.constant 0 : i32
    %c0_i32_0 = arith.constant 0 : i32
    return %arg0, %c0_i32 : i32, i32
  }
}

</mosaic_0001>

<bundles_post_ra>
// kernel: tpu_custom_call.1
= control target key start
LH: loop header
LB: loop body
LE: loop exit
PB: predicated region body
PF: predicated region fallthrough
CT: control target
= control target key end

     0   :  { %s6594_s0 = inlined_call_operand.vmem [shape: s32[64,16], index: 0, kind: input, shape index: {}]   ;;  %s6595_s1 = inlined_call_operand.vmem [shape: bf16[128,32], index: 1, kind: input, shape index: {}]   ;;  %s6596_s2 = inlined_call_operand.vmem [shape: f32[32,128], index: 2, kind: input, shape index: {}]   ;;  %s6597_s3 = inlined_call_operand.vmem [shape: f32[32,128], index: 3, kind: input, shape index: {}]   ;;  %s6598_s4 = inlined_call_operand.vmem [shape: f32[1,128], index: 4, kind: input, shape index: {}]   ;;  %s6599_s5 = inlined_call_operand.vmem [shape: f32[128,64], index: 5, kind: input, shape index: {}]   ;;  %s6600_s6 = inlined_call_operand.vmem [shape: f32[1,64], index: 6, kind: input, shape index: {}]   ;;  %s6601_s7 = inlined_call_operand.vmem [shape: f32[1,64], index: 7, kind: input, shape index: {}]   ;;  %s6602_s8 = inlined_call_operand.<no memory space> [shape: f32[1,1], index: 8, kind: input, shape index: {}]   ;;  %s6603_s9 = inlined_call_operand.hbm [shape: f32[64,128], index: 9, kind: output, shape index: {}]  }
   0x1   :  { %14 = sst [smem:[#allocation2]] %s6602_s8 }
   0x2   :  { %15 = vsyncpa [#allocation4], 0 }
   0x3   :  { %17 = vsyncpa [#allocation4 + $0x1], 0  ;;  %s4403_s11 = smov 0   ;;  %s4405_s12 = smov 0  }
   0x4   :  { %s4407_s13 = smov 0   ;;  %s4409_s14 = smov 0  }
   0x5 LB: > { %s4424_s8 = sadd.s32 4294967295, %s4344_s14   ;;  %s3913_s15 = sadd.s32 4294967294, %s4344_s14   ;;  %s4344_s14 = sphi %s4409_s14, %s6622_s14   ;;  %s4340_s13 = sphi %s4407_s13, %s6621_s13   ;;  %s4336_s12 = sphi %s4405_s12, %s6620_s12   ;;  %s4332_s11 = sphi %s4403_s11, %s6619_s11  }
   0x6   : > { %s4428_s16 = sadd.s32 1, %s4344_s14   ;;  %s224_s17 = sadd.s32 1, %s4340_s13 }
   0x7   : > { %s221_s18 = ssub.s32 %s4344_s14, %s4428_s16  ;;  %p234_p0 = scmp.ne.s32.totalorder %s4340_s13, %s4336_s12 }
   0x8   : > { %p222_p1 = scmp.eq.s32.totalorder %s221_s18, 0  ;;  %p235_p2 = scmp.eq.s32.totalorder %s4424_s8, 3 }
   0x9   : > { %p240_p3 = scmp.ne.s32.totalorder %s4336_s12, %s4332_s11  ;;  %p241_p4 = scmp.eq.s32.totalorder %s3913_s15, 3 }
   0xa   : > { %s4439_s19 = scalar_select %p222_p1, %s4340_s13, %s224_s17  }
   0xb   : > { %p4441_p5 = por %p235_p2, %p234_p0  ;;  %p4445_p6 = por %p241_p4, %p240_p3 }
   0xc   : > { %p3916_p7 = scmp.ge.s32.totalorder %s4344_s14, 1  ;;  %p292_p8 = scmp.lt.s32.totalorder %s4344_s14, 5 }
   0xe   : > { %p293_p9 = pnand %p3916_p7, %p292_p8 }
   0xf   : > { %s3918_s22 = sshll.u32 (!%p293_p9), %s4424_s8, 1  ;;  %v369_v0 = vlaneseq (!%p293_p9)  ;;  %v4467_v20 = vld [vmem:[%s6595_s1] sm:$0xff] (!%p293_p9)   ;;  %v4475_v23 = vld [vmem:[%s6595_s1 + $0x8] sm:$0xff] (!%p293_p9)   ;;  %v3998_v25 = vld [vmem:[%s6595_s1 + $0x10] sm:$0xff] (!%p293_p9)   ;;  %v4346_v39 = vmov (!%p293_p9), 0.0   ;;  %s3821_s10 = sld [smem:[#allocation2]] (!%p293_p9) }
  0x10   : > { %296 = sbr.rel (%p293_p9) target bundleno = 1435 (0x59b), region = 56  ;;  %p329_p10 = scmp.lt.s32.totalorder (!%p293_p9), %s3918_s22, 7  ;;  %4145 = vmatprep.subr.bf16.mxu0 (!%p293_p9), %v4467_v20  ;;  %v3999_v28 = vld [vmem:[%s6595_s1 + $0x18] sm:$0xff] (!%p293_p9)   ;;  %v4000_v30 = vld [vmem:[%s6595_s1 + $0x20] sm:$0xff] (!%p293_p9)   ;;  %v4001_v32 = vld [vmem:[%s6595_s1 + $0x28] sm:$0xff] (!%p293_p9)  }
  0x11   : > { %v4453_v1 = vshrl.u32 (!%p293_p9), %v369_v0, 7  ;;  %4147 = vmatpush3.bf16.msra.mxu0 (!%p293_p9), %v4467_v20  ;;  %v4002_v34 = vld [vmem:[%s6595_s1 + $0x30] sm:$0xff] (!%p293_p9)   ;;  %v4003_v35 = vld [vmem:[%s6595_s1 + $0x38] sm:$0xff] (!%p293_p9)   ;;  %v4499_v36 = vand.u32 (!%p293_p9), 127, %v369_v0  ;;  %s325_s15 = sand.u32 (!%p293_p9), 1, %s4336_s12   ;;  %s3964_s18 = sshll.u32 (!%p293_p9), %s4424_s8, 8 }
  0x12   : > { %4149 = vmatprep.subr.bf16.mxu0 (!%p293_p9), %v4475_v23  ;;  %s3917_s17 = sshll.u32 (!%p293_p9), %s325_s15, 4  ;;  %s6553_s27 = scalar_lea.sflag (!%p293_p9), [#allocation4], %s325_s15 }
  0x13   : > { %v384_v2 = vsub.s32 (!%p293_p9), 1, %v4453_v1  ;;  %v373_v3 = vsub.s32 (!%p293_p9), 0, %v4453_v1  ;;  %v395_v7 = vsub.s32 (!%p293_p9), 2, %v4453_v1  ;;  %v406_v12 = vsub.s32 (!%p293_p9), 3, %v4453_v1  ;;  %s4347_s8 = smov (!%p293_p9), [#allocation3]  }
  0x14   : > { %v417_v15 = vsub.s32 (!%p293_p9), 4, %v4453_v1  ;;  %v428_v18 = vsub.s32 (!%p293_p9), 5, %v4453_v1  ;;  %v439_v22 = vsub.s32 (!%p293_p9), 6, %v4453_v1  ;;  %v450_v27 = vsub.s32 (!%p293_p9), 7, %v4453_v1  ;;  %s4286_s29 = sshll.u32 (!%p293_p9), %s4347_s8, 4  ;;  %s4287_s29 = int_to_ptr.vmem [resolvable:$false] %s4286_s29 }
  0x15   : > { %4151 = vmatpush3.bf16.msra.mxu0 (!%p293_p9), %v4475_v23  ;;  %s4288_s30 = scalar_lea.vmem (!%p293_p9), %s4287_s29, 512 }
  0x16   : > { %4153 = vmatprep.subr.bf16.mxu0 (!%p293_p9), %v3998_v25 }
  0x17   : > { %s6624_s22 = smov (!%p329_p10, %s3918_s22), 7 }
  0x18   : > { %s3919_s23 = sshll.u32 %s6624_s22, 3  ;;  %s327_s22 = scalar_lea.vmem [#allocation3], %s3917_s17 }
  0x19   : > { %s332_s26 = scalar_lea.vmem %s6594_s0, %s3919_s23  ;;  %4155 = vmatpush3.bf16.msra.mxu0 %v3998_v25  ;;  %s3851_s23 = sshll.u32 %s327_s22, 4  ;;  %s6551_s23 = int_to_ptr.vmem [resolvable:$true] %s3851_s23 }
  0x1a   : > { %v367_v4 = vld [vmem:[%s332_s26] sm:$0xff]  ;;  %v368_v9 = vld [vmem:[%s332_s26 + $0x8] sm:$0xff]  ;;  %4157 = vmatprep.subr.bf16.mxu0 %v3999_v28  ;;  %s6549_s26 = scalar_lea.hbm %s6603_s9, %s3964_s18  ;;  %s4282_s28 = scalar_lea.vmem %s6551_s23, 256 }
  0x1b   : > { %v385_v5 = vrot.slane %v367_v4, %v384_v2  ;;  %v374_v6 = vrot.slane %v367_v4, %v373_v3  ;;  %v396_v8 = vrot.slane %v367_v4, %v395_v7  ;;  %v462_v10 = vrot.slane %v368_v9, %v373_v3  ;;  %p4283_p11 = scmp.ne.s32.totalorder %s6551_s23, %s4282_s28  ;;  %p4289_p0 = scmp.lt.s32.totalorder %s6551_s23, %s4287_s29 }
  0x1c   : > { %v473_v11 = vrot.slane %v368_v9, %v384_v2  ;;  %v407_v13 = vrot.slane %v367_v4, %v406_v12  ;;  %v484_v14 = vrot.slane %v368_v9, %v395_v7  ;;  %v418_v16 = vrot.slane %v367_v4, %v417_v15  ;;  %p4290_p1 = scmp.lt.s32.totalorder %s4288_s30, %s4282_s28 }
  0x1d   : > { %387 = vbcast.lane.b32.xlu1 %v385_v5, 256  ;;  %376 = vbcast.lane.b32.xlu0 %v374_v6, 256  ;;  %v495_v17 = vrot.slane %v368_v9, %v406_v12  ;;  %v429_v19 = vrot.slane %v367_v4, %v428_v18  ;;  %v506_v21 = vrot.slane %v368_v9, %v417_v15  ;;  %p4284_p12 = pnand %p4283_p11, %p4441_p5 }
  0x1e   : > { %v440_v24 = vrot.slane %v367_v4, %v439_v22  ;;  %v517_v26 = vrot.slane %v368_v9, %v428_v18  ;;  %4159 = vmatpush3.bf16.msra.mxu0 %v3999_v28  ;;  %v451_v29 = vrot.slane %v367_v4, %v450_v27  ;;  %v528_v31 = vrot.slane %v368_v9, %v439_v22  ;;  %p4291_p2 = por %p4290_p1, %p4289_p0 }
  0x1f   : > { %4161 = vmatprep.subr.bf16.mxu0 %v4000_v30  ;;  %v539_v33 = vrot.slane %v368_v9, %v450_v27  ;;  %p4285_p13 = pneg %p4284_p12 }
  0x21   : > { %391 = vbcast.lane.b32.xlu1 %v385_v5, 264  ;;  %380 = vbcast.lane.b32.xlu0 %v374_v6, 264  ;;  %p4292_p3 = pnand %p4291_p2, %p4285_p13 }
  0x22   : > { %4163 = vmatpush3.bf16.msra.mxu0 %v4000_v30 }
  0x23   : > { %4165 = vmatprep.subr.bf16.mxu0 %v4001_v32 }
  0x25   : > { %402 = vbcast.lane.b32.xlu1 %v396_v8, 264  ;;  %398 = vbcast.lane.b32.xlu0 %v396_v8, 256 }
  0x26   : > { %4167 = vmatpush3.bf16.msra.mxu0 %v4001_v32 }
  0x27   : > { %4169 = vmatprep.subr.bf16.mxu0 %v4002_v34 }
  0x29   : > { %468 = vbcast.lane.b32.xlu1 %v462_v10, 264  ;;  %464 = vbcast.lane.b32.xlu0 %v462_v10, 256 }
  0x2a   : > { %4171 = vmatpush3.bf16.msra.mxu0 %v4002_v34 }
  0x2b   : > { %4173 = vmatprep.subr.bf16.mxu0 %v4003_v35 }
  0x2d   : > { %479 = vbcast.lane.b32.xlu1 %v473_v11, 264  ;;  %475 = vbcast.lane.b32.xlu0 %v473_v11, 256 }
  0x2e   : > { %4175 = vmatpush3.bf16.msra.mxu0 %v4003_v35 }
  0x31   : > { %413 = vbcast.lane.b32.xlu1 %v407_v13, 264  ;;  %409 = vbcast.lane.b32.xlu0 %v407_v13, 256 }
  0x35   : > { %490 = vbcast.lane.b32.xlu1 %v484_v14, 264  ;;  %486 = vbcast.lane.b32.xlu0 %v484_v14, 256 }
  0x39   : > { %424 = vbcast.lane.b32.xlu1 %v418_v16, 264  ;;  %420 = vbcast.lane.b32.xlu0 %v418_v16, 256 }
  0x3d   : > { %501 = vbcast.lane.b32.xlu1 %v495_v17, 264  ;;  %497 = vbcast.lane.b32.xlu0 %v495_v17, 256 }
  0x41   : > { %435 = vbcast.lane.b32.xlu1 %v429_v19, 264  ;;  %431 = vbcast.lane.b32.xlu0 %v429_v19, 256 }
  0x45   : > { %512 = vbcast.lane.b32.xlu1 %v506_v21, 264  ;;  %508 = vbcast.lane.b32.xlu0 %v506_v21, 256 }
  0x49   : > { %446 = vbcast.lane.b32.xlu1 %v440_v24, 264  ;;  %442 = vbcast.lane.b32.xlu0 %v440_v24, 256 }
  0x4d   : > { %523 = vbcast.lane.b32.xlu1 %v517_v26, 264  ;;  %519 = vbcast.lane.b32.xlu0 %v517_v26, 256 }
  0x51   : > { %457 = vbcast.lane.b32.xlu1 %v451_v29, 264  ;;  %453 = vbcast.lane.b32.xlu0 %v451_v29, 256 }
  0x55   : > { %534 = vbcast.lane.b32.xlu1 %v528_v31, 264  ;;  %530 = vbcast.lane.b32.xlu0 %v528_v31, 256 }
  0x59   : > { %545 = vbcast.lane.b32.xlu1 %v539_v33, 264  ;;  %541 = vbcast.lane.b32.xlu0 %v539_v33, 256 }
  0x8f   : > { %v388_v37 = vpop.permute.xlu1 %387  ;;  %v377_v38 = vpop.permute.xlu0 %376 }
  0x90   : > { %vm549_vm0 = vcmp.eq.s32.totalorder %v388_v37, %v4499_v36  ;;  %vm547_vm1 = vcmp.eq.s32.totalorder %v377_v38, %v4499_v36 }
  0x91   : > { %v3922_v40 = vsel %vm549_vm0, 1.0, %v4346_v39  ;;  %v3920_v43 = vsel %vm547_vm1, 1.0, %v4346_v39 }
  0x93   : > { %v392_v41 = vpop.permute.xlu1 %391  ;;  %v381_v42 = vpop.permute.xlu0 %380 }
  0x94   : > { %vm550_vm2 = vcmp.eq.s32.totalorder %v392_v41, %v4499_v36  ;;  %vm548_vm3 = vcmp.eq.s32.totalorder %v381_v42, %v4499_v36 }
  0x95   : > { %v3923_v44 = vsel %vm550_vm2, 1.0, %v4346_v39  ;;  %v3921_v45 = vsel %vm548_vm3, 1.0, %v4346_v39 }
  0x96   : > { %v650_v46 = vadd.f32 %v3923_v44, %v3922_v40  ;;  %v643_v47 = vadd.f32 %v3921_v45, %v3920_v43 }
  0x97   : > { %v403_v48 = vpop.permute.xlu1 %402  ;;  %v399_v49 = vpop.permute.xlu0 %398 }
  0x98   : > { %v651_v50 = vrot.slane %v650_v46, 4  ;;  %v644_v51 = vrot.slane %v643_v47, 4  ;;  %vm552_vm4 = vcmp.eq.s32.totalorder %v403_v48, %v4499_v36  ;;  %vm551_vm5 = vcmp.eq.s32.totalorder %v399_v49, %v4499_v36 }
  0x99   : > { %v3925_v52 = vsel %vm552_vm4, 1.0, %v4346_v39  ;;  %v3924_v53 = vsel %vm551_vm5, 1.0, %v4346_v39 }
  0x9a   : > { %v652_v54 = vadd.f32 %v651_v50, %v650_v46  ;;  %v645_v55 = vadd.f32 %v644_v51, %v643_v47  ;;  %v657_v56 = vadd.f32 %v3925_v52, %v3924_v53 }
  0x9b   : > { %v469_v57 = vpop.permute.xlu1 %468  ;;  %v465_v58 = vpop.permute.xlu0 %464 }
  0x9c   : > { %v653_v59 = vrot.slane %v652_v54, 2  ;;  %v646_v60 = vrot.slane %v645_v55, 2  ;;  %v658_v61 = vrot.slane %v657_v56, 4  ;;  %vm564_vm6 = vcmp.eq.s32.totalorder %v469_v57, %v4499_v36 }
  0x9d   : > { %v3937_v62 = vsel %vm564_vm6, 1.0, %v4346_v39  ;;  %vm563_vm7 = vcmp.eq.s32.totalorder %v465_v58, %v4499_v36 }
  0x9e   : > { %v654_v63 = vadd.f32 %v653_v59, %v652_v54  ;;  %v647_v0 = vadd.f32 %v646_v60, %v645_v55  ;;  %v659_v1 = vadd.f32 %v658_v61, %v657_v56  ;;  %v3936_v2 = vsel %vm563_vm7, 1.0, %v4346_v39 }
  0x9f   : > { %v699_v3 = vadd.f32 %v3937_v62, %v3936_v2  ;;  %v480_v4 = vpop.permute.xlu1 %479  ;;  %v476_v5 = vpop.permute.xlu0 %475 }
  0xa0   : > { %v648_v6 = vrot.slane %v647_v0, 1  ;;  %v660_v7 = vrot.slane %v659_v1, 2  ;;  %vm566_vm8 = vcmp.eq.s32.totalorder %v480_v4, %v4499_v36  ;;  %vm565_vm9 = vcmp.eq.s32.totalorder %v476_v5, %v4499_v36 }
  0xa1   : > { %v700_v8 = vrot.slane %v699_v3, 4  ;;  %v3939_v9 = vsel %vm566_vm8, 1.0, %v4346_v39  ;;  %v655_v10 = vrot.slane %v654_v63, 1  ;;  %v3938_v13 = vsel %vm565_vm9, 1.0, %v4346_v39 }
  0xa2   : > { %v4520_v11 = vadd.f32 %v648_v6, %v647_v0  ;;  %v661_v12 = vadd.f32 %v660_v7, %v659_v1  ;;  %v706_v15 = vadd.f32 %v3939_v9, %v3938_v13 }
  0xa3   : > { %v701_v14 = vadd.f32 %v700_v8, %v699_v3  ;;  %v414_v16 = vpop.permute.xlu1 %413  ;;  %v410_v17 = vpop.permute.xlu0 %409  ;;  %v4529_v24 = vadd.f32 %v655_v10, %v654_v63 }
  0xa4   : > { %vm554_vm10 = vcmp.eq.s32.totalorder %v414_v16, %v4499_v36  ;;  %vm553_vm11 = vcmp.eq.s32.totalorder %v410_v17, %v4499_v36  ;;  %876 = vbcast.lane.b32.xlu1 %v4520_v11, 264  ;;  %872 = vbcast.lane.b32.xlu0 %v4520_v11, 256  ;;  %v707_v19 = vrot.slane %v706_v15, 4  ;;  %v662_v25 = vrot.slane %v661_v12, 1 }
  0xa5   : > { %v702_v18 = vrot.slane %v701_v14, 2  ;;  %v3927_v21 = vsel %vm554_vm10, 1.0, %v4346_v39  ;;  %v3926_v22 = vsel %vm553_vm11, 1.0, %v4346_v39  ;;  %vm771_vm10 = vcmask 1041409  }
  0xa6   : > { %v664_v26 = vadd.f32 %v3927_v21, %v3926_v22  ;;  %v708_v28 = vadd.f32 %v707_v19, %v706_v15  ;;  %v4537_v35 = vadd.f32 %v662_v25, %v661_v12 }
  0xa7   : > { %v703_v27 = vadd.f32 %v702_v18, %v701_v14  ;;  %v491_v29 = vpop.permute.xlu1 %490  ;;  %v487_v30 = vpop.permute.xlu0 %486 }
  0xa8   : > { %v665_v31 = vrot.slane %v664_v26, 4  ;;  %vm568_vm12 = vcmp.eq.s32.totalorder %v491_v29, %v4499_v36  ;;  %vm567_vm13 = vcmp.eq.s32.totalorder %v487_v30, %v4499_v36  ;;  %939 = vbcast.lane.b32.xlu1 %v4529_v24, 264  ;;  %935 = vbcast.lane.b32.xlu0 %v4529_v24, 256  ;;  %v709_v32 = vrot.slane %v708_v28, 2 }
  0xa9   : > { %v3941_v33 = vsel %vm568_vm12, 1.0, %v4346_v39  ;;  %v3940_v34 = vsel %vm567_vm13, 1.0, %v4346_v39  ;;  %v704_v37 = vrot.slane %v703_v27, 1  ;;  %vm773_vm13 = vcmask 1042434  }
  0xaa   : > { %v666_v38 = vadd.f32 %v665_v31, %v664_v26  ;;  %v713_v40 = vadd.f32 %v3941_v33, %v3940_v34  ;;  %v710_v41 = vadd.f32 %v709_v32, %v708_v28 }
  0xab   : > { %v425_v42 = vpop.permute.xlu1 %424  ;;  %v421_v43 = vpop.permute.xlu0 %420  ;;  %v4545_v48 = vadd.f32 %v704_v37, %v703_v27 }
  0xac   : > { %v714_v44 = vrot.slane %v713_v40, 4  ;;  %vm556_vm14 = vcmp.eq.s32.totalorder %v425_v42, %v4499_v36  ;;  %vm555_vm15 = vcmp.eq.s32.totalorder %v421_v43, %v4499_v36  ;;  %1002 = vbcast.lane.b32.xlu1 %v4537_v35, 264  ;;  %998 = vbcast.lane.b32.xlu0 %v4537_v35, 256  ;;  %v667_v45 = vrot.slane %v666_v38, 2 }
  0xad   : > { %v3929_v46 = vsel %vm556_vm14, 1.0, %v4346_v39  ;;  %v3928_v47 = vsel %vm555_vm15, 1.0, %v4346_v39  ;;  %v711_v49 = vrot.slane %v710_v41, 1  ;;  %vm775_vm14 = vcmask 1043459  }
  0xae   : > { %v715_v50 = vadd.f32 %v714_v44, %v713_v40  ;;  %v671_v51 = vadd.f32 %v3929_v46, %v3928_v47  ;;  %v668_v55 = vadd.f32 %v667_v45, %v666_v38 }
  0xaf   : > { %v502_v52 = vpop.permute.xlu1 %501  ;;  %v498_v53 = vpop.permute.xlu0 %497  ;;  %v4552_v58 = vadd.f32 %v711_v49, %v710_v41 }
  0xb0   : > { %v672_v54 = vrot.slane %v671_v51, 4  ;;  %vm570_vm0 = vcmp.eq.s32.totalorder %v502_v52, %v4499_v36  ;;  %1380 = vbcast.lane.b32.xlu1 %v4545_v48, 264  ;;  %1376 = vbcast.lane.b32.xlu0 %v4545_v48, 256  ;;  %v716_v56 = vrot.slane %v715_v50, 2  ;;  %vm569_vm1 = vcmp.eq.s32.totalorder %v498_v53, %v4499_v36 }
  0xb1   : > { %v3943_v57 = vsel %vm570_vm0, 1.0, %v4346_v39  ;;  %v3942_v60 = vsel %vm569_vm1, 1.0, %v4346_v39  ;;  %v669_v0 = vrot.slane %v668_v55, 1  ;;  %vm777_vm1 = vcmask 1044484  }
  0xb2   : > { %v673_v59 = vadd.f32 %v672_v54, %v671_v51  ;;  %v720_v61 = vadd.f32 %v3943_v57, %v3942_v60  ;;  %v717_v1 = vadd.f32 %v716_v56, %v715_v50 }
  0xb3   : > { %v436_v62 = vpop.permute.xlu1 %435  ;;  %v432_v63 = vpop.permute.xlu0 %431  ;;  %v4565_v10 = vadd.f32 %v669_v0, %v668_v55 }
  0xb4   : > { %vm558_vm2 = vcmp.eq.s32.totalorder %v436_v62, %v4499_v36  ;;  %vm557_vm3 = vcmp.eq.s32.totalorder %v432_v63, %v4499_v36  ;;  %1443 = vbcast.lane.b32.xlu1 %v4552_v58, 264  ;;  %1439 = vbcast.lane.b32.xlu0 %v4552_v58, 256  ;;  %v674_v4 = vrot.slane %v673_v59, 2  ;;  %v721_v5 = vrot.slane %v720_v61, 4 }
  0xb5   : > { %v3931_v2 = vsel %vm558_vm2, 1.0, %v4346_v39  ;;  %v3930_v3 = vsel %vm557_vm3, 1.0, %v4346_v39  ;;  %v718_v12 = vrot.slane %v717_v1, 1  ;;  %vm779_vm2 = vcmask 1045509  }
  0xb6   : > { %v678_v6 = vadd.f32 %v3931_v2, %v3930_v3  ;;  %v675_v13 = vadd.f32 %v674_v4, %v673_v59  ;;  %v722_v14 = vadd.f32 %v721_v5, %v720_v61  ;;  %v772_v61 = vsel %vm771_vm10, %v4529_v24, %v4520_v11 }
  0xb7   : > { %v513_v7 = vpop.permute.xlu1 %512  ;;  %v509_v8 = vpop.permute.xlu0 %508  ;;  %v4575_v26 = vadd.f32 %v718_v12, %v717_v1 }
  0xb8   : > { %v679_v9 = vrot.slane %v678_v6, 4  ;;  %vm572_vm4 = vcmp.eq.s32.totalorder %v513_v7, %v4499_v36  ;;  %vm571_vm5 = vcmp.eq.s32.totalorder %v509_v8, %v4499_v36  ;;  %943 = vbcast.lane.b32.xlu1 %v4529_v24, 272  ;;  %880 = vbcast.lane.b32.xlu0 %v4520_v11, 272  ;;  %v676_v27 = vrot.slane %v675_v13, 1 }
  0xb9   : > { %v3945_v15 = vsel %vm572_vm4, 1.0, %v4346_v39  ;;  %v3944_v16 = vsel %vm571_vm5, 1.0, %v4346_v39  ;;  %v723_v28 = vrot.slane %v722_v14, 2  ;;  %vm781_vm5 = vcmask 1046534  }
  0xba   : > { %v680_v19 = vadd.f32 %v679_v9, %v678_v6  ;;  %v727_v21 = vadd.f32 %v3945_v15, %v3944_v16  ;;  %v4582_v38 = vadd.f32 %v676_v27, %v675_v13  ;;  %v774_v9 = vsel %vm773_vm13, %v4537_v35, %v772_v61 }
  0xbb   : > { %v447_v17 = vpop.permute.xlu1 %446  ;;  %v443_v18 = vpop.permute.xlu0 %442  ;;  %v724_v40 = vadd.f32 %v723_v28, %v722_v14 }
  0xbc   : > { %vm560_vm6 = vcmp.eq.s32.totalorder %v447_v17, %v4499_v36  ;;  %vm559_vm7 = vcmp.eq.s32.totalorder %v443_v18, %v4499_v36  ;;  %1065 = vbcast.lane.b32.xlu1 %v4565_v10, 264  ;;  %1061 = vbcast.lane.b32.xlu0 %v4565_v10, 256  ;;  %v681_v32 = vrot.slane %v680_v19, 2  ;;  %v728_v34 = vrot.slane %v727_v21, 4 }
  0xbd   : > { %v3933_v22 = vsel %vm560_vm6, 1.0, %v4346_v39  ;;  %v3932_v25 = vsel %vm559_vm7, 1.0, %v4346_v39  ;;  %v725_v53 = vrot.slane %v724_v40, 1  ;;  %vm783_vm6 = vcmask 1047559  }
  0xbe   : > { %v685_v29 = vadd.f32 %v3933_v22, %v3932_v25  ;;  %v682_v46 = vadd.f32 %v681_v32, %v680_v19  ;;  %v729_v49 = vadd.f32 %v728_v34, %v727_v21 }
  0xbf   : > { %v524_v30 = vpop.permute.xlu1 %523  ;;  %v520_v31 = vpop.permute.xlu0 %519  ;;  %v4600_v2 = vadd.f32 %v725_v53, %v724_v40 }
  0xc0   : > { %v686_v33 = vrot.slane %v685_v29, 4  ;;  %vm574_vm8 = vcmp.eq.s32.totalorder %v524_v30, %v4499_v36  ;;  %1506 = vbcast.lane.b32.xlu1 %v4575_v26, 264  ;;  %1502 = vbcast.lane.b32.xlu0 %v4575_v26, 256  ;;  %vm573_vm9 = vcmp.eq.s32.totalorder %v520_v31, %v4499_v36  ;;  %v683_v62 = vrot.slane %v682_v46, 1 }
  0xc1   : > { %v3947_v37 = vsel %vm574_vm8, 1.0, %v4346_v39  ;;  %v3946_v42 = vsel %vm573_vm9, 1.0, %v4346_v39  ;;  %v730_v63 = vrot.slane %v729_v49, 2 }
  0xc2   : > { %v687_v41 = vadd.f32 %v686_v33, %v685_v29  ;;  %v734_v43 = vadd.f32 %v3947_v37, %v3946_v42  ;;  %v4608_v14 = vadd.f32 %v683_v62, %v682_v46 }
  0xc3   : > { %v458_v44 = vpop.permute.xlu1 %457  ;;  %v454_v45 = vpop.permute.xlu0 %453  ;;  %v731_v15 = vadd.f32 %v730_v63, %v729_v49 }
  0xc4   : > { %v688_v47 = vrot.slane %v687_v41, 2  ;;  %vm562_vm11 = vcmp.eq.s32.totalorder %v458_v44, %v4499_v36  ;;  %vm561_vm12 = vcmp.eq.s32.totalorder %v454_v45, %v4499_v36  ;;  %1006 = vbcast.lane.b32.xlu0 %v4537_v35, 272  ;;  %1124 = vbcast.lane.b32.xlu1 %v4582_v38, 256  ;;  %v735_v50 = vrot.slane %v734_v43, 4 }
  0xc5   : > { %v3935_v51 = vsel %vm562_vm11, 1.0, %v4346_v39  ;;  %v3934_v52 = vsel %vm561_vm12, 1.0, %v4346_v39  ;;  %v732_v30 = vrot.slane %v731_v15, 1  ;;  %vm2903_vm12 = vcmask 261120  }
  0xc6   : > { %v692_v54 = vadd.f32 %v3935_v51, %v3934_v52  ;;  %v689_v55 = vadd.f32 %v688_v47, %v687_v41  ;;  %v736_v56 = vadd.f32 %v735_v50, %v734_v43  ;;  %v785_v47 = vsel %vm771_vm10, %v4552_v58, %v4545_v48 }
  0xc7   : > { %v535_v57 = vpop.permute.xlu1 %534  ;;  %v531_v59 = vpop.permute.xlu0 %530  ;;  %v4630_v44 = vadd.f32 %v732_v30, %v731_v15  ;;  %v786_v50 = vsel %vm773_vm13, %v4575_v26, %v785_v47 }
  0xc8   : > { %v693_v60 = vrot.slane %v692_v54, 4  ;;  %vm576_vm15 = vcmp.eq.s32.totalorder %v535_v57, %v4499_v36  ;;  %vm575_vm0 = vcmp.eq.s32.totalorder %v531_v59, %v4499_v36  ;;  %1128 = vbcast.lane.b32.xlu0 %v4582_v38, 264  ;;  %1384 = vbcast.lane.b32.xlu1 %v4545_v48, 272  ;;  %v737_v3 = vrot.slane %v736_v56, 2 }
  0xc9   : > { %v3949_v0 = vsel %vm576_vm15, 1.0, %v4346_v39  ;;  %v3948_v1 = vsel %vm575_vm0, 1.0, %v4346_v39  ;;  %v690_v6 = vrot.slane %v689_v55, 1  ;;  %v787_v52 = vsel %vm775_vm14, %v4600_v2, %v786_v50 }
  0xca   : > { %v694_v4 = vadd.f32 %v693_v60, %v692_v54  ;;  %v741_v5 = vadd.f32 %v3949_v0, %v3948_v1  ;;  %v738_v18 = vadd.f32 %v737_v3, %v736_v56  ;;  %v788_v53 = vsel %vm777_vm1, %v4630_v44, %v787_v52 }
  0xcb   : > { %v546_v7 = vpop.permute.xlu1 %545  ;;  %v542_v8 = vpop.permute.xlu0 %541  ;;  %v4612_v25 = vadd.f32 %v690_v6, %v689_v55  ;;  %v4692_v1 = vunpack.c.l.bf16 %v4467_v20  ;;  %v4695_v3 = vunpack.c.h.bf16 %v4467_v20 }
  0xcc   : > { %v695_v12 = vrot.slane %v694_v4, 2  ;;  %v742_v13 = vrot.slane %v741_v5, 4  ;;  %vm578_vm3 = vcmp.eq.s32.totalorder %v546_v7, %v4499_v36  ;;  %vm577_vm4 = vcmp.eq.s32.totalorder %v542_v8, %v4499_v36  ;;  %1447 = vbcast.lane.b32.xlu0 %v4552_v58, 272  ;;  %1565 = vbcast.lane.b32.xlu1 %v4600_v2, 256 }
  0xcd   : > { %v3951_v16 = vsel %vm578_vm3, 1.0, %v4346_v39  ;;  %v3950_v17 = vsel %vm577_vm4, 1.0, %v4346_v39  ;;  %v776_v36 = vsel %vm775_vm14, %v4565_v10, %v774_v9  ;;  %v739_v32 = vrot.slane %v738_v18, 1 }
  0xce   : > { %v696_v19 = vadd.f32 %v695_v12, %v694_v4  ;;  %v743_v21 = vadd.f32 %v742_v13, %v741_v5  ;;  %v748_v22 = vadd.f32 %v3951_v16, %v3950_v17  ;;  %v778_v39 = vsel %vm777_vm1, %v4582_v38, %v776_v36  ;;  %v3496_v36 = vld [vmem:[%s6596_s2] sm:$0xff] }
  0xcf   : > { %v780_v31 = vsel %vm779_vm2, %v4608_v14, %v778_v39  ;;  %v4632_v45 = vadd.f32 %v739_v32, %v738_v18  ;;  %v4708_v13 = vunpack.c.l.bf16 %v4475_v23 }
  0xd0   : > { %v697_v27 = vrot.slane %v696_v19, 1  ;;  %v744_v28 = vrot.slane %v743_v21, 2  ;;  %v749_v29 = vrot.slane %v748_v22, 4  ;;  %1569 = vbcast.lane.b32.xlu0 %v4600_v2, 264  ;;  %884 = vbcast.lane.b32.xlu1 %v4520_v11, 280  ;;  %v782_v40 = vsel %vm781_vm5, %v4612_v25, %v780_v31 }
  0xd1   : > { %v789_v55 = vsel %vm779_vm2, %v4632_v45, %v788_v53 }
  0xd2   : > { %v4622_v33 = vadd.f32 %v697_v27, %v696_v19  ;;  %v745_v34 = vadd.f32 %v744_v28, %v743_v21  ;;  %v750_v37 = vadd.f32 %v749_v29, %v748_v22  ;;  %v3497_v27 = vld [vmem:[%s6596_s2 + $0x8] sm:$0xff] }
  0xd3   : > { %v4184_v30 = vpack.c.bf16 %v3497_v27, %v3496_v36 }
  0xd4   : > { %v746_v41 = vrot.slane %v745_v34, 1  ;;  %v751_v42 = vrot.slane %v750_v37, 2  ;;  %947 = vbcast.lane.b32.xlu0 %v4529_v24, 280  ;;  %1069 = vbcast.lane.b32.xlu1 %v4565_v10, 272  ;;  %v784_v43 = vsel %vm783_vm6, %v4622_v33, %v782_v40 }
  0xd5   : > { %4084 = vmatprep.mubr.f32.mxu0 %v784_v43  ;;  %4185 = vmatprep.subr.bf16.mxu1 %v4184_v30  ;;  %v3499_v43 = vld [vmem:[%s6596_s2 + $0x18] sm:$0xff] }
  0xd6   : > { %v752_v46 = vadd.f32 %v751_v42, %v750_v37  ;;  %v4637_v49 = vadd.f32 %v746_v41, %v745_v34  ;;  %4187 = vmatpush3.bf16.msra.mxu1 %v4184_v30  ;;  %v3498_v42 = vld [vmem:[%s6596_s2 + $0x10] sm:$0xff] }
  0xd8   : > { %v753_v51 = vrot.slane %v752_v46, 1  ;;  %1191 = vbcast.lane.b32.xlu1 %v4608_v14, 264  ;;  %1187 = vbcast.lane.b32.xlu0 %v4608_v14, 256  ;;  %v790_v56 = vsel %vm781_vm5, %v4637_v49, %v789_v55 }
  0xda   : > { %v4647_v54 = vadd.f32 %v753_v51, %v752_v46  ;;  %v4188_v46 = vpack.c.bf16 %v3499_v43, %v3498_v42 }
  0xdc   : > { %1510 = vbcast.lane.b32.xlu0 %v4575_v26, 272  ;;  %1628 = vbcast.lane.b32.xlu1 %v4630_v44, 256  ;;  %v791_v57 = vsel %vm783_vm6, %v4647_v54, %v790_v56 }
  0xdd   : > { %4085 = vmatmul.mubr.f32.vlgmr.msra.gmra.mrb[0].mxu0 %v791_v57  ;;  %4189 = vmatprep.subr.bf16.mxu1 %v4188_v46 }
  0xde   : > { %4191 = vmatpush3.bf16.msra.mxu1 %v4188_v46 }
  0xe0   : > { %1632 = vbcast.lane.b32.xlu0 %v4630_v44, 264  ;;  %1010 = vbcast.lane.b32.xlu1 %v4537_v35, 280 }
  0xe4   : > { %1132 = vbcast.lane.b32.xlu0 %v4582_v38, 272  ;;  %1250 = vbcast.lane.b32.xlu1 %v4612_v25, 256 }
  0xe8   : > { %1254 = vbcast.lane.b32.xlu0 %v4612_v25, 264  ;;  %1388 = vbcast.lane.b32.xlu1 %v4545_v48, 280 }
  0xec   : > { %1451 = vbcast.lane.b32.xlu0 %v4552_v58, 280  ;;  %1573 = vbcast.lane.b32.xlu1 %v4600_v2, 272 }
  0xf0   : > { %1695 = vbcast.lane.b32.xlu1 %v4632_v45, 264  ;;  %1691 = vbcast.lane.b32.xlu0 %v4632_v45, 256 }
  0xf4   : > { %951 = vbcast.lane.b32.xlu1 %v4529_v24, 288  ;;  %888 = vbcast.lane.b32.xlu0 %v4520_v11, 288 }
  0xf8   : > { %1195 = vbcast.lane.b32.xlu1 %v4608_v14, 272  ;;  %1073 = vbcast.lane.b32.xlu0 %v4565_v10, 280 }
  0xfc   : > { %1317 = vbcast.lane.b32.xlu1 %v4622_v33, 264  ;;  %1313 = vbcast.lane.b32.xlu0 %v4622_v33, 256 }
 0x100   : > { %1636 = vbcast.lane.b32.xlu1 %v4630_v44, 272  ;;  %1514 = vbcast.lane.b32.xlu0 %v4575_v26, 280 }
 0x104   : > { %1758 = vbcast.lane.b32.xlu1 %v4637_v49, 264  ;;  %1754 = vbcast.lane.b32.xlu0 %v4637_v49, 256 }
 0x108   : > { %1136 = vbcast.lane.b32.xlu1 %v4582_v38, 280  ;;  %1014 = vbcast.lane.b32.xlu0 %v4537_v35, 288 }
 0x10c   : > { %1392 = vbcast.lane.b32.xlu1 %v4545_v48, 288  ;;  %1258 = vbcast.lane.b32.xlu0 %v4612_v25, 272 }
 0x110   : > { %1577 = vbcast.lane.b32.xlu1 %v4600_v2, 280  ;;  %1455 = vbcast.lane.b32.xlu0 %v4552_v58, 288 }
 0x114   : > { %1699 = vbcast.lane.b32.xlu0 %v4632_v45, 272  ;;  %1817 = vbcast.lane.b32.xlu1 %v4647_v54, 256 }
 0x116   : > { %v877_v59 = vpop.permute.xlu1 %876  ;;  %v873_v60 = vpop.permute.xlu0 %872 }
 0x117   : > { %vm1880_vm7 = vcmp.gt.f32.partialorder %v877_v59, 0.5  ;;  %vm1879_vm8 = vcmp.gt.f32.partialorder %v873_v60, 0.5 }
 0x118   : > { %1821 = vbcast.lane.b32.xlu0 %v4647_v54, 264  ;;  %892 = vbcast.lane.b32.xlu1 %v4520_v11, 296  ;;  %v2648_v6 = vsel %vm1880_vm7, %v4695_v3, -inf  ;;  %v2647_v7 = vsel %vm1879_vm8, %v4692_v1, -inf }
 0x119   : > { %v2905_v15 = vsel %vm2903_vm12, %v2648_v6, -inf  ;;  %v2904_v16 = vsel %vm2903_vm12, %v2647_v7, -inf }
 0x11a   : > { %v940_v61 = vpop.permute.xlu1 %939  ;;  %v936_v62 = vpop.permute.xlu0 %935  ;;  %v2906_v22 = vmax.f32 %v2904_v16, %v2905_v15 }
 0x11b   : > { %vm1896_vm9 = vcmp.gt.f32.partialorder %v940_v61, 0.5  ;;  %vm1895_vm11 = vcmp.gt.f32.partialorder %v936_v62, 0.5 }
 0x11c   : > { %955 = vbcast.lane.b32.xlu0 %v4529_v24, 296  ;;  %1077 = vbcast.lane.b32.xlu1 %v4565_v10, 288  ;;  %v2664_v8 = vsel %vm1896_vm9, %v4695_v3, -inf  ;;  %v2663_v20 = vsel %vm1895_vm11, %v4692_v1, -inf }
 0x11d   : > { %v2942_v17 = vsel %vm2903_vm12, %v2664_v8, -inf  ;;  %v2941_v18 = vsel %vm2903_vm12, %v2663_v20, -inf }
 0x11e   : > { %v1003_v63 = vpop.permute.xlu1 %1002  ;;  %v999_v0 = vpop.permute.xlu0 %998  ;;  %v2943_v28 = vmax.f32 %v2941_v18, %v2942_v17 }
 0x11f   : > { %vm1912_vm3 = vcmp.gt.f32.partialorder %v1003_v63, 0.5  ;;  %vm1911_vm4 = vcmp.gt.f32.partialorder %v999_v0, 0.5 }
 0x120   : > { %1199 = vbcast.lane.b32.xlu0 %v4608_v14, 280  ;;  %1321 = vbcast.lane.b32.xlu1 %v4622_v33, 272  ;;  %v2680_v47 = vsel %vm1912_vm3, %v4695_v3, -inf  ;;  %v2679_v50 = vsel %vm1911_vm4, %v4692_v1, -inf }
 0x121   : > { %v2979_v53 = vsel %vm2903_vm12, %v2680_v47, -inf  ;;  %v2978_v55 = vsel %vm2903_vm12, %v2679_v50, -inf }
 0x122   : > { %v1381_v4 = vpop.permute.xlu1 %1380  ;;  %v1377_v5 = vpop.permute.xlu0 %1376  ;;  %v2980_v61 = vmax.f32 %v2978_v55, %v2979_v53 }
 0x123   : > { %vm2008_vm7 = vcmp.gt.f32.partialorder %v1381_v4, 0.5  ;;  %vm2007_vm8 = vcmp.gt.f32.partialorder %v1377_v5, 0.5 }
 0x124   : > { %1518 = vbcast.lane.b32.xlu0 %v4575_v26, 288  ;;  %1640 = vbcast.lane.b32.xlu1 %v4630_v44, 280  ;;  %v2776_v56 = vsel %vm2008_vm7, %v4695_v3, -inf  ;;  %v2775_v57 = vsel %vm2007_vm8, %v4692_v1, -inf }
 0x125   : > { %v3201_v63 = vsel %vm2903_vm12, %v2776_v56, -inf  ;;  %v3200_v0 = vsel %vm2903_vm12, %v2775_v57, -inf }
 0x126   : > { %v4703_v9 = vpop.permute.xlu1 %1443  ;;  %v4705_v12 = vpop.permute.xlu0 %1439 }
 0x127   : > { %vm2024_vm9 = vcmp.gt.f32.partialorder %v4703_v9, 0.5  ;;  %vm2023_vm11 = vcmp.gt.f32.partialorder %v4705_v12, 0.5  ;;  %v3202_v9 = vmax.f32 %v3200_v0, %v3201_v63 }
 0x128   : > { %1762 = vbcast.lane.b32.xlu0 %v4637_v49, 272  ;;  %1018 = vbcast.lane.b32.xlu1 %v4537_v35, 296  ;;  %v2792_v5 = vsel %vm2024_vm9, %v4695_v3, -inf  ;;  %v2791_v6 = vsel %vm2023_vm11, %v4692_v1, -inf }
 0x129   : > { %v3238_v15 = vsel %vm2903_vm12, %v2792_v5, -inf  ;;  %v3237_v16 = vsel %vm2903_vm12, %v2791_v6, -inf }
 0x12a   : > { %v944_v19 = vpop.permute.xlu1 %943  ;;  %v881_v21 = vpop.permute.xlu0 %880  ;;  %v3239_v36 = vmax.f32 %v3237_v16, %v3238_v15 }
 0x12b   : > { %vm1897_vm15 = vcmp.gt.f32.partialorder %v944_v19, 0.5  ;;  %vm1881_vm0 = vcmp.gt.f32.partialorder %v881_v21, 0.5 }
 0x12c   : > { %v2665_v29 = vsel %vm1897_vm15, %v4708_v13, -inf  ;;  %v2649_v39 = vsel %vm1881_vm0, %v4708_v13, -inf  ;;  %1140 = vbcast.lane.b32.xlu0 %v4582_v38, 288  ;;  %1262 = vbcast.lane.b32.xlu1 %v4612_v25, 280 }
 0x12d   : > { %v2944_v31 = vsel %vm2903_vm12, %v2665_v29, -inf  ;;  %v2907_v32 = vsel %vm2903_vm12, %v2649_v39, -inf }
 0x12e   : > { %v4728_v34 = vmax.f32 %v2943_v28, %v2944_v31  ;;  %v4730_v37 = vmax.f32 %v2906_v22, %v2907_v32  ;;  %v4732_v40 = vpop.permute.xlu1 %1065  ;;  %v4734_v41 = vpop.permute.xlu0 %1061  ;;  %v4785_v22 = vunpack.c.h.bf16 %v4475_v23 }
 0x12f   : > { %vm1928_vm3 = vcmp.gt.f32.partialorder %v4732_v40, 0.5  ;;  %vm1927_vm4 = vcmp.gt.f32.partialorder %v4734_v41, 0.5 }
 0x130   : > { %1396 = vbcast.lane.b32.xlu0 %v4545_v48, 296  ;;  %1459 = vbcast.lane.b32.xlu1 %v4552_v58, 296  ;;  %v2696_v29 = vsel %vm1928_vm3, %v4695_v3, -inf  ;;  %v2695_v39 = vsel %vm1927_vm4, %v4692_v1, -inf }
 0x131   : > { %v3016_v40 = vsel %vm2903_vm12, %v2696_v29, -inf  ;;  %v3015_v41 = vsel %vm2903_vm12, %v2695_v39, -inf }
 0x132   : > { %v4746_v51 = vpop.permute.xlu1 %1506  ;;  %v4748_v52 = vpop.permute.xlu0 %1502  ;;  %v3017_v50 = vmax.f32 %v3015_v41, %v3016_v40 }
 0x133   : > { %vm2040_vm9 = vcmp.gt.f32.partialorder %v4746_v51, 0.5  ;;  %vm2039_vm11 = vcmp.gt.f32.partialorder %v4748_v52, 0.5 }
 0x134   : > { %1581 = vbcast.lane.b32.xlu0 %v4600_v2, 288  ;;  %1703 = vbcast.lane.b32.xlu1 %v4632_v45, 280  ;;  %v2808_v51 = vsel %vm2040_vm9, %v4695_v3, -inf  ;;  %v2807_v52 = vsel %vm2039_vm11, %v4692_v1, -inf }
 0x135   : > { %v3275_v0 = vsel %vm2903_vm12, %v2808_v51, -inf }
 0x136   : > { %v4756_v59 = vpop.permute.xlu1 %1124  ;;  %v1007_v60 = vpop.permute.xlu0 %1006 }
 0x137   : > { %vm1913_vm15 = vcmp.gt.f32.partialorder %v1007_v60, 0.5 }
 0x138   : > { %v2681_v62 = vsel %vm1913_vm15, %v4708_v13, -inf  ;;  %1825 = vbcast.lane.b32.xlu0 %v4647_v54, 272  ;;  %896 = vbcast.lane.b32.xlu1 %v4520_v11, 304 }
 0x139   : > { %v2981_v4 = vsel %vm2903_vm12, %v2681_v62, -inf }
 0x13a   : > { %v4768_v7 = vmax.f32 %v2980_v61, %v2981_v4  ;;  %v1385_v8 = vpop.permute.xlu1 %1384  ;;  %v4770_v20 = vpop.permute.xlu0 %1128  ;;  %v3274_v4 = vsel %vm2903_vm12, %v2807_v52, -inf }
 0x13b   : > { %vm2009_vm0 = vcmp.gt.f32.partialorder %v1385_v8, 0.5  ;;  %vm1944_vm3 = vcmp.gt.f32.partialorder %v4770_v20, 0.5  ;;  %v3276_v8 = vmax.f32 %v3274_v4, %v3275_v0 }
 0x13c   : > { %v2777_v12 = vsel %vm2009_vm0, %v4708_v13, -inf  ;;  %959 = vbcast.lane.b32.xlu0 %v4529_v24, 304  ;;  %1081 = vbcast.lane.b32.xlu1 %v4565_v10, 296  ;;  %v2712_v15 = vsel %vm1944_vm3, %v4695_v3, -inf }
 0x13d   : > { %v3203_v17 = vsel %vm2903_vm12, %v2777_v12, -inf }
 0x13e   : > { %v4778_v18 = vmax.f32 %v3202_v9, %v3203_v17  ;;  %v4780_v19 = vpop.permute.xlu1 %1565  ;;  %v1448_v21 = vpop.permute.xlu0 %1447 }
 0x13f   : > { %vm2025_vm7 = vcmp.gt.f32.partialorder %v1448_v21, 0.5 }
 0x140   : > { %v2793_v27 = vsel %vm2025_vm7, %v4708_v13, -inf  ;;  %1203 = vbcast.lane.b32.xlu0 %v4608_v14, 288  ;;  %1325 = vbcast.lane.b32.xlu1 %v4622_v33, 280  ;;  %vm1943_vm7 = vcmp.gt.f32.partialorder %v4756_v59, 0.5  ;;  %v3053_v59 = vsel %vm2903_vm12, %v2712_v15, -inf }
 0x141   : > { %v3240_v28 = vsel %vm2903_vm12, %v2793_v27, -inf  ;;  %v2711_v20 = vsel %vm1943_vm7, %v4692_v1, -inf }
 0x142   : > { %v4793_v30 = vmax.f32 %v3239_v36, %v3240_v28  ;;  %v885_v31 = vpop.permute.xlu1 %884  ;;  %v4795_v32 = vpop.permute.xlu0 %1569 }
 0x143   : > { %vm1882_vm8 = vcmp.gt.f32.partialorder %v885_v31, 0.5  ;;  %v3052_v31 = vsel %vm2903_vm12, %v2711_v20, -inf  ;;  %vm2056_vm9 = vcmp.gt.f32.partialorder %v4795_v32, 0.5 }
 0x144   : > { %v2650_v23 = vsel %vm1882_vm8, %v4785_v22, -inf  ;;  %1522 = vbcast.lane.b32.xlu0 %v4575_v26, 296  ;;  %1644 = vbcast.lane.b32.xlu1 %v4630_v44, 288 }
 0x145   : > { %v4803_v42 = vsel %vm2903_vm12, %v2650_v23, -inf  ;;  %v3054_v23 = vmax.f32 %v3052_v31, %v3053_v59 }
 0x146   : > { %v2910_v43 = vmax.f32 %v4730_v37, %v4803_v42  ;;  %v1070_v46 = vpop.permute.xlu1 %1069  ;;  %v948_v47 = vpop.permute.xlu0 %947 }
 0x147   : > { %vm1929_vm15 = vcmp.gt.f32.partialorder %v1070_v46, 0.5  ;;  %vm1898_vm0 = vcmp.gt.f32.partialorder %v948_v47, 0.5  ;;  %v2824_v46 = vsel %vm2056_vm9, %v4695_v3, -inf }
 0x148   : > { %v2697_v53 = vsel %vm1929_vm15, %v4708_v13, -inf  ;;  %v2666_v55 = vsel %vm1898_vm0, %v4785_v22, -inf  ;;  %1766 = vbcast.lane.b32.xlu0 %v4637_v49, 280  ;;  %1022 = vbcast.lane.b32.xlu1 %v4537_v35, 304  ;;  %vm2055_vm15 = vcmp.gt.f32.partialorder %v4780_v19, 0.5  ;;  %v3312_v19 = vsel %vm2903_vm12, %v2824_v46, -inf }
 0x149   : > { %v3018_v56 = vsel %vm2903_vm12, %v2697_v53, -inf  ;;  %v4815_v57 = vsel %vm2903_vm12, %v2666_v55, -inf  ;;  %v2823_v32 = vsel %vm2055_vm15, %v4692_v1, -inf }
 0x14a   : > { %v4819_v60 = vmax.f32 %v3017_v50, %v3018_v56  ;;  %v2947_v61 = vmax.f32 %v4728_v34, %v4815_v57  ;;  %v4823_v62 = vpop.permute.xlu1 %1191  ;;  %v4825_v63 = vpop.permute.xlu0 %1187  ;;  %v3311_v4 = vsel %vm2903_vm12, %v2823_v32, -inf }
 0x14b   : > { %vm1960_vm7 = vcmp.gt.f32.partialorder %v4823_v62, 0.5 }
 0x14c   : > { %1144 = vbcast.lane.b32.xlu0 %v4582_v38, 296  ;;  %1266 = vbcast.lane.b32.xlu1 %v4612_v25, 288 }
 0x14e   : > { %v4831_v5 = vpop.permute.xlu1 %1628  ;;  %v1511_v6 = vpop.permute.xlu0 %1510 }
 0x14f   : > { %vm2041_vm4 = vcmp.gt.f32.partialorder %v1511_v6, 0.5  ;;  %v3313_v6 = vmax.f32 %v3311_v4, %v3312_v19 }
 0x150   : > { %v2809_v9 = vsel %vm2041_vm4, %v4708_v13, -inf  ;;  %1400 = vbcast.lane.b32.xlu0 %v4545_v48, 304  ;;  %1463 = vbcast.lane.b32.xlu1 %v4552_v58, 304 }
 0x151   : > { %v3277_v12 = vsel %vm2903_vm12, %v2809_v9, -inf }
 0x152   : > { %v4840_v16 = vmax.f32 %v3276_v8, %v3277_v12  ;;  %v1011_v17 = vpop.permute.xlu1 %1010  ;;  %v4842_v21 = vpop.permute.xlu0 %1632 }
 0x153   : > { %vm1914_vm8 = vcmp.gt.f32.partialorder %v1011_v17, 0.5  ;;  %vm2072_vm15 = vcmp.gt.f32.partialorder %v4842_v21, 0.5 }
 0x154   : > { %v2682_v36 = vsel %vm1914_vm8, %v4785_v22, -inf  ;;  %1585 = vbcast.lane.b32.xlu0 %v4600_v2, 296  ;;  %1707 = vbcast.lane.b32.xlu1 %v4632_v45, 288  ;;  %vm1959_vm8 = vcmp.gt.f32.partialorder %v4825_v63, 0.5  ;;  %v2840_v42 = vsel %vm2072_vm15, %v4695_v3, -inf }
 0x155   : > { %v4850_v27 = vsel %vm2903_vm12, %v2682_v36, -inf }
 0x156   : > { %v2984_v28 = vmax.f32 %v4768_v7, %v4850_v27  ;;  %v4854_v29 = vpop.permute.xlu1 %1250  ;;  %v1133_v39 = vpop.permute.xlu0 %1132 }
 0x157   : > { %vm1945_vm11 = vcmp.gt.f32.partialorder %v1133_v39, 0.5  ;;  %v4900_v39 = vld [vmem:[%s6595_s1 + $0x10] sm:$0xff]  }
 0x158   : > { %v2713_v40 = vsel %vm1945_vm11, %v4708_v13, -inf  ;;  %1829 = vbcast.lane.b32.xlu0 %v4647_v54, 280  ;;  %900 = vbcast.lane.b32.xlu1 %v4520_v11, 312  ;;  %v4903_v31 = vunpack.c.l.bf16 %v4900_v39 }
 0x159   : > { %v3055_v41 = vsel %vm2903_vm12, %v2713_v40, -inf  ;;  %v2727_v40 = vsel %vm1959_vm8, %v4692_v1, -inf }
 0x15a   : > { %v4864_v47 = vmax.f32 %v3054_v23, %v3055_v41  ;;  %v1389_v50 = vpop.permute.xlu1 %1388  ;;  %v4866_v53 = vpop.permute.xlu0 %1254  ;;  %v2728_v23 = vsel %vm1960_vm7, %v4695_v3, -inf  ;;  %v3089_v32 = vsel %vm2903_vm12, %v2727_v40, -inf }
 0x15b   : > { %vm2010_vm0 = vcmp.gt.f32.partialorder %v1389_v50, 0.5  ;;  %v3090_v50 = vsel %vm2903_vm12, %v2728_v23, -inf }
 0x15c   : > { %v2778_v55 = vsel %vm2010_vm0, %v4785_v22, -inf  ;;  %963 = vbcast.lane.b32.xlu0 %v4529_v24, 312  ;;  %1085 = vbcast.lane.b32.xlu1 %v4565_v10, 304 }
 0x15d   : > { %v4874_v56 = vsel %vm2903_vm12, %v2778_v55, -inf }
 0x15e   : > { %v3206_v51 = vmax.f32 %v4778_v18, %v4874_v56  ;;  %v1574_v52 = vpop.permute.xlu1 %1573  ;;  %v1452_v0 = vpop.permute.xlu0 %1451 }
 0x15f   : > { %vm2057_vm3 = vcmp.gt.f32.partialorder %v1574_v52, 0.5  ;;  %vm2026_vm4 = vcmp.gt.f32.partialorder %v1452_v0, 0.5 }
 0x160   : > { %v2825_v8 = vsel %vm2057_vm3, %v4708_v13, -inf  ;;  %v2794_v9 = vsel %vm2026_vm4, %v4785_v22, -inf  ;;  %1207 = vbcast.lane.b32.xlu0 %v4608_v14, 296  ;;  %1329 = vbcast.lane.b32.xlu1 %v4622_v33, 288  ;;  %vm2071_vm4 = vcmp.gt.f32.partialorder %v4831_v5, 0.5  ;;  %v3349_v5 = vsel %vm2903_vm12, %v2840_v42, -inf }
 0x161   : > { %v3314_v12 = vsel %vm2903_vm12, %v2825_v8, -inf  ;;  %v4885_v15 = vsel %vm2903_vm12, %v2794_v9, -inf  ;;  %v3091_v8 = vmax.f32 %v3089_v32, %v3090_v50  ;;  %v2839_v23 = vsel %vm2071_vm4, %v4692_v1, -inf }
 0x162   : > { %v4887_v17 = vmax.f32 %v3313_v6, %v3314_v12  ;;  %v3243_v20 = vmax.f32 %v4793_v30, %v4885_v15  ;;  %v4891_v36 = vpop.permute.xlu1 %1695  ;;  %v4893_v59 = vpop.permute.xlu0 %1691 }
 0x163   : > { %vm2087_vm4 = vcmp.gt.f32.partialorder %v4893_v59, 0.5 }
 0x164   : > { %1526 = vbcast.lane.b32.xlu0 %v4575_v26, 304  ;;  %1648 = vbcast.lane.b32.xlu1 %v4630_v44, 296 }
 0x166   : > { %v952_v41 = vpop.permute.xlu1 %951  ;;  %v889_v62 = vpop.permute.xlu0 %888 }
 0x167   : > { %vm1899_vm9 = vcmp.gt.f32.partialorder %v952_v41, 0.5  ;;  %vm1883_vm11 = vcmp.gt.f32.partialorder %v889_v62, 0.5  ;;  %v3348_v62 = vsel %vm2903_vm12, %v2839_v23, -inf }
 0x168   : > { %v2667_v63 = vsel %vm1899_vm9, %v4903_v31, -inf  ;;  %v2651_v46 = vsel %vm1883_vm11, %v4903_v31, -inf  ;;  %1026 = vbcast.lane.b32.xlu1 %v4537_v35, 312  ;;  %1770 = vbcast.lane.b32.xlu0 %v4637_v49, 288  ;;  %vm1976_vm9 = vcmp.gt.f32.partialorder %v4866_v53, 0.5  ;;  %vm1975_vm11 = vcmp.gt.f32.partialorder %v4854_v29, 0.5 }
 0x169   : > { %v2948_v55 = vsel %vm2903_vm12, %v2667_v63, -inf  ;;  %v2911_v19 = vsel %vm2903_vm12, %v2651_v46, -inf  ;;  %v3350_v63 = vmax.f32 %v3348_v62, %v3349_v5  ;;  %v2743_v42 = vsel %vm1975_vm11, %v4692_v1, -inf }
 0x16a   : > { %v4920_v52 = vmax.f32 %v2947_v61, %v2948_v55  ;;  %v4925_v0 = vmax.f32 %v2910_v43, %v2911_v19  ;;  %v1196_v4 = vpop.permute.xlu1 %1195  ;;  %v1074_v6 = vpop.permute.xlu0 %1073 }
 0x16b   : > { %vm1961_vm0 = vcmp.gt.f32.partialorder %v1196_v4, 0.5  ;;  %vm1930_vm3 = vcmp.gt.f32.partialorder %v1074_v6, 0.5 }
 0x16c   : > { %v2729_v9 = vsel %vm1961_vm0, %v4708_v13, -inf  ;;  %v2698_v12 = vsel %vm1930_vm3, %v4785_v22, -inf  ;;  %1270 = vbcast.lane.b32.xlu1 %v4612_v25, 296  ;;  %1148 = vbcast.lane.b32.xlu0 %v4582_v38, 304  ;;  %vm2088_vm3 = vcmp.gt.f32.partialorder %v4891_v36, 0.5  ;;  %v2855_v36 = vsel %vm2087_vm4, %v4692_v1, -inf }
 0x16d   : > { %v3092_v34 = vsel %vm2903_vm12, %v2729_v9, -inf  ;;  %v4935_v37 = vsel %vm2903_vm12, %v2698_v12, -inf  ;;  %v2744_v9 = vsel %vm1976_vm9, %v4695_v3, -inf  ;;  %v3385_v18 = vsel %vm2903_vm12, %v2855_v36, -inf }
 0x16e   : > { %v4938_v43 = vmax.f32 %v3091_v8, %v3092_v34  ;;  %v3021_v57 = vmax.f32 %v4819_v60, %v4935_v37  ;;  %v4942_v61 = vpop.permute.xlu1 %1317  ;;  %v4944_v21 = vpop.permute.xlu0 %1313  ;;  %v3127_v29 = vsel %vm2903_vm12, %v2744_v9, -inf }
 0x170   : > { %1467 = vbcast.lane.b32.xlu1 %v4552_v58, 312  ;;  %1404 = vbcast.lane.b32.xlu0 %v4545_v48, 312 }
 0x172   : > { %v1637_v40 = vpop.permute.xlu1 %1636  ;;  %v1515_v41 = vpop.permute.xlu0 %1514 }
 0x173   : > { %vm2073_vm7 = vcmp.gt.f32.partialorder %v1637_v40, 0.5  ;;  %vm2042_vm8 = vcmp.gt.f32.partialorder %v1515_v41, 0.5  ;;  %v3126_v41 = vsel %vm2903_vm12, %v2743_v42, -inf }
 0x174   : > { %v2841_v46 = vsel %vm2073_vm7, %v4708_v13, -inf  ;;  %v2810_v50 = vsel %vm2042_vm8, %v4785_v22, -inf  ;;  %1711 = vbcast.lane.b32.xlu1 %v4632_v45, 296  ;;  %1589 = vbcast.lane.b32.xlu0 %v4600_v2, 304 }
 0x175   : > { %v3351_v32 = vsel %vm2903_vm12, %v2841_v46, -inf  ;;  %v4957_v55 = vsel %vm2903_vm12, %v2810_v50, -inf }
 0x176   : > { %v4959_v19 = vmax.f32 %v3350_v63, %v3351_v32  ;;  %v3280_v4 = vmax.f32 %v4840_v16, %v4957_v55  ;;  %v4963_v6 = vpop.permute.xlu1 %1758  ;;  %v4965_v8 = vpop.permute.xlu0 %1754  ;;  %v3128_v32 = vmax.f32 %v3126_v41, %v3127_v29 }
 0x178   : > { %904 = vbcast.lane.b32.xlu1 %v4520_v11, 320  ;;  %1833 = vbcast.lane.b32.xlu0 %v4647_v54, 288 }
 0x17a   : > { %v1137_v12 = vpop.permute.xlu1 %1136  ;;  %v1015_v34 = vpop.permute.xlu0 %1014 }
 0x17b   : > { %vm1946_vm15 = vcmp.gt.f32.partialorder %v1137_v12, 0.5  ;;  %vm1915_vm0 = vcmp.gt.f32.partialorder %v1015_v34, 0.5 }
 0x17c   : > { %v2714_v23 = vsel %vm1946_vm15, %v4785_v22, -inf  ;;  %v2683_v5 = vsel %vm1915_vm0, %v4903_v31, -inf  ;;  %1089 = vbcast.lane.b32.xlu1 %v4565_v10, 312  ;;  %967 = vbcast.lane.b32.xlu0 %v4529_v24, 320  ;;  %vm1992_vm0 = vcmp.gt.f32.partialorder %v4942_v61, 0.5 }
 0x17d   : > { %v4979_v53 = vsel %vm2903_vm12, %v2714_v23, -inf  ;;  %v2985_v40 = vsel %vm2903_vm12, %v2683_v5, -inf  ;;  %v2760_v36 = vsel %vm1992_vm0, %v4695_v3, -inf }
 0x17e   : > { %v3058_v62 = vmax.f32 %v4864_v47, %v4979_v53  ;;  %v4988_v63 = vmax.f32 %v2984_v28, %v2985_v40  ;;  %v1393_v46 = vpop.permute.xlu1 %1392  ;;  %v1259_v50 = vpop.permute.xlu0 %1258  ;;  %v2856_v28 = vsel %vm2088_vm3, %v4695_v3, -inf  ;;  %vm1991_vm3 = vcmp.gt.f32.partialorder %v4944_v21, 0.5 }
 0x17f   : > { %vm2011_vm7 = vcmp.gt.f32.partialorder %v1393_v46, 0.5  ;;  %vm1977_vm8 = vcmp.gt.f32.partialorder %v1259_v50, 0.5  ;;  %v3386_v40 = vsel %vm2903_vm12, %v2856_v28, -inf }
 0x180   : > { %v2779_v9 = vsel %vm2011_vm7, %v4903_v31, -inf  ;;  %v2745_v12 = vsel %vm1977_vm8, %v4708_v13, -inf  ;;  %1333 = vbcast.lane.b32.xlu1 %v4622_v33, 296  ;;  %1211 = vbcast.lane.b32.xlu0 %v4608_v14, 304 }
 0x181   : > { %v3207_v7 = vsel %vm2903_vm12, %v2779_v9, -inf  ;;  %v3129_v27 = vsel %vm2903_vm12, %v2745_v12, -inf  ;;  %v5027_v9 = vunpack.c.h.bf16 %v4900_v39  ;;  %v3387_v12 = vmax.f32 %v3385_v18, %v3386_v40 }
 0x182   : > { %v5003_v59 = vmax.f32 %v3206_v51, %v3207_v7  ;;  %v5005_v34 = vmax.f32 %v3128_v32, %v3129_v27  ;;  %v1578_v42 = vpop.permute.xlu1 %1577  ;;  %v1456_v23 = vpop.permute.xlu0 %1455  ;;  %v3164_v40 = vsel %vm2903_vm12, %v2760_v36, -inf }
 0x183   : > { %vm2058_vm9 = vcmp.gt.f32.partialorder %v1578_v42, 0.5  ;;  %vm2027_vm11 = vcmp.gt.f32.partialorder %v1456_v23, 0.5  ;;  %v2759_v42 = vsel %vm1991_vm3, %v4692_v1, -inf }
 0x184   : > { %v2826_v5 = vsel %vm2058_vm9, %v4785_v22, -inf  ;;  %v2795_v29 = vsel %vm2027_vm11, %v4903_v31, -inf  ;;  %1652 = vbcast.lane.b32.xlu1 %v4630_v44, 304  ;;  %1530 = vbcast.lane.b32.xlu0 %v4575_v26, 312  ;;  %v3163_v18 = vsel %vm2903_vm12, %v2759_v42, -inf  ;;  %vm2104_vm9 = vcmp.gt.f32.partialorder %v4963_v6, 0.5 }
 0x185   : > { %v5014_v56 = vsel %vm2903_vm12, %v2826_v5, -inf  ;;  %v3244_v51 = vsel %vm2903_vm12, %v2795_v29, -inf  ;;  %vm2103_vm11 = vcmp.gt.f32.partialorder %v4965_v8, 0.5 }
 0x186   : > { %v3317_v41 = vmax.f32 %v4887_v17, %v5014_v56  ;;  %v5022_v46 = vmax.f32 %v3243_v20, %v3244_v51  ;;  %v5024_v50 = vpop.permute.xlu1 %1817  ;;  %v1700_v32 = vpop.permute.xlu0 %1699  ;;  %v2871_v6 = vsel %vm2103_vm11, %v4692_v1, -inf }
 0x187   : > { %vm2089_vm15 = vcmp.gt.f32.partialorder %v1700_v32, 0.5 }
 0x188   : > { %v2857_v7 = vsel %vm2089_vm15, %v4708_v13, -inf  ;;  %1030 = vbcast.lane.b32.xlu1 %v4537_v35, 320  ;;  %1774 = vbcast.lane.b32.xlu0 %v4637_v49, 296 }
 0x189   : > { %v3388_v27 = vsel %vm2903_vm12, %v2857_v7, -inf }
 0x18a   : > { %v5033_v28 = vmax.f32 %v3387_v12, %v3388_v27  ;;  %v893_v30 = vpop.permute.xlu1 %892  ;;  %v5035_v15 = vpop.permute.xlu0 %1821 }
 0x18b   : > { %vm1884_vm4 = vcmp.gt.f32.partialorder %v893_v30, 0.5 }
 0x18c   : > { %v2652_v20 = vsel %vm1884_vm4, %v5027_v9, -inf  ;;  %1274 = vbcast.lane.b32.xlu1 %v4612_v25, 304  ;;  %1152 = vbcast.lane.b32.xlu0 %v4582_v38, 312 }
 0x18d   : > { %v5043_v39 = vsel %vm2903_vm12, %v2652_v20, -inf  ;;  %v3165_v20 = vmax.f32 %v3163_v18, %v3164_v40 }
 0x18e   : > { %v2914_v23 = vmax.f32 %v4925_v0, %v5043_v39  ;;  %v1078_v61 = vpop.permute.xlu1 %1077  ;;  %v956_v5 = vpop.permute.xlu0 %955 }
 0x18f   : > { %vm1931_vm7 = vcmp.gt.f32.partialorder %v1078_v61, 0.5  ;;  %vm1900_vm8 = vcmp.gt.f32.partialorder %v956_v5, 0.5 }
 0x190   : > { %v2699_v21 = vsel %vm1931_vm7, %v4903_v31, -inf  ;;  %v2668_v29 = vsel %vm1900_vm8, %v5027_v9, -inf  ;;  %1471 = vbcast.lane.b32.xlu1 %v4552_v58, 320  ;;  %1408 = vbcast.lane.b32.xlu0 %v4545_v48, 320 }
 0x191   : > { %v3022_v51 = vsel %vm2903_vm12, %v2699_v21, -inf  ;;  %v5057_v32 = vsel %vm2903_vm12, %v2668_v29, -inf }
 0x192   : > { %v5062_v12 = vmax.f32 %v3021_v57, %v3022_v51  ;;  %v2951_v7 = vmax.f32 %v4920_v52, %v5057_v32  ;;  %v1322_v27 = vpop.permute.xlu1 %1321  ;;  %v1200_v30 = vpop.permute.xlu0 %1199  ;;  %v2872_v57 = vsel %vm2104_vm9, %v4695_v3, -inf  ;;  %v3422_v51 = vsel %vm2903_vm12, %v2871_v6, -inf }
 0x193   : > { %vm1993_vm15 = vcmp.gt.f32.partialorder %v1322_v27, 0.5  ;;  %vm1962_vm0 = vcmp.gt.f32.partialorder %v1200_v30, 0.5  ;;  %v3423_v18 = vsel %vm2903_vm12, %v2872_v57, -inf }
 0x194   : > { %v2761_v36 = vsel %vm1993_vm15, %v4708_v13, -inf  ;;  %v2730_v42 = vsel %vm1962_vm0, %v4785_v22, -inf  ;;  %1715 = vbcast.lane.b32.xlu1 %v4632_v45, 304  ;;  %1593 = vbcast.lane.b32.xlu0 %v4600_v2, 312  ;;  %v3424_v57 = vmax.f32 %v3422_v51, %v3423_v18  ;;  %vm2120_vm15 = vcmp.gt.f32.partialorder %v5035_v15, 0.5 }
 0x195   : > { %v3166_v60 = vsel %vm2903_vm12, %v2761_v36, -inf  ;;  %v5074_v37 = vsel %vm2903_vm12, %v2730_v42, -inf }
 0x196   : > { %v5078_v8 = vmax.f32 %v3165_v20, %v3166_v60  ;;  %v3095_v61 = vmax.f32 %v4938_v43, %v5074_v37  ;;  %v1641_v5 = vpop.permute.xlu1 %1640  ;;  %v1519_v21 = vpop.permute.xlu0 %1518 }
 0x197   : > { %vm2074_vm3 = vcmp.gt.f32.partialorder %v1641_v5, 0.5  ;;  %vm2043_vm4 = vcmp.gt.f32.partialorder %v1519_v21, 0.5 }
 0x198   : > { %v2842_v29 = vsel %vm2074_vm3, %v4785_v22, -inf  ;;  %v2811_v40 = vsel %vm2043_vm4, %v4903_v31, -inf  ;;  %908 = vbcast.lane.b32.xlu1 %v4520_v11, 328  ;;  %1837 = vbcast.lane.b32.xlu0 %v4647_v54, 296  ;;  %vm2119_vm4 = vcmp.gt.f32.partialorder %v5024_v50, 0.5  ;;  %v5146_v50 = vld [vmem:[%s6595_s1 + $0x18] sm:$0xff]  }
 0x199   : > { %v5089_v27 = vsel %vm2903_vm12, %v2842_v29, -inf  ;;  %v3281_v30 = vsel %vm2903_vm12, %v2811_v40, -inf }
 0x19a   : > { %v3354_v20 = vmax.f32 %v4959_v19, %v5089_v27  ;;  %v5097_v36 = vmax.f32 %v3280_v4, %v3281_v30  ;;  %v1019_v42 = vpop.permute.xlu1 %1018  ;;  %v1763_v60 = vpop.permute.xlu0 %1762 }
 0x19b   : > { %vm1916_vm7 = vcmp.gt.f32.partialorder %v1019_v42, 0.5  ;;  %vm2105_vm8 = vcmp.gt.f32.partialorder %v1763_v60, 0.5 }
 0x19c   : > { %v2684_v6 = vsel %vm1916_vm7, %v5027_v9, -inf  ;;  %v2873_v5 = vsel %vm2105_vm8, %v4708_v13, -inf  ;;  %1093 = vbcast.lane.b32.xlu1 %v4565_v10, 320  ;;  %971 = vbcast.lane.b32.xlu0 %v4529_v24, 328 }
 0x19d   : > { %v5104_v21 = vsel %vm2903_vm12, %v2684_v6, -inf  ;;  %v3425_v16 = vsel %vm2903_vm12, %v2873_v5, -inf }
 0x19e   : > { %v5109_v4 = vmax.f32 %v3424_v57, %v3425_v16  ;;  %v1263_v29 = vpop.permute.xlu1 %1262  ;;  %v1141_v40 = vpop.permute.xlu0 %1140  ;;  %v6606_v19 = vmax.f32 %v4988_v63, %v5104_v21 }
 0x19f   : > { %vm1978_vm9 = vcmp.gt.f32.partialorder %v1263_v29, 0.5  ;;  %vm1947_vm11 = vcmp.gt.f32.partialorder %v1141_v40, 0.5 }
 0x1a0   : > { %v2746_v18 = vsel %vm1978_vm9, %v4785_v22, -inf  ;;  %v2715_v51 = vsel %vm1947_vm11, %v4903_v31, -inf  ;;  %1337 = vbcast.lane.b32.xlu1 %v4622_v33, 304  ;;  %1215 = vbcast.lane.b32.xlu0 %v4608_v14, 312 }
 0x1a1   : > { %v5116_v30 = vsel %vm2903_vm12, %v2746_v18, -inf  ;;  %v3059_v42 = vsel %vm2903_vm12, %v2715_v51, -inf }
 0x1a2   : > { %v5124_v57 = vmax.f32 %v3058_v62, %v3059_v42  ;;  %v1460_v6 = vpop.permute.xlu1 %1459  ;;  %v1397_v5 = vpop.permute.xlu0 %1396  ;;  %v2888_v62 = vsel %vm2120_vm15, %v4695_v3, -inf  ;;  %v5149_v42 = vunpack.c.l.bf16 %v5146_v50  ;;  %v2887_v3 = vsel %vm2119_vm4, %v4692_v1, -inf }
 0x1a3   : > { %vm2028_vm0 = vcmp.gt.f32.partialorder %v1460_v6, 0.5  ;;  %vm2012_vm3 = vcmp.gt.f32.partialorder %v1397_v5, 0.5  ;;  %v3459_v60 = vsel %vm2903_vm12, %v2887_v3, -inf  ;;  %v6607_v63 = vmax.f32 %v5005_v34, %v5116_v30 }
 0x1a4   : > { %v2796_v16 = vsel %vm2028_vm0, %v5027_v9, -inf  ;;  %v2780_v29 = vsel %vm2012_vm3, %v5027_v9, -inf  ;;  %1656 = vbcast.lane.b32.xlu1 %v4630_v44, 312  ;;  %1534 = vbcast.lane.b32.xlu0 %v4575_v26, 320 }
 0x1a5   : > { %v5133_v47 = vsel %vm2903_vm12, %v2796_v16, -inf  ;;  %v5136_v53 = vsel %vm2903_vm12, %v2780_v29, -inf  ;;  %v3460_v16 = vsel %vm2903_vm12, %v2888_v62, -inf }
 0x1a6   : > { %v1704_v18 = vpop.permute.xlu1 %1703  ;;  %v1582_v51 = vpop.permute.xlu0 %1581  ;;  %v3461_v62 = vmax.f32 %v3459_v60, %v3460_v16  ;;  %v6608_v34 = vmax.f32 %v5022_v46, %v5133_v47 }
 0x1a7   : > { %vm2090_vm7 = vcmp.gt.f32.partialorder %v1704_v18, 0.5  ;;  %vm2059_vm8 = vcmp.gt.f32.partialorder %v1582_v51, 0.5 }
 0x1a8   : > { %v2858_v6 = vsel %vm2090_vm7, %v4785_v22, -inf  ;;  %v2827_v5 = vsel %vm2059_vm8, %v4903_v31, -inf  ;;  %1034 = vbcast.lane.b32.xlu1 %v4537_v35, 328  ;;  %1778 = vbcast.lane.b32.xlu0 %v4637_v49, 304 }
 0x1a9   : > { %v5158_v29 = vsel %vm2903_vm12, %v2858_v6, -inf  ;;  %v3318_v18 = vsel %vm2903_vm12, %v2827_v5, -inf }
 0x1aa   : > { %v3391_v51 = vmax.f32 %v5033_v28, %v5158_v29  ;;  %v5166_v1 = vmax.f32 %v3317_v41, %v3318_v18  ;;  %v897_v40 = vpop.permute.xlu1 %896  ;;  %v1826_v15 = vpop.permute.xlu0 %1825 }
 0x1ab   : > { %vm1885_vm9 = vcmp.gt.f32.partialorder %v897_v40, 0.5  ;;  %vm2121_vm11 = vcmp.gt.f32.partialorder %v1826_v15, 0.5 }
 0x1ac   : > { %v2653_v6 = vsel %vm1885_vm9, %v5149_v42, -inf  ;;  %v2889_v55 = vsel %vm2121_vm11, %v4708_v13, -inf  ;;  %1278 = vbcast.lane.b32.xlu1 %v4612_v25, 312  ;;  %1156 = vbcast.lane.b32.xlu0 %v4582_v38, 320 }
 0x1ad   : > { %v2915_v5 = vsel %vm2903_vm12, %v2653_v6, -inf  ;;  %v3462_v17 = vsel %vm2903_vm12, %v2889_v55, -inf }
 0x1ae   : > { %v5178_v56 = vmax.f32 %v2914_v23, %v2915_v5  ;;  %v5180_v41 = vmax.f32 %v3461_v62, %v3462_v17  ;;  %v1082_v60 = vpop.permute.xlu1 %1081  ;;  %v960_v15 = vpop.permute.xlu0 %959 }
 0x1af   : > { %vm1932_vm15 = vcmp.gt.f32.partialorder %v1082_v60, 0.5  ;;  %vm1901_vm0 = vcmp.gt.f32.partialorder %v960_v15, 0.5 }
 0x1b0   : > { %v2700_v13 = vsel %vm1932_vm15, %v5027_v9, -inf  ;;  %v2669_v40 = vsel %vm1901_vm0, %v5149_v42, -inf  ;;  %1475 = vbcast.lane.b32.xlu1 %v4552_v58, 328  ;;  %v4086_v3 = vpop.f32.mrb[0].mxu0  ;;  %1412 = vbcast.lane.b32.xlu0 %v4545_v48, 328 }
 0x1b1   : > { %v5187_v55 = vsel %vm2903_vm12, %v2700_v13, -inf  ;;  %v2952_v0 = vsel %vm2903_vm12, %v2669_v40, -inf  ;;  %v860_v39 = vpop.f32.mrb[1].mxu0  ;;  %v870_v5 = vmul.f32 0.0625, %v4086_v3 }
 0x1b2   : > { %v3025_v23 = vmax.f32 %v5062_v12, %v5187_v55  ;;  %v5195_v16 = vmax.f32 %v2951_v7, %v2952_v0  ;;  %v869_v18 = vmul.f32 0.0625, %v860_v39  ;;  %v1326_v62 = vpop.permute.xlu1 %1325  ;;  %v1204_v6 = vpop.permute.xlu0 %1203 }
 0x1b3   : > { %vm1994_vm3 = vcmp.gt.f32.partialorder %v1326_v62, 0.5  ;;  %vm1963_vm4 = vcmp.gt.f32.partialorder %v1204_v6, 0.5 }
 0x1b4   : > { %v2762_v17 = vsel %vm1994_vm3, %v4785_v22, -inf  ;;  %v2731_v60 = vsel %vm1963_vm4, %v4903_v31, -inf  ;;  %1719 = vbcast.lane.b32.xlu1 %v4632_v45, 312  ;;  %4106 = vmatprep.mubr.msk.f32.mxu1 %vm2903_vm12, %v869_v18 }
 0x1b5   : > { %v5202_v15 = vsel %vm2903_vm12, %v2762_v17, -inf  ;;  %v3096_v52 = vsel %vm2903_vm12, %v2731_v60, -inf  ;;  %1597 = vbcast.lane.b32.xlu0 %v4600_v2, 320  ;;  %4107 = vmatmul.mubr.msk.f32.vlgmr.msra.gmra.mrb[0].mxu1 %vm2903_vm12, %v870_v5 }
 0x1b6   : > { %v3169_v32 = vmax.f32 %v5078_v8, %v5202_v15  ;;  %v5212_v7 = vmax.f32 %v3095_v61, %v3096_v52  ;;  %v1645_v13 = vpop.permute.xlu1 %1644  ;;  %v1523_v40 = vpop.permute.xlu0 %1522 }
 0x1b7   : > { %vm2075_vm7 = vcmp.gt.f32.partialorder %v1645_v13, 0.5  ;;  %vm2044_vm8 = vcmp.gt.f32.partialorder %v1523_v40, 0.5 }
 0x1b8   : > { %v2843_v3 = vsel %vm2075_vm7, %v4903_v31, -inf  ;;  %v2812_v0 = vsel %vm2044_vm8, %v5027_v9, -inf  ;;  %912 = vbcast.lane.b32.xlu1 %v4520_v11, 336 }
 0x1b9   : > { %v3355_v39 = vsel %vm2903_vm12, %v2843_v3, -inf  ;;  %v5219_v18 = vsel %vm2903_vm12, %v2812_v0, -inf  ;;  %1841 = vbcast.lane.b32.xlu0 %v4647_v54, 304 }
 0x1ba   : > { %v5225_v43 = vmax.f32 %v3354_v20, %v3355_v39  ;;  %v3284_v37 = vmax.f32 %v5097_v36, %v5219_v18  ;;  %v1023_v61 = vpop.permute.xlu1 %1022  ;;  %v1767_v62 = vpop.permute.xlu0 %1766 }
 0x1bb   : > { %vm1917_vm9 = vcmp.gt.f32.partialorder %v1023_v61, 0.5  ;;  %vm2106_vm11 = vcmp.gt.f32.partialorder %v1767_v62, 0.5 }
 0x1bc   : > { %v2685_v6 = vsel %vm1917_vm9, %v5149_v42, -inf  ;;  %v2874_v5 = vsel %vm2106_vm11, %v4785_v22, -inf  ;;  %1097 = vbcast.lane.b32.xlu1 %v4565_v10, 328 }
 0x1bd   : > { %v2989_v17 = vsel %vm2903_vm12, %v2685_v6, -inf  ;;  %v5234_v60 = vsel %vm2903_vm12, %v2874_v5, -inf  ;;  %975 = vbcast.lane.b32.xlu0 %v4529_v24, 336 }
 0x1be   : > { %v5240_v27 = vmax.f32 %v6606_v19, %v2989_v17  ;;  %v3428_v20 = vmax.f32 %v5109_v4, %v5234_v60  ;;  %v1267_v52 = vpop.permute.xlu1 %1266  ;;  %v1145_v13 = vpop.permute.xlu0 %1144 }
 0x1bf   : > { %vm1979_vm15 = vcmp.gt.f32.partialorder %v1267_v52, 0.5  ;;  %vm1948_vm0 = vcmp.gt.f32.partialorder %v1145_v13, 0.5  ;;  %v6609_v13 = vmax.f32 %v5003_v59, %v5136_v53 }
 0x1c0   : > { %v2747_v40 = vsel %vm1979_vm15, %v4903_v31, -inf  ;;  %v2716_v3 = vsel %vm1948_vm0, %v5027_v9, -inf  ;;  %1341 = vbcast.lane.b32.xlu1 %v4622_v33, 312 }
 0x1c1   : > { %v3133_v0 = vsel %vm2903_vm12, %v2747_v40, -inf  ;;  %v5249_v39 = vsel %vm2903_vm12, %v2716_v3, -inf  ;;  %1219 = vbcast.lane.b32.xlu0 %v4608_v14, 320 }
 0x1c2   : > { %v5255_v21 = vmax.f32 %v6607_v63, %v3133_v0  ;;  %v3062_v61 = vmax.f32 %v5124_v57, %v5249_v39  ;;  %v1464_v62 = vpop.permute.xlu1 %1463  ;;  %v1401_v6 = vpop.permute.xlu0 %1400  ;;  %v5276_v63 = vunpack.c.h.bf16 %v5146_v50 }
 0x1c3   : > { %vm2029_vm3 = vcmp.gt.f32.partialorder %v1464_v62, 0.5  ;;  %vm2013_vm4 = vcmp.gt.f32.partialorder %v1401_v6, 0.5 }
 0x1c4   : > { %v2797_v5 = vsel %vm2029_vm3, %v5149_v42, -inf  ;;  %v2781_v17 = vsel %vm2013_vm4, %v5149_v42, -inf  ;;  %1660 = vbcast.lane.b32.xlu1 %v4630_v44, 320 }
 0x1c5   : > { %v3248_v19 = vsel %vm2903_vm12, %v2797_v5, -inf  ;;  %v3211_v52 = vsel %vm2903_vm12, %v2781_v17, -inf  ;;  %1538 = vbcast.lane.b32.xlu0 %v4575_v26, 328 }
 0x1c6   : > { %v5268_v30 = vmax.f32 %v6608_v34, %v3248_v19  ;;  %v5273_v40 = vmax.f32 %v6609_v13, %v3211_v52  ;;  %v1708_v3 = vpop.permute.xlu1 %1707  ;;  %v1586_v0 = vpop.permute.xlu0 %1585 }
 0x1c7   : > { %vm2091_vm7 = vcmp.gt.f32.partialorder %v1708_v3, 0.5  ;;  %vm2060_vm8 = vcmp.gt.f32.partialorder %v1586_v0, 0.5 }
 0x1c8   : > { %v2859_v62 = vsel %vm2091_vm7, %v4903_v31, -inf  ;;  %v2828_v6 = vsel %vm2060_vm8, %v5027_v9, -inf  ;;  %1038 = vbcast.lane.b32.xlu1 %v4537_v35, 336 }
 0x1c9   : > { %v3392_v46 = vsel %vm2903_vm12, %v2859_v62, -inf  ;;  %v5283_v47 = vsel %vm2903_vm12, %v2828_v6, -inf  ;;  %1782 = vbcast.lane.b32.xlu0 %v4637_v49, 312 }
 0x1ca   : > { %v5289_v59 = vmax.f32 %v3391_v51, %v3392_v46  ;;  %v3321_v53 = vmax.f32 %v5166_v1, %v5283_v47  ;;  %v901_v50 = vpop.permute.xlu1 %900  ;;  %v1830_v5 = vpop.permute.xlu0 %1829 }
 0x1cb   : > { %vm1886_vm9 = vcmp.gt.f32.partialorder %v901_v50, 0.5  ;;  %vm2122_vm11 = vcmp.gt.f32.partialorder %v1830_v5, 0.5 }
 0x1cc   : > { %v2654_v17 = vsel %vm1886_vm9, %v5276_v63, -inf  ;;  %v2890_v19 = vsel %vm2122_vm11, %v4785_v22, -inf  ;;  %1282 = vbcast.lane.b32.xlu1 %v4612_v25, 320 }
 0x1cd   : > { %v5297_v52 = vsel %vm2903_vm12, %v2654_v17, -inf  ;;  %v5300_v28 = vsel %vm2903_vm12, %v2890_v19, -inf  ;;  %1160 = vbcast.lane.b32.xlu0 %v4582_v38, 328 }
 0x1ce   : > { %v2918_v29 = vmax.f32 %v5178_v56, %v5297_v52  ;;  %v3465_v51 = vmax.f32 %v5180_v41, %v5300_v28  ;;  %v1086_v34 = vpop.permute.xlu1 %1085  ;;  %v964_v13 = vpop.permute.xlu0 %963 }
 0x1cf   : > { %vm1933_vm15 = vcmp.gt.f32.partialorder %v1086_v34, 0.5  ;;  %vm1902_vm0 = vcmp.gt.f32.partialorder %v964_v13, 0.5 }
 0x1d0   : > { %v2701_v22 = vsel %vm1933_vm15, %v5149_v42, -inf  ;;  %v2670_v3 = vsel %vm1902_vm0, %v5276_v63, -inf  ;;  %1479 = vbcast.lane.b32.xlu1 %v4552_v58, 336 }
 0x1d1   : > { %v3026_v0 = vsel %vm2903_vm12, %v2701_v22, -inf  ;;  %v5312_v62 = vsel %vm2903_vm12, %v2670_v3, -inf  ;;  %1416 = vbcast.lane.b32.xlu0 %v4545_v48, 336 }
 0x1d2   : > { %v5318_v6 = vmax.f32 %v3025_v23, %v3026_v0  ;;  %v2955_v46 = vmax.f32 %v5195_v16, %v5312_v62  ;;  %v1330_v50 = vpop.permute.xlu1 %1329  ;;  %v1208_v5 = vpop.permute.xlu0 %1207 }
 0x1d3   : > { %vm1995_vm3 = vcmp.gt.f32.partialorder %v1330_v50, 0.5  ;;  %vm1964_vm4 = vcmp.gt.f32.partialorder %v1208_v5, 0.5 }
 0x1d4   : > { %v2763_v17 = vsel %vm1995_vm3, %v4903_v31, -inf  ;;  %v2732_v19 = vsel %vm1964_vm4, %v5027_v9, -inf  ;;  %1723 = vbcast.lane.b32.xlu1 %v4632_v45, 320 }
 0x1d5   : > { %v3170_v34 = vsel %vm2903_vm12, %v2763_v17, -inf  ;;  %v5327_v13 = vsel %vm2903_vm12, %v2732_v19, -inf  ;;  %1601 = vbcast.lane.b32.xlu0 %v4600_v2, 328 }
 0x1d6   : > { %v5333_v12 = vmax.f32 %v3169_v32, %v3170_v34  ;;  %v3099_v55 = vmax.f32 %v5212_v7, %v5327_v13  ;;  %v1649_v23 = vpop.permute.xlu1 %1648  ;;  %v1527_v22 = vpop.permute.xlu0 %1526 }
 0x1d7   : > { %vm2076_vm7 = vcmp.gt.f32.partialorder %v1649_v23, 0.5  ;;  %vm2045_vm8 = vcmp.gt.f32.partialorder %v1527_v22, 0.5 }
 0x1d8   : > { %v2844_v3 = vsel %vm2076_vm7, %v5027_v9, -inf  ;;  %v2813_v0 = vsel %vm2045_vm8, %v5149_v42, -inf  ;;  %916 = vbcast.lane.b32.xlu1 %v4520_v11, 344 }
 0x1d9   : > { %v5341_v50 = vsel %vm2903_vm12, %v2844_v3, -inf  ;;  %v3285_v8 = vsel %vm2903_vm12, %v2813_v0, -inf  ;;  %1845 = vbcast.lane.b32.xlu0 %v4647_v54, 312 }
 0x1da   : > { %v3358_v15 = vmax.f32 %v5225_v43, %v5341_v50  ;;  %v5350_v32 = vmax.f32 %v3284_v37, %v3285_v8  ;;  %v1027_v5 = vpop.permute.xlu1 %1026  ;;  %v1771_v17 = vpop.permute.xlu0 %1770 }
 0x1db   : > { %vm1918_vm9 = vcmp.gt.f32.partialorder %v1027_v5, 0.5  ;;  %vm2107_vm11 = vcmp.gt.f32.partialorder %v1771_v17, 0.5 }
 0x1dc   : > { %v2686_v19 = vsel %vm1918_vm9, %v5276_v63, -inf  ;;  %v2875_v34 = vsel %vm2107_vm11, %v4903_v31, -inf  ;;  %1101 = vbcast.lane.b32.xlu1 %v4565_v10, 336 }
 0x1dd   : > { %v5356_v23 = vsel %vm2903_vm12, %v2686_v19, -inf  ;;  %v3429_v22 = vsel %vm2903_vm12, %v2875_v34, -inf  ;;  %979 = vbcast.lane.b32.xlu0 %v4529_v24, 344 }
 0x1de   : > { %v5365_v18 = vmax.f32 %v3428_v20, %v3429_v22  ;;  %v1271_v37 = vpop.permute.xlu1 %1270  ;;  %v1149_v3 = vpop.permute.xlu0 %1148  ;;  %v6610_v43 = vmax.f32 %v5240_v27, %v5356_v23 }
 0x1df   : > { %vm1980_vm15 = vcmp.gt.f32.partialorder %v1271_v37, 0.5  ;;  %vm1949_vm0 = vcmp.gt.f32.partialorder %v1149_v3, 0.5 }
 0x1e0   : > { %v2748_v0 = vsel %vm1980_vm15, %v5027_v9, -inf  ;;  %v2717_v8 = vsel %vm1949_vm0, %v5149_v42, -inf  ;;  %1345 = vbcast.lane.b32.xlu1 %v4622_v33, 320 }
 0x1e1   : > { %v5371_v5 = vsel %vm2903_vm12, %v2748_v0, -inf  ;;  %v3063_v17 = vsel %vm2903_vm12, %v2717_v8, -inf  ;;  %1223 = vbcast.lane.b32.xlu0 %v4608_v14, 328  ;;  %v5399_v8 = vld [vmem:[%s6595_s1 + $0x20] sm:$0xff]  }
 0x1e2   : > { %v5380_v60 = vmax.f32 %v3062_v61, %v3063_v17  ;;  %v1468_v20 = vpop.permute.xlu1 %1467  ;;  %v1405_v19 = vpop.permute.xlu0 %1404  ;;  %v5402_v17 = vunpack.c.l.bf16 %v5399_v8  ;;  %v6611_v27 = vmax.f32 %v5255_v21, %v5371_v5 }
 0x1e3   : > { %vm2030_vm3 = vcmp.gt.f32.partialorder %v1468_v20, 0.5  ;;  %vm2014_vm4 = vcmp.gt.f32.partialorder %v1405_v19, 0.5 }
 0x1e4   : > { %v2798_v34 = vsel %vm2030_vm3, %v5276_v63, -inf  ;;  %v2782_v22 = vsel %vm2014_vm4, %v5276_v63, -inf  ;;  %1664 = vbcast.lane.b32.xlu1 %v4630_v44, 328 }
 0x1e5   : > { %v5386_v37 = vsel %vm2903_vm12, %v2798_v34, -inf  ;;  %v5389_v3 = vsel %vm2903_vm12, %v2782_v22, -inf  ;;  %1542 = vbcast.lane.b32.xlu0 %v4575_v26, 336 }
 0x1e6   : > { %v1712_v61 = vpop.permute.xlu1 %1711  ;;  %v1590_v0 = vpop.permute.xlu0 %1589  ;;  %v6612_v21 = vmax.f32 %v5268_v30, %v5386_v37 }
 0x1e7   : > { %vm2092_vm7 = vcmp.gt.f32.partialorder %v1712_v61, 0.5  ;;  %vm2061_vm8 = vcmp.gt.f32.partialorder %v1590_v0, 0.5 }
 0x1e8   : > { %v2860_v20 = vsel %vm2092_vm7, %v5027_v9, -inf  ;;  %v2829_v19 = vsel %vm2061_vm8, %v5149_v42, -inf  ;;  %1042 = vbcast.lane.b32.xlu1 %v4537_v35, 344 }
 0x1e9   : > { %v5408_v34 = vsel %vm2903_vm12, %v2860_v20, -inf  ;;  %v3322_v22 = vsel %vm2903_vm12, %v2829_v19, -inf  ;;  %1786 = vbcast.lane.b32.xlu0 %v4637_v49, 320 }
 0x1ea   : > { %v3395_v61 = vmax.f32 %v5289_v59, %v5408_v34  ;;  %v5417_v0 = vmax.f32 %v3321_v53, %v3322_v22  ;;  %v905_v39 = vpop.permute.xlu1 %904  ;;  %v1834_v57 = vpop.permute.xlu0 %1833 }
 0x1eb   : > { %vm1887_vm9 = vcmp.gt.f32.partialorder %v905_v39, 0.5  ;;  %vm2123_vm11 = vcmp.gt.f32.partialorder %v1834_v57, 0.5 }
 0x1ec   : > { %v2655_v4 = vsel %vm1887_vm9, %v5402_v17, -inf  ;;  %v2891_v20 = vsel %vm2123_vm11, %v4903_v31, -inf  ;;  %1286 = vbcast.lane.b32.xlu1 %v4612_v25, 328 }
 0x1ed   : > { %v2919_v19 = vsel %vm2903_vm12, %v2655_v4, -inf  ;;  %v3466_v36 = vsel %vm2903_vm12, %v2891_v20, -inf  ;;  %1164 = vbcast.lane.b32.xlu0 %v4582_v38, 336 }
 0x1ee   : > { %v5428_v1 = vmax.f32 %v2918_v29, %v2919_v19  ;;  %v5433_v47 = vmax.f32 %v3465_v51, %v3466_v36  ;;  %v1090_v53 = vpop.permute.xlu1 %1089  ;;  %v968_v31 = vpop.permute.xlu0 %967 }
 0x1ef   : > { %vm1934_vm15 = vcmp.gt.f32.partialorder %v1090_v53, 0.5  ;;  %vm1903_vm0 = vcmp.gt.f32.partialorder %v968_v31, 0.5 }
 0x1f0   : > { %v2702_v4 = vsel %vm1934_vm15, %v5276_v63, -inf  ;;  %v2671_v57 = vsel %vm1903_vm0, %v5402_v17, -inf  ;;  %1483 = vbcast.lane.b32.xlu1 %v4552_v58, 344 }
 0x1f1   : > { %v5439_v39 = vsel %vm2903_vm12, %v2702_v4, -inf  ;;  %v2956_v56 = vsel %vm2903_vm12, %v2671_v57, -inf  ;;  %1420 = vbcast.lane.b32.xlu0 %v4545_v48, 344 }
 0x1f2   : > { %v3029_v41 = vmax.f32 %v5318_v6, %v5439_v39  ;;  %v5448_v52 = vmax.f32 %v2955_v46, %v2956_v56  ;;  %v1334_v28 = vpop.permute.xlu1 %1333  ;;  %v1212_v29 = vpop.permute.xlu0 %1211 }
 0x1f3   : > { %vm1996_vm3 = vcmp.gt.f32.partialorder %v1334_v28, 0.5  ;;  %vm1965_vm4 = vcmp.gt.f32.partialorder %v1212_v29, 0.5 }
 0x1f4   : > { %v2764_v51 = vsel %vm1996_vm3, %v5027_v9, -inf  ;;  %v2733_v36 = vsel %vm1965_vm4, %v5149_v42, -inf  ;;  %1727 = vbcast.lane.b32.xlu1 %v4632_v45, 328 }
 0x1f5   : > { %v5454_v22 = vsel %vm2903_vm12, %v2764_v51, -inf  ;;  %v3100_v20 = vsel %vm2903_vm12, %v2733_v36, -inf  ;;  %1605 = vbcast.lane.b32.xlu0 %v4600_v2, 336 }
 0x1f6   : > { %v3173_v16 = vmax.f32 %v5333_v12, %v5454_v22  ;;  %v5463_v62 = vmax.f32 %v3099_v55, %v3100_v20  ;;  %v1653_v46 = vpop.permute.xlu1 %1652  ;;  %v1531_v19 = vpop.permute.xlu0 %1530 }
 0x1f7   : > { %vm2077_vm7 = vcmp.gt.f32.partialorder %v1653_v46, 0.5  ;;  %vm2046_vm8 = vcmp.gt.f32.partialorder %v1531_v19, 0.5 }
 0x1f8   : > { %v2845_v53 = vsel %vm2077_vm7, %v5149_v42, -inf  ;;  %v2814_v31 = vsel %vm2046_vm8, %v5276_v63, -inf  ;;  %920 = vbcast.lane.b32.xlu1 %v4520_v11, 352 }
 0x1f9   : > { %v3359_v4 = vsel %vm2903_vm12, %v2845_v53, -inf  ;;  %v5470_v57 = vsel %vm2903_vm12, %v2814_v31, -inf  ;;  %1849 = vbcast.lane.b32.xlu0 %v4647_v54, 320 }
 0x1fa   : > { %v5476_v7 = vmax.f32 %v3358_v15, %v3359_v4  ;;  %v3288_v13 = vmax.f32 %v5350_v32, %v5470_v57  ;;  %v1031_v55 = vpop.permute.xlu1 %1030  ;;  %v1775_v56 = vpop.permute.xlu0 %1774 }
 0x1fb   : > { %vm1919_vm9 = vcmp.gt.f32.partialorder %v1031_v55, 0.5  ;;  %vm2108_vm11 = vcmp.gt.f32.partialorder %v1775_v56, 0.5 }
 0x1fc   : > { %v2687_v28 = vsel %vm1919_vm9, %v5402_v17, -inf  ;;  %v2876_v29 = vsel %vm2108_vm11, %v5027_v9, -inf  ;;  %1105 = vbcast.lane.b32.xlu1 %v4565_v10, 344 }
 0x1fd   : > { %v2993_v51 = vsel %vm2903_vm12, %v2687_v28, -inf  ;;  %v5485_v36 = vsel %vm2903_vm12, %v2876_v29, -inf  ;;  %983 = vbcast.lane.b32.xlu0 %v4529_v24, 352 }
 0x1fe   : > { %v5491_v50 = vmax.f32 %v6610_v43, %v2993_v51  ;;  %v3432_v15 = vmax.f32 %v5365_v18, %v5485_v36  ;;  %v1275_v20 = vpop.permute.xlu1 %1274  ;;  %v1153_v46 = vpop.permute.xlu0 %1152 }
 0x1ff   : > { %vm1981_vm15 = vcmp.gt.f32.partialorder %v1275_v20, 0.5  ;;  %vm1950_vm0 = vcmp.gt.f32.partialorder %v1153_v46, 0.5  ;;  %v6613_v46 = vmax.f32 %v5273_v40, %v5389_v3 }
 0x200   : > { %v2749_v19 = vsel %vm1981_vm15, %v5149_v42, -inf  ;;  %v2718_v53 = vsel %vm1950_vm0, %v5276_v63, -inf  ;;  %1349 = vbcast.lane.b32.xlu1 %v4622_v33, 328 }
 0x201   : > { %v3137_v31 = vsel %vm2903_vm12, %v2749_v19, -inf  ;;  %v5500_v4 = vsel %vm2903_vm12, %v2718_v53, -inf  ;;  %1227 = vbcast.lane.b32.xlu0 %v4608_v14, 336 }
 0x202   : > { %v5506_v23 = vmax.f32 %v6611_v27, %v3137_v31  ;;  %v3066_v55 = vmax.f32 %v5380_v60, %v5500_v4  ;;  %v1472_v56 = vpop.permute.xlu1 %1471  ;;  %v1409_v28 = vpop.permute.xlu0 %1408  ;;  %v5527_v27 = vunpack.c.h.bf16 %v5399_v8 }
 0x203   : > { %vm2031_vm3 = vcmp.gt.f32.partialorder %v1472_v56, 0.5  ;;  %vm2015_vm4 = vcmp.gt.f32.partialorder %v1409_v28, 0.5 }
 0x204   : > { %v2799_v29 = vsel %vm2031_vm3, %v5402_v17, -inf  ;;  %v2783_v51 = vsel %vm2015_vm4, %v5402_v17, -inf  ;;  %1668 = vbcast.lane.b32.xlu1 %v4630_v44, 336 }
 0x205   : > { %v3252_v43 = vsel %vm2903_vm12, %v2799_v29, -inf  ;;  %v3215_v20 = vsel %vm2903_vm12, %v2783_v51, -inf  ;;  %1546 = vbcast.lane.b32.xlu0 %v4575_v26, 344 }
 0x206   : > { %v5519_v5 = vmax.f32 %v6612_v21, %v3252_v43  ;;  %v5524_v19 = vmax.f32 %v6613_v46, %v3215_v20  ;;  %v1716_v53 = vpop.permute.xlu1 %1715  ;;  %v1594_v31 = vpop.permute.xlu0 %1593 }
 0x207   : > { %vm2093_vm7 = vcmp.gt.f32.partialorder %v1716_v53, 0.5  ;;  %vm2062_vm8 = vcmp.gt.f32.partialorder %v1594_v31, 0.5 }
 0x208   : > { %v2861_v56 = vsel %vm2093_vm7, %v5149_v42, -inf  ;;  %v2830_v28 = vsel %vm2062_vm8, %v5276_v63, -inf  ;;  %1046 = vbcast.lane.b32.xlu1 %v4537_v35, 352 }
 0x209   : > { %v3396_v30 = vsel %vm2903_vm12, %v2861_v56, -inf  ;;  %v5534_v37 = vsel %vm2903_vm12, %v2830_v28, -inf  ;;  %1790 = vbcast.lane.b32.xlu0 %v4637_v49, 328 }
 0x20a   : > { %v5540_v40 = vmax.f32 %v3395_v61, %v3396_v30  ;;  %v3325_v3 = vmax.f32 %v5417_v0, %v5534_v37  ;;  %v909_v8 = vpop.permute.xlu1 %908  ;;  %v1838_v29 = vpop.permute.xlu0 %1837 }
 0x20b   : > { %vm1888_vm9 = vcmp.gt.f32.partialorder %v909_v8, 0.5  ;;  %vm2124_vm11 = vcmp.gt.f32.partialorder %v1838_v29, 0.5 }
 0x20c   : > { %v2656_v51 = vsel %vm1888_vm9, %v5527_v27, -inf  ;;  %v2892_v43 = vsel %vm2124_vm11, %v5027_v9, -inf  ;;  %1290 = vbcast.lane.b32.xlu1 %v4612_v25, 336 }
 0x20d   : > { %v5548_v20 = vsel %vm2903_vm12, %v2656_v51, -inf  ;;  %v5551_v59 = vsel %vm2903_vm12, %v2892_v43, -inf  ;;  %1168 = vbcast.lane.b32.xlu0 %v4582_v38, 344 }
 0x20e   : > { %v2922_v34 = vmax.f32 %v5428_v1, %v5548_v20  ;;  %v3469_v61 = vmax.f32 %v5433_v47, %v5551_v59  ;;  %v1094_v21 = vpop.permute.xlu1 %1093  ;;  %v972_v46 = vpop.permute.xlu0 %971 }
 0x20f   : > { %vm1935_vm15 = vcmp.gt.f32.partialorder %v1094_v21, 0.5  ;;  %vm1904_vm0 = vcmp.gt.f32.partialorder %v972_v46, 0.5 }
 0x210   : > { %v2703_v9 = vsel %vm1935_vm15, %v5402_v17, -inf  ;;  %v2672_v53 = vsel %vm1904_vm0, %v5527_v27, -inf  ;;  %1487 = vbcast.lane.b32.xlu1 %v4552_v58, 352 }
 0x211   : > { %v3030_v31 = vsel %vm2903_vm12, %v2703_v9, -inf  ;;  %v5563_v56 = vsel %vm2903_vm12, %v2672_v53, -inf  ;;  %1424 = vbcast.lane.b32.xlu0 %v4545_v48, 352 }
 0x212   : > { %v5569_v28 = vmax.f32 %v3029_v41, %v3030_v31  ;;  %v2959_v30 = vmax.f32 %v5448_v52, %v5563_v56  ;;  %v1338_v8 = vpop.permute.xlu1 %1337  ;;  %v1216_v29 = vpop.permute.xlu0 %1215 }
 0x213   : > { %vm1997_vm3 = vcmp.gt.f32.partialorder %v1338_v8, 0.5  ;;  %vm1966_vm4 = vcmp.gt.f32.partialorder %v1216_v29, 0.5 }
 0x214   : > { %v2765_v51 = vsel %vm1997_vm3, %v5149_v42, -inf  ;;  %v2734_v43 = vsel %vm1966_vm4, %v5276_v63, -inf  ;;  %1731 = vbcast.lane.b32.xlu1 %v4632_v45, 336 }
 0x215   : > { %v3174_v21 = vsel %vm2903_vm12, %v2765_v51, -inf  ;;  %v5578_v46 = vsel %vm2903_vm12, %v2734_v43, -inf  ;;  %1609 = vbcast.lane.b32.xlu0 %v4600_v2, 344 }
 0x216   : > { %v5584_v6 = vmax.f32 %v3173_v16, %v3174_v21  ;;  %v3103_v39 = vmax.f32 %v5463_v62, %v5578_v46  ;;  %v1657_v41 = vpop.permute.xlu1 %1656  ;;  %v1535_v9 = vpop.permute.xlu0 %1534 }
 0x217   : > { %vm2078_vm7 = vcmp.gt.f32.partialorder %v1657_v41, 0.5  ;;  %vm2047_vm8 = vcmp.gt.f32.partialorder %v1535_v9, 0.5 }
 0x218   : > { %v2846_v53 = vsel %vm2078_vm7, %v5276_v63, -inf  ;;  %v2815_v31 = vsel %vm2047_vm8, %v5402_v17, -inf  ;;  %924 = vbcast.lane.b32.xlu1 %v4520_v11, 360 }
 0x219   : > { %v5592_v8 = vsel %vm2903_vm12, %v2846_v53, -inf  ;;  %v3289_v12 = vsel %vm2903_vm12, %v2815_v31, -inf  ;;  %1853 = vbcast.lane.b32.xlu0 %v4647_v54, 328 }
 0x21a   : > { %v3362_v22 = vmax.f32 %v5476_v7, %v5592_v8  ;;  %v5601_v16 = vmax.f32 %v3288_v13, %v3289_v12  ;;  %v1035_v29 = vpop.permute.xlu1 %1034  ;;  %v1779_v51 = vpop.permute.xlu0 %1778 }
 0x21b   : > { %vm1920_vm9 = vcmp.gt.f32.partialorder %v1035_v29, 0.5  ;;  %vm2109_vm11 = vcmp.gt.f32.partialorder %v1779_v51, 0.5 }
 0x21c   : > { %v2688_v43 = vsel %vm1920_vm9, %v5527_v27, -inf  ;;  %v2877_v21 = vsel %vm2109_vm11, %v5149_v42, -inf  ;;  %1109 = vbcast.lane.b32.xlu1 %v4565_v10, 352 }
 0x21d   : > { %v5607_v41 = vsel %vm2903_vm12, %v2688_v43, -inf  ;;  %v3433_v9 = vsel %vm2903_vm12, %v2877_v21, -inf  ;;  %987 = vbcast.lane.b32.xlu0 %v4529_v24, 360 }
 0x21e   : > { %v5616_v57 = vmax.f32 %v3432_v15, %v3433_v9  ;;  %v1279_v13 = vpop.permute.xlu1 %1278  ;;  %v1157_v53 = vpop.permute.xlu0 %1156  ;;  %v6614_v8 = vmax.f32 %v5491_v50, %v5607_v41 }
 0x21f   : > { %vm1982_vm15 = vcmp.gt.f32.partialorder %v1279_v13, 0.5  ;;  %vm1951_vm0 = vcmp.gt.f32.partialorder %v1157_v53, 0.5 }
 0x220   : > { %v2750_v31 = vsel %vm1982_vm15, %v5276_v63, -inf  ;;  %v2719_v12 = vsel %vm1951_vm0, %v5402_v17, -inf  ;;  %1353 = vbcast.lane.b32.xlu1 %v4622_v33, 336 }
 0x221   : > { %v5622_v29 = vsel %vm2903_vm12, %v2750_v31, -inf  ;;  %v3067_v51 = vsel %vm2903_vm12, %v2719_v12, -inf  ;;  %1231 = vbcast.lane.b32.xlu0 %v4608_v14, 344  ;;  %v5650_v12 = vld [vmem:[%s6595_s1 + $0x28] sm:$0xff]  }
 0x222   : > { %v5631_v36 = vmax.f32 %v3066_v55, %v3067_v51  ;;  %v1476_v15 = vpop.permute.xlu1 %1475  ;;  %v1413_v43 = vpop.permute.xlu0 %1412  ;;  %v5653_v51 = vunpack.c.l.bf16 %v5650_v12  ;;  %v6615_v41 = vmax.f32 %v5506_v23, %v5622_v29 }
 0x223   : > { %vm2032_vm3 = vcmp.gt.f32.partialorder %v1476_v15, 0.5  ;;  %vm2016_vm4 = vcmp.gt.f32.partialorder %v1413_v43, 0.5 }
 0x224   : > { %v2800_v21 = vsel %vm2032_vm3, %v5527_v27, -inf  ;;  %v2784_v9 = vsel %vm2016_vm4, %v5527_v27, -inf  ;;  %1672 = vbcast.lane.b32.xlu1 %v4630_v44, 344 }
 0x225   : > { %v5637_v13 = vsel %vm2903_vm12, %v2800_v21, -inf  ;;  %v5640_v53 = vsel %vm2903_vm12, %v2784_v9, -inf  ;;  %1550 = vbcast.lane.b32.xlu0 %v4575_v26, 352 }
 0x226   : > { %v1720_v55 = vpop.permute.xlu1 %1719  ;;  %v6616_v29 = vmax.f32 %v5519_v5, %v5637_v13 }
 0x227   : > { %vm2094_vm7 = vcmp.gt.f32.partialorder %v1720_v55, 0.5  ;;  %v1598_v31 = vpop.permute.xlu0 %1597 }
 0x228   : > { %v2862_v15 = vsel %vm2094_vm7, %v5276_v63, -inf  ;;  %vm2063_vm8 = vcmp.gt.f32.partialorder %v1598_v31, 0.5  ;;  %1050 = vbcast.lane.b32.xlu1 %v4537_v35, 360 }
 0x229   : > { %v5658_v43 = vsel %vm2903_vm12, %v2862_v15, -inf  ;;  %v2831_v21 = vsel %vm2063_vm8, %v5402_v17, -inf  ;;  %1794 = vbcast.lane.b32.xlu0 %v4637_v49, 336 }
 0x22a   : > { %v3399_v9 = vmax.f32 %v5540_v40, %v5658_v43  ;;  %v3326_v55 = vsel %vm2903_vm12, %v2831_v21, -inf  ;;  %v913_v4 = vpop.permute.xlu1 %912 }
 0x22b   : > { %v5668_v60 = vmax.f32 %v3325_v3, %v3326_v55  ;;  %vm1889_vm9 = vcmp.gt.f32.partialorder %v913_v4, 0.5  ;;  %v1842_v31 = vpop.permute.xlu0 %1841 }
 0x22c   : > { %v2657_v15 = vsel %vm1889_vm9, %v5653_v51, -inf  ;;  %vm2125_vm11 = vcmp.gt.f32.partialorder %v1842_v31, 0.5  ;;  %1294 = vbcast.lane.b32.xlu1 %v4612_v25, 344 }
 0x22d   : > { %v2923_v18 = vsel %vm2903_vm12, %v2657_v15, -inf  ;;  %v2893_v32 = vsel %vm2125_vm11, %v5149_v42, -inf  ;;  %1172 = vbcast.lane.b32.xlu0 %v4582_v38, 352 }
 0x22e   : > { %v5678_v21 = vmax.f32 %v2922_v34, %v2923_v18  ;;  %v3470_v0 = vsel %vm2903_vm12, %v2893_v32, -inf  ;;  %v1098_v37 = vpop.permute.xlu1 %1097 }
 0x22f   : > { %v5684_v3 = vmax.f32 %v3469_v61, %v3470_v0  ;;  %vm1936_vm15 = vcmp.gt.f32.partialorder %v1098_v37, 0.5  ;;  %v976_v4 = vpop.permute.xlu0 %975 }
 0x230   : > { %v2704_v55 = vsel %vm1936_vm15, %v5527_v27, -inf  ;;  %vm1905_vm0 = vcmp.gt.f32.partialorder %v976_v4, 0.5  ;;  %1491 = vbcast.lane.b32.xlu1 %v4552_v58, 360 }
 0x231   : > { %v5689_v42 = vsel %vm2903_vm12, %v2704_v55, -inf  ;;  %v2673_v1 = vsel %vm1905_vm0, %v5653_v51, -inf  ;;  %1428 = vbcast.lane.b32.xlu0 %v4545_v48, 360 }
 0x232   : > { %v3033_v20 = vmax.f32 %v5569_v28, %v5689_v42  ;;  %v2960_v47 = vsel %vm2903_vm12, %v2673_v1, -inf  ;;  %v1342_v59 = vpop.permute.xlu1 %1341 }
 0x233   : > { %v5699_v34 = vmax.f32 %v2959_v30, %v2960_v47  ;;  %vm1998_vm3 = vcmp.gt.f32.partialorder %v1342_v59, 0.5  ;;  %v1220_v61 = vpop.permute.xlu0 %1219 }
 0x234   : > { %v2766_v32 = vsel %vm1998_vm3, %v5276_v63, -inf  ;;  %vm1967_vm4 = vcmp.gt.f32.partialorder %v1220_v61, 0.5  ;;  %1735 = vbcast.lane.b32.xlu1 %v4632_v45, 344 }
 0x235   : > { %v5704_v18 = vsel %vm2903_vm12, %v2766_v32, -inf  ;;  %v2735_v31 = vsel %vm1967_vm4, %v5402_v17, -inf  ;;  %1613 = vbcast.lane.b32.xlu0 %v4600_v2, 352 }
 0x236   : > { %v3177_v15 = vmax.f32 %v5584_v6, %v5704_v18  ;;  %v3104_v52 = vsel %vm2903_vm12, %v2735_v31, -inf  ;;  %v1661_v56 = vpop.permute.xlu1 %1660 }
 0x237   : > { %v5714_v30 = vmax.f32 %v3103_v39, %v3104_v52  ;;  %vm2079_vm7 = vcmp.gt.f32.partialorder %v1661_v56, 0.5  ;;  %v1539_v0 = vpop.permute.xlu0 %1538 }
 0x238   : > { %v2847_v37 = vsel %vm2079_vm7, %v5402_v17, -inf  ;;  %vm2048_vm8 = vcmp.gt.f32.partialorder %v1539_v0, 0.5  ;;  %928 = vbcast.lane.b32.xlu1 %v4520_v11, 368 }
 0x239   : > { %v3363_v4 = vsel %vm2903_vm12, %v2847_v37, -inf  ;;  %v2816_v55 = vsel %vm2048_vm8, %v5527_v27, -inf  ;;  %1857 = vbcast.lane.b32.xlu0 %v4647_v54, 336 }
 0x23a   : > { %v5724_v1 = vmax.f32 %v3362_v22, %v3363_v4  ;;  %v5727_v62 = vsel %vm2903_vm12, %v2816_v55, -inf  ;;  %v1039_v46 = vpop.permute.xlu1 %1038 }
 0x23b   : > { %v3292_v39 = vmax.f32 %v5601_v16, %v5727_v62  ;;  %vm1921_vm9 = vcmp.gt.f32.partialorder %v1039_v46, 0.5  ;;  %v1783_v47 = vpop.permute.xlu0 %1782 }
 0x23c   : > { %v2689_v59 = vsel %vm1921_vm9, %v5653_v51, -inf  ;;  %vm2110_vm11 = vcmp.gt.f32.partialorder %v1783_v47, 0.5  ;;  %1113 = vbcast.lane.b32.xlu1 %v4565_v10, 360 }
 0x23d   : > { %v2997_v61 = vsel %vm2903_vm12, %v2689_v59, -inf  ;;  %v2878_v7 = vsel %vm2110_vm11, %v5276_v63, -inf  ;;  %991 = vbcast.lane.b32.xlu0 %v4529_v24, 368 }
 0x23e   : > { %v5739_v22 = vmax.f32 %v6614_v8, %v2997_v61  ;;  %v5742_v32 = vsel %vm2903_vm12, %v2878_v7, -inf  ;;  %v1283_v31 = vpop.permute.xlu1 %1282 }
 0x23f   : > { %v3436_v52 = vmax.f32 %v5616_v57, %v5742_v32  ;;  %vm1983_vm15 = vcmp.gt.f32.partialorder %v1283_v31, 0.5  ;;  %v1161_v56 = vpop.permute.xlu0 %1160 }
 0x240   : > { %v2751_v0 = vsel %vm1983_vm15, %v5402_v17, -inf  ;;  %vm1952_vm0 = vcmp.gt.f32.partialorder %v1161_v56, 0.5  ;;  %1357 = vbcast.lane.b32.xlu1 %v4622_v33, 344 }
 0x241   : > { %v3141_v37 = vsel %vm2903_vm12, %v2751_v0, -inf  ;;  %v2720_v50 = vsel %vm1952_vm0, %v5527_v27, -inf  ;;  %1235 = vbcast.lane.b32.xlu0 %v4608_v14, 352  ;;  %v6617_v0 = vmax.f32 %v5524_v19, %v5640_v53 }
 0x242   : > { %v5754_v4 = vmax.f32 %v6615_v41, %v3141_v37  ;;  %v5757_v55 = vsel %vm2903_vm12, %v2720_v50, -inf  ;;  %v1480_v46 = vpop.permute.xlu1 %1479  ;;  %v5778_v41 = vunpack.c.h.bf16 %v5650_v12 }
 0x243   : > { %v3070_v47 = vmax.f32 %v5631_v36, %v5757_v55  ;;  %vm2033_vm3 = vcmp.gt.f32.partialorder %v1480_v46, 0.5  ;;  %v1417_v59 = vpop.permute.xlu0 %1416 }
 0x244   : > { %v2801_v61 = vsel %vm2033_vm3, %v5653_v51, -inf  ;;  %vm2017_vm4 = vcmp.gt.f32.partialorder %v1417_v59, 0.5  ;;  %1676 = vbcast.lane.b32.xlu1 %v4630_v44, 352 }
 0x245   : > { %v3256_v7 = vsel %vm2903_vm12, %v2801_v61, -inf  ;;  %v2785_v23 = vsel %vm2017_vm4, %v5653_v51, -inf  ;;  %1554 = vbcast.lane.b32.xlu0 %v4575_v26, 360 }
 0x246   : > { %v5769_v8 = vmax.f32 %v6616_v29, %v3256_v7  ;;  %v3219_v31 = vsel %vm2903_vm12, %v2785_v23, -inf  ;;  %v1724_v56 = vpop.permute.xlu1 %1723 }
 0x247   : > { %v5775_v37 = vmax.f32 %v6617_v0, %v3219_v31  ;;  %vm2095_vm7 = vcmp.gt.f32.partialorder %v1724_v56, 0.5  ;;  %v1602_v50 = vpop.permute.xlu0 %1601 }
 0x248   : > { %v2863_v46 = vsel %vm2095_vm7, %v5402_v17, -inf  ;;  %vm2064_vm8 = vcmp.gt.f32.partialorder %v1602_v50, 0.5  ;;  %1054 = vbcast.lane.b32.xlu1 %v4537_v35, 368 }
 0x249   : > { %v3400_v5 = vsel %vm2903_vm12, %v2863_v46, -inf  ;;  %v2832_v13 = vsel %vm2064_vm8, %v5527_v27, -inf  ;;  %1798 = vbcast.lane.b32.xlu0 %v4637_v49, 344 }
 0x24a   : > { %v5788_v19 = vmax.f32 %v3399_v9, %v3400_v5  ;;  %v5791_v53 = vsel %vm2903_vm12, %v2832_v13, -inf  ;;  %v917_v12 = vpop.permute.xlu1 %916 }
 0x24b   : > { %v3329_v59 = vmax.f32 %v5668_v60, %v5791_v53  ;;  %vm1890_vm9 = vcmp.gt.f32.partialorder %v917_v12, 0.5  ;;  %v1846_v61 = vpop.permute.xlu0 %1845 }
 0x24c   : > { %v2658_v7 = vsel %vm1890_vm9, %v5778_v41, -inf  ;;  %vm2126_vm11 = vcmp.gt.f32.partialorder %v1846_v61, 0.5  ;;  %1298 = vbcast.lane.b32.xlu1 %v4612_v25, 352 }
 0x24d   : > { %v5798_v23 = vsel %vm2903_vm12, %v2658_v7, -inf  ;;  %v2894_v40 = vsel %vm2126_vm11, %v5276_v63, -inf  ;;  %1176 = vbcast.lane.b32.xlu0 %v4582_v38, 360 }
 0x24e   : > { %v2926_v43 = vmax.f32 %v5678_v21, %v5798_v23  ;;  %v5805_v9 = vsel %vm2903_vm12, %v2894_v40, -inf  ;;  %v1102_v29 = vpop.permute.xlu1 %1101 }
 0x24f   : > { %v3473_v31 = vmax.f32 %v5684_v3, %v5805_v9  ;;  %vm1937_vm15 = vcmp.gt.f32.partialorder %v1102_v29, 0.5  ;;  %v980_v56 = vpop.permute.xlu0 %979 }
 0x250   : > { %v2705_v0 = vsel %vm1937_vm15, %v5653_v51, -inf  ;;  %vm1906_vm0 = vcmp.gt.f32.partialorder %v980_v56, 0.5  ;;  %1495 = vbcast.lane.b32.xlu1 %v4552_v58, 368 }
 0x251   : > { %v3034_v63 = vsel %vm2903_vm12, %v2705_v0, -inf  ;;  %v2674_v50 = vsel %vm1906_vm0, %v5778_v41, -inf  ;;  %1432 = vbcast.lane.b32.xlu0 %v4545_v48, 368 }
 0x252   : > { %v5817_v46 = vmax.f32 %v3033_v20, %v3034_v63  ;;  %v5820_v5 = vsel %vm2903_vm12, %v2674_v50, -inf  ;;  %v1346_v13 = vpop.permute.xlu1 %1345 }
 0x253   : > { %v2963_v12 = vmax.f32 %v5699_v34, %v5820_v5  ;;  %vm1999_vm3 = vcmp.gt.f32.partialorder %v1346_v13, 0.5  ;;  %v1224_v61 = vpop.permute.xlu0 %1223 }
 0x254   : > { %v2767_v7 = vsel %vm1999_vm3, %v5402_v17, -inf  ;;  %vm1968_vm4 = vcmp.gt.f32.partialorder %v1224_v61, 0.5  ;;  %1739 = vbcast.lane.b32.xlu1 %v4632_v45, 352 }
 0x255   : > { %v3178_v40 = vsel %vm2903_vm12, %v2767_v7, -inf  ;;  %v2736_v28 = vsel %vm1968_vm4, %v5527_v27, -inf  ;;  %1617 = vbcast.lane.b32.xlu0 %v4600_v2, 360 }
 0x256   : > { %v5832_v42 = vmax.f32 %v3177_v15, %v3178_v40  ;;  %v5835_v20 = vsel %vm2903_vm12, %v2736_v28, -inf  ;;  %v1665_v29 = vpop.permute.xlu1 %1664 }
 0x257   : > { %v3107_v56 = vmax.f32 %v5714_v30, %v5835_v20  ;;  %vm2080_vm7 = vcmp.gt.f32.partialorder %v1665_v29, 0.5  ;;  %v1543_v0 = vpop.permute.xlu0 %1542 }
 0x258   : > { %v2848_v63 = vsel %vm2080_vm7, %v5527_v27, -inf  ;;  %vm2049_vm8 = vcmp.gt.f32.partialorder %v1543_v0, 0.5  ;;  %932 = vbcast.lane.b32.xlu1 %v4520_v11, 376 }
 0x259   : > { %v5842_v50 = vsel %vm2903_vm12, %v2848_v63, -inf  ;;  %v2817_v6 = vsel %vm2049_vm8, %v5653_v51, -inf  ;;  %1861 = vbcast.lane.b32.xlu0 %v4647_v54, 344 }
 0x25a   : > { %v3366_v18 = vmax.f32 %v5724_v1, %v5842_v50  ;;  %v3293_v15 = vsel %vm2903_vm12, %v2817_v6, -inf  ;;  %v1043_v13 = vpop.permute.xlu1 %1042 }
 0x25b   : > { %v5852_v61 = vmax.f32 %v3292_v39, %v3293_v15  ;;  %vm1922_vm9 = vcmp.gt.f32.partialorder %v1043_v13, 0.5  ;;  %v1787_v11 = vpop.permute.xlu0 %1786 }
 0x25c   : > { %v2690_v7 = vsel %vm1922_vm9, %v5778_v41, -inf  ;;  %vm2111_vm11 = vcmp.gt.f32.partialorder %v1787_v11, 0.5  ;;  %1117 = vbcast.lane.b32.xlu1 %v4565_v10, 368 }
 0x25d   : > { %v5857_v40 = vsel %vm2903_vm12, %v2690_v7, -inf  ;;  %v2879_v28 = vsel %vm2111_vm11, %v5402_v17, -inf  ;;  %995 = vbcast.lane.b32.xlu0 %v4529_v24, 376 }
 0x25e   : > { %v3000_v29 = vmax.f32 %v5739_v22, %v5857_v40  ;;  %v3437_v16 = vsel %vm2903_vm12, %v2879_v28, -inf  ;;  %v1287_v62 = vpop.permute.xlu1 %1286 }
 0x25f   : > { %v5867_v39 = vmax.f32 %v3436_v52, %v3437_v16  ;;  %vm1984_vm15 = vcmp.gt.f32.partialorder %v1287_v62, 0.5  ;;  %v1165_v0 = vpop.permute.xlu0 %1164 }
 0x260   : > { %v2752_v63 = vsel %vm1984_vm15, %v5527_v27, -inf  ;;  %vm1953_vm0 = vcmp.gt.f32.partialorder %v1165_v0, 0.5  ;;  %1361 = vbcast.lane.b32.xlu1 %v4622_v33, 352  ;;  %v5901_v0 = vld [vmem:[%s6595_s1 + $0x30] sm:$0xff]  }
 0x261   : > { %v5872_v24 = vsel %vm2903_vm12, %v2752_v63, -inf  ;;  %v2721_v6 = vsel %vm1953_vm0, %v5653_v51, -inf  ;;  %1239 = vbcast.lane.b32.xlu0 %v4608_v14, 360  ;;  %v5904_v63 = vunpack.c.l.bf16 %v5901_v0 }
 0x262   : > { %v3144_v15 = vmax.f32 %v5754_v4, %v5872_v24  ;;  %v3071_v57 = vsel %vm2903_vm12, %v2721_v6, -inf  ;;  %v1484_v32 = vpop.permute.xlu1 %1483 }
 0x263   : > { %v5882_v52 = vmax.f32 %v3070_v47, %v3071_v57  ;;  %vm2034_vm3 = vcmp.gt.f32.partialorder %v1484_v32, 0.5  ;;  %v1421_v13 = vpop.permute.xlu0 %1420 }
 0x264   : > { %v2802_v11 = vsel %vm2034_vm3, %v5778_v41, -inf  ;;  %vm2018_vm4 = vcmp.gt.f32.partialorder %v1421_v13, 0.5  ;;  %1680 = vbcast.lane.b32.xlu1 %v4630_v44, 360 }
 0x265   : > { %v5887_v7 = vsel %vm2903_vm12, %v2802_v11, -inf  ;;  %v2786_v28 = vsel %vm2018_vm4, %v5778_v41, -inf  ;;  %1558 = vbcast.lane.b32.xlu0 %v4575_v26, 368 }
 0x266   : > { %v3259_v16 = vmax.f32 %v5769_v8, %v5887_v7  ;;  %v5894_v36 = vsel %vm2903_vm12, %v2786_v28, -inf  ;;  %v1728_v55 = vpop.permute.xlu1 %1727 }
 0x267   : > { %vm2096_vm7 = vcmp.gt.f32.partialorder %v1728_v55, 0.5  ;;  %v1606_v62 = vpop.permute.xlu0 %1605 }
 0x268   : > { %v2864_v6 = vsel %vm2096_vm7, %v5527_v27, -inf  ;;  %vm2065_vm8 = vcmp.gt.f32.partialorder %v1606_v62, 0.5  ;;  %1058 = vbcast.lane.b32.xlu1 %v4537_v35, 376 }
 0x269   : > { %v5909_v57 = vsel %vm2903_vm12, %v2864_v6, -inf  ;;  %v2833_v32 = vsel %vm2065_vm8, %v5653_v51, -inf  ;;  %1802 = vbcast.lane.b32.xlu0 %v4637_v49, 352 }
 0x26a   : > { %v3403_v13 = vmax.f32 %v5788_v19, %v5909_v57  ;;  %v3330_v11 = vsel %vm2903_vm12, %v2833_v32, -inf  ;;  %v921_v28 = vpop.permute.xlu1 %920 }
 0x26b   : > { %v5919_v55 = vmax.f32 %v3329_v59, %v3330_v11  ;;  %vm1891_vm9 = vcmp.gt.f32.partialorder %v921_v28, 0.5  ;;  %v1850_v35 = vpop.permute.xlu0 %1849 }
 0x26c   : > { %v2659_v62 = vsel %vm1891_vm9, %v5904_v63, -inf  ;;  %vm2127_vm11 = vcmp.gt.f32.partialorder %v1850_v35, 0.5  ;;  %1302 = vbcast.lane.b32.xlu1 %v4612_v25, 360 }
 0x26d   : > { %v2927_v6 = vsel %vm2903_vm12, %v2659_v62, -inf  ;;  %v2895_v47 = vsel %vm2127_vm11, %v5402_v17, -inf  ;;  %1180 = vbcast.lane.b32.xlu0 %v4582_v38, 368 }
 0x26e   : > { %v5929_v32 = vmax.f32 %v2926_v43, %v2927_v6  ;;  %v3474_v60 = vsel %vm2903_vm12, %v2895_v47, -inf  ;;  %v1106_v53 = vpop.permute.xlu1 %1105 }
 0x26f   : > { %v5935_v59 = vmax.f32 %v3473_v31, %v3474_v60  ;;  %vm1938_vm15 = vcmp.gt.f32.partialorder %v1106_v53, 0.5  ;;  %v984_v11 = vpop.permute.xlu0 %983 }
 0x270   : > { %v2706_v28 = vsel %vm1938_vm15, %v5778_v41, -inf  ;;  %vm1907_vm0 = vcmp.gt.f32.partialorder %v984_v11, 0.5  ;;  %1499 = vbcast.lane.b32.xlu1 %v4552_v58, 376 }
 0x271   : > { %v5940_v17 = vsel %vm2903_vm12, %v2706_v28, -inf  ;;  %v2675_v21 = vsel %vm1907_vm0, %v5904_v63, -inf  ;;  %1436 = vbcast.lane.b32.xlu0 %v4545_v48, 376 }
 0x272   : > { %v3037_v23 = vmax.f32 %v5817_v46, %v5940_v17  ;;  %v2964_v3 = vsel %vm2903_vm12, %v2675_v21, -inf  ;;  %v1350_v43 = vpop.permute.xlu1 %1349 }
 0x273   : > { %v5950_v9 = vmax.f32 %v2963_v12, %v2964_v3  ;;  %vm2000_vm3 = vcmp.gt.f32.partialorder %v1350_v43, 0.5  ;;  %v1228_v58 = vpop.permute.xlu0 %1227 }
 0x274   : > { %v2768_v31 = vsel %vm2000_vm3, %v5527_v27, -inf  ;;  %vm1969_vm4 = vcmp.gt.f32.partialorder %v1228_v58, 0.5  ;;  %1743 = vbcast.lane.b32.xlu1 %v4632_v45, 360 }
 0x275   : > { %v5955_v48 = vsel %vm2903_vm12, %v2768_v31, -inf  ;;  %v2737_v47 = vsel %vm1969_vm4, %v5653_v51, -inf  ;;  %1621 = vbcast.lane.b32.xlu0 %v4600_v2, 368 }
 0x276   : > { %v3181_v35 = vmax.f32 %v5832_v42, %v5955_v48  ;;  %v3108_v34 = vsel %vm2903_vm12, %v2737_v47, -inf  ;;  %v1669_v5 = vpop.permute.xlu1 %1668 }
 0x277   : > { %v5965_v12 = vmax.f32 %v3107_v56, %v3108_v34  ;;  %vm2081_vm7 = vcmp.gt.f32.partialorder %v1669_v5, 0.5  ;;  %v1547_v62 = vpop.permute.xlu0 %1546 }
 0x278   : > { %v2849_v6 = vsel %vm2081_vm7, %v5653_v51, -inf  ;;  %vm2050_vm8 = vcmp.gt.f32.partialorder %v1547_v62, 0.5  ;;  %1121 = vbcast.lane.b32.xlu1 %v4565_v10, 376 }
 0x279   : > { %v3367_v60 = vsel %vm2903_vm12, %v2849_v6, -inf  ;;  %v2818_v53 = vsel %vm2050_vm8, %v5778_v41, -inf  ;;  %1865 = vbcast.lane.b32.xlu0 %v4647_v54, 352 }
 0x27a   : > { %v5975_v11 = vmax.f32 %v3366_v18, %v3367_v60  ;;  %v5978_v30 = vsel %vm2903_vm12, %v2818_v53, -inf  ;;  %v1047_v20 = vpop.permute.xlu1 %1046  ;;  %v6618_v53 = vmax.f32 %v5775_v37, %v5894_v36 }
 0x27b   : > { %v3296_v56 = vmax.f32 %v5852_v61, %v5978_v30  ;;  %vm1923_vm9 = vcmp.gt.f32.partialorder %v1047_v20, 0.5  ;;  %v1791_v10 = vpop.permute.xlu0 %1790  ;;  %v3500_v61 = vld [vmem:[%s6597_s3] sm:$0xff]  ;;  %v3501_v30 = vld [vmem:[%s6597_s3 + $0x8] sm:$0xff] }
 0x27c   : > { %v2691_v28 = vsel %vm1923_vm9, %v5904_v63, -inf  ;;  %vm2112_vm11 = vcmp.gt.f32.partialorder %v1791_v10, 0.5  ;;  %1365 = vbcast.lane.b32.xlu1 %v4622_v33, 360  ;;  %v6029_v10 = vunpack.c.h.bf16 %v5901_v0 }
 0x27d   : > { %v3001_v21 = vsel %vm2903_vm12, %v2691_v28, -inf  ;;  %v2880_v1 = vsel %vm2112_vm11, %v5527_v27, -inf  ;;  %1243 = vbcast.lane.b32.xlu0 %v4608_v14, 368 }
 0x27e   : > { %v5990_v50 = vmax.f32 %v3000_v29, %v3001_v21  ;;  %v5993_v18 = vsel %vm2903_vm12, %v2880_v1, -inf  ;;  %v1291_v3 = vpop.permute.xlu1 %1290 }
 0x27f   : > { %v3440_v43 = vmax.f32 %v5867_v39, %v5993_v18  ;;  %vm1985_vm15 = vcmp.gt.f32.partialorder %v1291_v3, 0.5  ;;  %v1169_v58 = vpop.permute.xlu0 %1168 }
 0x280   : > { %v2753_v31 = vsel %vm1985_vm15, %v5653_v51, -inf  ;;  %vm1954_vm0 = vcmp.gt.f32.partialorder %v1169_v58, 0.5  ;;  %1684 = vbcast.lane.b32.xlu1 %v4630_v44, 368 }
 0x281   : > { %v3145_v47 = vsel %vm2903_vm12, %v2753_v31, -inf  ;;  %v2722_v22 = vsel %vm1954_vm0, %v5778_v41, -inf  ;;  %1562 = vbcast.lane.b32.xlu0 %v4575_v26, 376 }
 0x282   : > { %v6005_v40 = vmax.f32 %v3144_v15, %v3145_v47  ;;  %v6008_v29 = vsel %vm2903_vm12, %v2722_v22, -inf  ;;  %v1488_v34 = vpop.permute.xlu1 %1487 }
 0x283   : > { %v3074_v5 = vmax.f32 %v5882_v52, %v6008_v29  ;;  %vm2035_vm3 = vcmp.gt.f32.partialorder %v1488_v34, 0.5  ;;  %v1425_v62 = vpop.permute.xlu0 %1424 }
 0x284   : > { %v2803_v6 = vsel %vm2035_vm3, %v5904_v63, -inf  ;;  %vm2019_vm4 = vcmp.gt.f32.partialorder %v1425_v62, 0.5  ;;  %1184 = vbcast.lane.b32.xlu1 %v4582_v38, 376 }
 0x285   : > { %v3260_v26 = vsel %vm2903_vm12, %v2803_v6, -inf  ;;  %v2787_v4 = vsel %vm2019_vm4, %v5904_v63, -inf  ;;  %1806 = vbcast.lane.b32.xlu0 %v4637_v49, 360 }
 0x286   : > { %v6020_v24 = vmax.f32 %v3259_v16, %v3260_v26  ;;  %v3223_v15 = vsel %vm2903_vm12, %v2787_v4, -inf  ;;  %v1732_v60 = vpop.permute.xlu1 %1731 }
 0x287   : > { %v6026_v20 = vmax.f32 %v6618_v53, %v3223_v15  ;;  %vm2097_vm7 = vcmp.gt.f32.partialorder %v1732_v60, 0.5  ;;  %v1610_v38 = vpop.permute.xlu0 %1609 }
 0x288   : > { %v2865_v28 = vsel %vm2097_vm7, %v5653_v51, -inf  ;;  %vm2066_vm8 = vcmp.gt.f32.partialorder %v1610_v38, 0.5  ;;  %1625 = vbcast.lane.b32.xlu1 %v4600_v2, 376  ;;  %v6033_v8 = vpop.f32.mrb[0].mxu1 }
 0x289   : > { %v3404_v7 = vsel %vm2903_vm12, %v2865_v28, -inf  ;;  %v2834_v16 = vsel %vm2066_vm8, %v5778_v41, -inf  ;;  %1306 = vbcast.lane.b32.xlu0 %v4612_v25, 368  ;;  %v6038_v37 = vpop.f32.mrb[1].mxu1 }
 0x28a   : > { %v6043_v36 = vmax.f32 %v3403_v13, %v3404_v7  ;;  %v6046_v0 = vsel %vm2903_vm12, %v2834_v16, -inf  ;;  %v925_v21 = vpop.permute.xlu1 %924 }
 0x28b   : > { %v3333_v2 = vmax.f32 %v5919_v55, %v6046_v0  ;;  %vm1892_vm9 = vcmp.gt.f32.partialorder %v925_v21, 0.5  ;;  %v1854_v1 = vpop.permute.xlu0 %1853 }
 0x28c   : > { %v2660_v3 = vsel %vm1892_vm9, %v6029_v10, -inf  ;;  %vm2128_vm11 = vcmp.gt.f32.partialorder %v1854_v1, 0.5  ;;  %1869 = vbcast.lane.b32.xlu1 %v4647_v54, 360 }
 0x28d   : > { %v6053_v58 = vsel %vm2903_vm12, %v2660_v3, -inf  ;;  %v2896_v19 = vsel %vm2128_vm11, %v5527_v27, -inf  ;;  %1747 = vbcast.lane.b32.xlu0 %v4632_v45, 368 }
 0x28e   : > { %v2930_v57 = vmax.f32 %v5929_v32, %v6053_v58  ;;  %v6060_v13 = vsel %vm2903_vm12, %v2896_v19, -inf  ;;  %v1110_v31 = vpop.permute.xlu1 %1109 }
 0x28f   : > { %v3477_v47 = vmax.f32 %v5935_v59, %v6060_v13  ;;  %vm1939_vm15 = vcmp.gt.f32.partialorder %v1110_v31, 0.5  ;;  %v988_v22 = vpop.permute.xlu0 %987 }
 0x290   : > { %v2707_v34 = vsel %vm1939_vm15, %v5904_v63, -inf  ;;  %vm1908_vm0 = vcmp.gt.f32.partialorder %v988_v22, 0.5  ;;  %1369 = vbcast.lane.b32.xlu1 %v4622_v33, 368  ;;  %v4176_v22 = vpack.c.bf16 %v3501_v30, %v3500_v61  ;;  %v3706_v61 = vld [vmem:[%s6599_s5 + $0x8] sm:$0xff]  ;;  %v3707_v30 = vld [vmem:[%s6599_s5 + $0x10] sm:$0xff] }
 0x291   : > { %v3038_v27 = vsel %vm2903_vm12, %v2707_v34, -inf  ;;  %v2676_v62 = vsel %vm1908_vm0, %v6029_v10, -inf  ;;  %1247 = vbcast.lane.b32.xlu0 %v4608_v14, 376 }
 0x292   : > { %v6072_v6 = vmax.f32 %v3037_v23, %v3038_v27  ;;  %v6075_v26 = vsel %vm2903_vm12, %v2676_v62, -inf  ;;  %v1354_v4 = vpop.permute.xlu1 %1353  ;;  %4177 = vmatprep.subr.bf16.mxu0 %v4176_v22 }
 0x293   : > { %v2967_v15 = vmax.f32 %v5950_v9, %v6075_v26  ;;  %vm2001_vm3 = vcmp.gt.f32.partialorder %v1354_v4, 0.5  ;;  %v1232_v60 = vpop.permute.xlu0 %1231  ;;  %4179 = vmatpush3.bf16.msra.mxu0 %v4176_v22 }
 0x294   : > { %v2769_v53 = vsel %vm2001_vm3, %v5653_v51, -inf  ;;  %vm1970_vm4 = vcmp.gt.f32.partialorder %v1232_v60, 0.5  ;;  %1810 = vbcast.lane.b32.xlu1 %v4637_v49, 368 }
 0x295   : > { %v3182_v14 = vsel %vm2903_vm12, %v2769_v53, -inf  ;;  %v2738_v46 = vsel %vm1970_vm4, %v5778_v41, -inf  ;;  %1688 = vbcast.lane.b32.xlu0 %v4630_v44, 376 }
 0x296   : > { %v6087_v17 = vmax.f32 %v3181_v35, %v3182_v14  ;;  %v6090_v23 = vsel %vm2903_vm12, %v2738_v46, -inf  ;;  %v1673_v38 = vpop.permute.xlu1 %1672  ;;  %v3502_v14 = vld [vmem:[%s6597_s3 + $0x10] sm:$0xff] }
 0x297   : > { %v3111_v28 = vmax.f32 %v5965_v12, %v6090_v23  ;;  %vm2082_vm7 = vcmp.gt.f32.partialorder %v1673_v38, 0.5  ;;  %v1551_v7 = vpop.permute.xlu0 %1550 }
 0x298   : > { %v2850_v16 = vsel %vm2082_vm7, %v5778_v41, -inf  ;;  %vm2051_vm8 = vcmp.gt.f32.partialorder %v1551_v7, 0.5  ;;  %1751 = vbcast.lane.b32.xlu1 %v4632_v45, 376 }
 0x299   : > { %v6097_v44 = vsel %vm2903_vm12, %v2850_v16, -inf  ;;  %v2819_v42 = vsel %vm2051_vm8, %v5904_v63, -inf  ;;  %1310 = vbcast.lane.b32.xlu0 %v4612_v25, 376 }
 0x29a   : > { %v3370_v48 = vmax.f32 %v5975_v11, %v6097_v44  ;;  %v3297_v35 = vsel %vm2903_vm12, %v2819_v42, -inf  ;;  %v1051_v21 = vpop.permute.xlu1 %1050 }
 0x29b   : > { %v6107_v1 = vmax.f32 %v3296_v56, %v3297_v35  ;;  %vm1924_vm9 = vcmp.gt.f32.partialorder %v1051_v21, 0.5  ;;  %v1795_v45 = vpop.permute.xlu0 %1794  ;;  %v6166_v21 = vld [vmem:[%s6595_s1 + $0x38] sm:$0xff]  }
 0x29c   : > { %v2692_v3 = vsel %vm1924_vm9, %v6029_v10, -inf  ;;  %vm2113_vm11 = vcmp.gt.f32.partialorder %v1795_v45, 0.5  ;;  %1373 = vbcast.lane.b32.xlu1 %v4622_v33, 376  ;;  %v6169_v45 = vunpack.c.l.bf16 %v6166_v21 }
 0x29d   : > { %v6112_v25 = vsel %vm2903_vm12, %v2692_v3, -inf  ;;  %v2881_v19 = vsel %vm2113_vm11, %v5653_v51, -inf  ;;  %1873 = vbcast.lane.b32.xlu0 %v4647_v54, 368 }
 0x29e   : > { %v3004_v56 = vmax.f32 %v5990_v50, %v6112_v25  ;;  %v3441_v33 = vsel %vm2903_vm12, %v2881_v19, -inf  ;;  %v1295_v31 = vpop.permute.xlu1 %1294  ;;  %v3705_v19 = vld [vmem:[%s6599_s5] sm:$0xff] }
 0x29f   : > { %v6128_v34 = vmax.f32 %v3440_v43, %v3441_v33  ;;  %vm1986_vm15 = vcmp.gt.f32.partialorder %v1295_v31, 0.5  ;;  %v1173_v27 = vpop.permute.xlu0 %1172  ;;  %v4192_v22 = vpack.c.bf16 %v3706_v61, %v3705_v19  ;;  %v3712_v19 = vld [vmem:[%s6599_s5 + $0x38] sm:$0xff] }
 0x2a0   : > { %v2754_v62 = vsel %vm1986_vm15, %v5778_v41, -inf  ;;  %vm1955_vm0 = vcmp.gt.f32.partialorder %v1173_v27, 0.5  ;;  %1877 = vbcast.lane.b32.xlu1 %v4647_v54, 376  ;;  %v3708_v27 = vld [vmem:[%s6599_s5 + $0x18] sm:$0xff] }
 0x2a1   : > { %v6133_v4 = vsel %vm2903_vm12, %v2754_v62, -inf  ;;  %v2723_v60 = vsel %vm1955_vm0, %v5904_v63, -inf  ;;  %1814 = vbcast.lane.b32.xlu0 %v4637_v49, 376  ;;  %v3503_v49 = vld [vmem:[%s6597_s3 + $0x18] sm:$0xff]  ;;  %4193 = vmatprep.subr.bf16.mxu1 %v4192_v22 }
 0x2a2   : > { %v3148_v39 = vmax.f32 %v6005_v40, %v6133_v4  ;;  %v3075_v18 = vsel %vm2903_vm12, %v2723_v60, -inf  ;;  %v1492_v43 = vpop.permute.xlu1 %1491  ;;  %v4180_v38 = vpack.c.bf16 %v3503_v49, %v3502_v14  ;;  %v3710_v14 = vld [vmem:[%s6599_s5 + $0x28] sm:$0xff]  ;;  %4195 = vmatpush3.bf16.msra.mxu1 %v4192_v22 }
 0x2a3   : > { %v6143_v53 = vmax.f32 %v3074_v5, %v3075_v18  ;;  %vm2036_vm3 = vcmp.gt.f32.partialorder %v1492_v43, 0.5  ;;  %v1429_v54 = vpop.permute.xlu0 %1428  ;;  %v4196_v43 = vpack.c.bf16 %v3708_v27, %v3707_v30  ;;  %v3714_v22 = vld [vmem:[%s6599_s5 + $0x48] sm:$0xff] }
 0x2a4   : > { %v2804_v46 = vsel %vm2036_vm3, %v6029_v10, -inf  ;;  %vm2020_vm4 = vcmp.gt.f32.partialorder %v1429_v54, 0.5  ;;  %4181 = vmatprep.subr.bf16.mxu0 %v4180_v38  ;;  %v3709_v54 = vld [vmem:[%s6599_s5 + $0x20] sm:$0xff] }
 0x2a5   : > { %v6153_v7 = vsel %vm2903_vm12, %v2804_v46, -inf  ;;  %v2788_v52 = vsel %vm2020_vm4, %v6029_v10, -inf  ;;  %4183 = vmatpush3.bf16.msra.mxu0 %v4180_v38  ;;  %4197 = vmatprep.subr.bf16.mxu1 %v4196_v43 }
 0x2a6   : > { %v3263_v29 = vmax.f32 %v6020_v24, %v6153_v7  ;;  %v6159_v5 = vsel %vm2903_vm12, %v2788_v52, -inf  ;;  %v1736_v16 = vpop.permute.xlu1 %1735  ;;  %4199 = vmatpush3.bf16.msra.mxu1 %v4196_v43 }
 0x2a7   : > { %v3226_v42 = vmax.f32 %v6026_v20, %v6159_v5  ;;  %vm2098_vm7 = vcmp.gt.f32.partialorder %v1736_v16, 0.5  ;;  %v1614_v35 = vpop.permute.xlu0 %1613 }
 0x2a8   : > { %v2866_v3 = vsel %vm2098_vm7, %v5778_v41, -inf  ;;  %vm2067_vm8 = vcmp.gt.f32.partialorder %v1614_v35, 0.5  ;;  %v4200_v35 = vpack.c.bf16 %v3710_v14, %v3709_v54 }
 0x2a9   : > { %v6182_v33 = vsel %vm2903_vm12, %v2866_v3, -inf  ;;  %v2835_v31 = vsel %vm2067_vm8, %v5904_v63, -inf }
 0x2aa   : > { %v3407_v62 = vmax.f32 %v6043_v36, %v6182_v33  ;;  %v3334_v60 = vsel %vm2903_vm12, %v2835_v31, -inf  ;;  %v929_v18 = vpop.permute.xlu1 %928  ;;  %4201 = vmatprep.subr.bf16.mxu1 %v4200_v35 }
 0x2ab   : > { %v6200_v49 = vmax.f32 %v3333_v2, %v3334_v60  ;;  %vm1893_vm9 = vcmp.gt.f32.partialorder %v929_v18, 0.5  ;;  %v1858_v46 = vpop.permute.xlu0 %1857  ;;  %v3711_v2 = vld [vmem:[%s6599_s5 + $0x30] sm:$0xff]  ;;  %4203 = vmatpush3.bf16.msra.mxu1 %v4200_v35 }
 0x2ac   : > { %v2661_v38 = vsel %vm1893_vm9, %v6169_v45, -inf  ;;  %vm2129_vm11 = vcmp.gt.f32.partialorder %v1858_v46, 0.5  ;;  %v4204_v30 = vpack.c.bf16 %v3712_v19, %v3711_v2 }
 0x2ad   : > { %v2931_v52 = vsel %vm2903_vm12, %v2661_v38, -inf  ;;  %v2897_v16 = vsel %vm2129_vm11, %v5653_v51, -inf  ;;  %v3716_v38 = vld [vmem:[%s6599_s5 + $0x58] sm:$0xff] }
 0x2ae   : > { %v6208_v3 = vmax.f32 %v2930_v57, %v2931_v52  ;;  %v3478_v55 = vsel %vm2903_vm12, %v2897_v16, -inf  ;;  %v1114_v0 = vpop.permute.xlu1 %1113  ;;  %4205 = vmatprep.subr.bf16.mxu1 %v4204_v30 }
 0x2af   : > { %v6220_v51 = vmax.f32 %v3477_v47, %v3478_v55  ;;  %vm1940_vm15 = vcmp.gt.f32.partialorder %v1114_v0, 0.5  ;;  %v992_v32 = vpop.permute.xlu0 %991  ;;  %v3713_v47 = vld [vmem:[%s6599_s5 + $0x40] sm:$0xff]  ;;  %4207 = vmatpush3.bf16.msra.mxu1 %v4204_v30 }
 0x2b0   : > { %v2708_v58 = vsel %vm1940_vm15, %v6029_v10, -inf  ;;  %vm1909_vm0 = vcmp.gt.f32.partialorder %v992_v32, 0.5  ;;  %v4208_v14 = vpack.c.bf16 %v3714_v22, %v3713_v47 }
 0x2b1   : > { %v6224_v57 = vsel %vm2903_vm12, %v2708_v58, -inf  ;;  %v2677_v61 = vsel %vm1909_vm0, %v6169_v45, -inf }
 0x2b2   : > { %v3041_v31 = vmax.f32 %v6072_v6, %v6224_v57  ;;  %v2968_v59 = vsel %vm2903_vm12, %v2677_v61, -inf  ;;  %v1358_v13 = vpop.permute.xlu1 %1357  ;;  %4209 = vmatprep.subr.bf16.mxu1 %v4208_v14 }
 0x2b3   : > { %v6239_v27 = vmax.f32 %v2967_v15, %v2968_v59  ;;  %vm2002_vm3 = vcmp.gt.f32.partialorder %v1358_v13, 0.5  ;;  %v1236_v60 = vpop.permute.xlu0 %1235  ;;  %v3715_v15 = vld [vmem:[%s6599_s5 + $0x50] sm:$0xff]  ;;  %4211 = vmatpush3.bf16.msra.mxu1 %v4208_v14 }
 0x2b4   : > { %v2770_v18 = vsel %vm2002_vm3, %v5778_v41, -inf  ;;  %vm1971_vm4 = vcmp.gt.f32.partialorder %v1236_v60, 0.5  ;;  %v4212_v2 = vpack.c.bf16 %v3716_v38, %v3715_v15 }
 0x2b5   : > { %v6243_v43 = vsel %vm2903_vm12, %v2770_v18, -inf  ;;  %v2739_v54 = vsel %vm1971_vm4, %v5904_v63, -inf }
 0x2b6   : > { %v3185_v46 = vmax.f32 %v6087_v17, %v6243_v43  ;;  %v3112_v9 = vsel %vm2903_vm12, %v2739_v54, -inf  ;;  %v1677_v26 = vpop.permute.xlu1 %1676  ;;  %4213 = vmatprep.subr.bf16.mxu1 %v4212_v2 }
 0x2b7   : > { %v6258_v52 = vmax.f32 %v3111_v28, %v3112_v9  ;;  %vm2083_vm7 = vcmp.gt.f32.partialorder %v1677_v26, 0.5  ;;  %v1555_v16 = vpop.permute.xlu0 %1554  ;;  %4215 = vmatpush3.bf16.msra.mxu1 %v4212_v2 }
 0x2b8   : > { %v2851_v35 = vsel %vm2083_vm7, %v5904_v63, -inf  ;;  %vm2052_vm8 = vcmp.gt.f32.partialorder %v1555_v16, 0.5  ;;  %v6314_v16 = vunpack.c.h.bf16 %v6166_v21 }
 0x2b9   : > { %v3371_v55 = vsel %vm2903_vm12, %v2851_v35, -inf  ;;  %v2820_v0 = vsel %vm2052_vm8, %v6029_v10, -inf }
 0x2ba   : > { %v6266_v19 = vmax.f32 %v3370_v48, %v3371_v55  ;;  %v6269_v12 = vsel %vm2903_vm12, %v2820_v0, -inf  ;;  %v1055_v23 = vpop.permute.xlu1 %1054 }
 0x2bb   : > { %v3300_v28 = vmax.f32 %v6107_v1, %v6269_v12  ;;  %vm1925_vm9 = vcmp.gt.f32.partialorder %v1055_v23, 0.5  ;;  %v1799_v32 = vpop.permute.xlu0 %1798 }
 0x2bc   : > { %v2693_v58 = vsel %vm1925_vm9, %v6169_v45, -inf  ;;  %vm2114_vm11 = vcmp.gt.f32.partialorder %v1799_v32, 0.5 }
 0x2bd   : > { %v3005_v61 = vsel %vm2903_vm12, %v2693_v58, -inf  ;;  %v2882_v30 = vsel %vm2114_vm11, %v5778_v41, -inf }
 0x2be   : > { %v6279_v11 = vmax.f32 %v3004_v56, %v3005_v61  ;;  %v6282_v44 = vsel %vm2903_vm12, %v2882_v30, -inf  ;;  %v1299_v48 = vpop.permute.xlu1 %1298 }
 0x2bf   : > { %v3444_v59 = vmax.f32 %v6128_v34, %v6282_v44  ;;  %vm1987_vm15 = vcmp.gt.f32.partialorder %v1299_v48, 0.5  ;;  %v1177_v13 = vpop.permute.xlu0 %1176 }
 0x2c0   : > { %v2755_v47 = vsel %vm1987_vm15, %v5904_v63, -inf  ;;  %vm1956_vm0 = vcmp.gt.f32.partialorder %v1177_v13, 0.5 }
 0x2c1   : > { %v3149_v22 = vsel %vm2903_vm12, %v2755_v47, -inf  ;;  %v2724_v60 = vsel %vm1956_vm0, %v6029_v10, -inf }
 0x2c2   : > { %v6292_v50 = vmax.f32 %v3148_v39, %v3149_v22  ;;  %v6295_v25 = vsel %vm2903_vm12, %v2724_v60, -inf  ;;  %v1496_v56 = vpop.permute.xlu1 %1495 }
 0x2c3   : > { %v3078_v18 = vmax.f32 %v6143_v53, %v6295_v25  ;;  %vm2037_vm3 = vcmp.gt.f32.partialorder %v1496_v56, 0.5  ;;  %v1433_v54 = vpop.permute.xlu0 %1432 }
 0x2c4   : > { %v2805_v14 = vsel %vm2037_vm3, %v6169_v45, -inf  ;;  %vm2021_vm4 = vcmp.gt.f32.partialorder %v1433_v54, 0.5 }
 0x2c5   : > { %v3264_v9 = vsel %vm2903_vm12, %v2805_v14, -inf  ;;  %v2789_v26 = vsel %vm2021_vm4, %v6169_v45, -inf }
 0x2c6   : > { %v6305_v40 = vmax.f32 %v3263_v29, %v3264_v9  ;;  %v3227_v4 = vsel %vm2903_vm12, %v2789_v26, -inf  ;;  %v1740_v39 = vpop.permute.xlu1 %1739 }
 0x2c7   : > { %v6311_v15 = vmax.f32 %v3226_v42, %v3227_v4  ;;  %vm2099_vm7 = vcmp.gt.f32.partialorder %v1740_v39, 0.5  ;;  %v1618_v38 = vpop.permute.xlu0 %1617 }
 0x2c8   : > { %v2867_v35 = vsel %vm2099_vm7, %v5904_v63, -inf  ;;  %vm2068_vm8 = vcmp.gt.f32.partialorder %v1618_v38, 0.5 }
 0x2c9   : > { %v3408_v24 = vsel %vm2903_vm12, %v2867_v35, -inf  ;;  %v2836_v7 = vsel %vm2068_vm8, %v6029_v10, -inf }
 0x2ca   : > { %v6322_v29 = vmax.f32 %v3407_v62, %v3408_v24  ;;  %v6325_v20 = vsel %vm2903_vm12, %v2836_v7, -inf  ;;  %v933_v5 = vpop.permute.xlu1 %932 }
 0x2cb   : > { %v3337_v42 = vmax.f32 %v6200_v49, %v6325_v20  ;;  %vm1894_vm9 = vcmp.gt.f32.partialorder %v933_v5, 0.5  ;;  %v1862_v21 = vpop.permute.xlu0 %1861 }
 0x2cc   : > { %v2662_v55 = vsel %vm1894_vm9, %v6314_v16, -inf  ;;  %vm2130_vm11 = vcmp.gt.f32.partialorder %v1862_v21, 0.5 }
 0x2cd   : > { %v2933_v0 = vsel %vm2903_vm12, %v2662_v55, -inf  ;;  %v2898_v2 = vsel %vm2130_vm11, %v5778_v41, -inf }
 0x2ce   : > { %v2934_v36 = vmax.f32 %v6208_v3, %v2933_v0  ;;  %v6334_v33 = vsel %vm2903_vm12, %v2898_v2, -inf  ;;  %v1118_v62 = vpop.permute.xlu1 %1117 }
 0x2cf   : > { %v3481_v23 = vmax.f32 %v6220_v51, %v6334_v33  ;;  %vm1941_vm15 = vcmp.gt.f32.partialorder %v1118_v62, 0.5  ;;  %v996_v32 = vpop.permute.xlu0 %995 }
 0x2d0   : > { %v2935_v58 = vrot.slane %v2934_v36, 4  ;;  %v2709_v61 = vsel %vm1941_vm15, %v6169_v45, -inf  ;;  %vm1910_vm0 = vcmp.gt.f32.partialorder %v996_v32, 0.5 }
 0x2d1   : > { %v3042_v30 = vsel %vm2903_vm12, %v2709_v61, -inf  ;;  %v2678_v48 = vsel %vm1910_vm0, %v6314_v16, -inf }
 0x2d2   : > { %v2936_v41 = vmax.f32 %v2934_v36, %v2935_v58  ;;  %v6344_v3 = vmax.f32 %v3041_v31, %v3042_v30  ;;  %v2970_v13 = vsel %vm2903_vm12, %v2678_v48, -inf  ;;  %v1362_v47 = vpop.permute.xlu1 %1361 }
 0x2d3   : > { %v2971_v22 = vmax.f32 %v6239_v27, %v2970_v13  ;;  %vm2003_vm3 = vcmp.gt.f32.partialorder %v1362_v47, 0.5  ;;  %v1240_v60 = vpop.permute.xlu0 %1239 }
 0x2d4   : > { %v2937_v56 = vrot.slane %v2936_v41, 2  ;;  %v2771_v54 = vsel %vm2003_vm3, %v5904_v63, -inf  ;;  %vm1972_vm4 = vcmp.gt.f32.partialorder %v1240_v60, 0.5 }
 0x2d5   : > { %v2972_v14 = vrot.slane %v2971_v22, 4  ;;  %v3186_v9 = vsel %vm2903_vm12, %v2771_v54, -inf  ;;  %v2740_v26 = vsel %vm1972_vm4, %v6029_v10, -inf }
 0x2d6   : > { %v6354_v6 = vmax.f32 %v3185_v46, %v3186_v9  ;;  %v6357_v57 = vsel %vm2903_vm12, %v2740_v26, -inf  ;;  %v1681_v31 = vpop.permute.xlu1 %1680  ;;  %v2938_v27 = vmax.f32 %v2936_v41, %v2937_v56 }
 0x2d7   : > { %v2973_v4 = vmax.f32 %v2971_v22, %v2972_v14  ;;  %v3115_v39 = vmax.f32 %v6258_v52, %v6357_v57  ;;  %vm2084_vm7 = vcmp.gt.f32.partialorder %v1681_v31, 0.5  ;;  %v1559_v38 = vpop.permute.xlu0 %1558 }
 0x2d8   : > { %v2852_v35 = vsel %vm2084_vm7, %v6029_v10, -inf  ;;  %vm2053_vm8 = vcmp.gt.f32.partialorder %v1559_v38, 0.5  ;;  %v2939_v21 = vrot.slane %v2938_v27, 1 }
 0x2d9   : > { %v2974_v24 = vrot.slane %v2973_v4, 2  ;;  %v6363_v7 = vsel %vm2903_vm12, %v2852_v35, -inf  ;;  %v2821_v17 = vsel %vm2053_vm8, %v6169_v45, -inf }
 0x2da   : > { %v3374_v43 = vmax.f32 %v6266_v19, %v6363_v7  ;;  %v3301_v46 = vsel %vm2903_vm12, %v2821_v17, -inf  ;;  %v1059_v5 = vpop.permute.xlu1 %1058  ;;  %v2940_v41 = vmax.f32 %v2938_v27, %v2939_v21 }
 0x2db   : > { %v2975_v55 = vmax.f32 %v2973_v4, %v2974_v24  ;;  %v6372_v0 = vmax.f32 %v3300_v28, %v3301_v46  ;;  %vm1926_vm9 = vcmp.gt.f32.partialorder %v1059_v5, 0.5  ;;  %v1803_v2 = vpop.permute.xlu0 %1802 }
 0x2dc   : > { %v2694_v36 = vsel %vm1926_vm9, %v6314_v16, -inf  ;;  %vm2115_vm11 = vcmp.gt.f32.partialorder %v1803_v2, 0.5 }
 0x2dd   : > { %v2976_v62 = vrot.slane %v2975_v55, 1  ;;  %v3007_v32 = vsel %vm2903_vm12, %v2694_v36, -inf  ;;  %v2883_v58 = vsel %vm2115_vm11, %v5904_v63, -inf }
 0x2de   : > { %v3008_v61 = vmax.f32 %v6279_v11, %v3007_v32  ;;  %v3445_v30 = vsel %vm2903_vm12, %v2883_v58, -inf  ;;  %v1303_v48 = vpop.permute.xlu1 %1302 }
 0x2df   : > { %v2977_v13 = vmax.f32 %v2975_v55, %v2976_v62  ;;  %v6382_v1 = vmax.f32 %v3444_v59, %v3445_v30  ;;  %vm1988_vm15 = vcmp.gt.f32.partialorder %v1303_v48, 0.5  ;;  %v1181_v12 = vpop.permute.xlu0 %1180 }
 0x2e0   : > { %v3009_v28 = vrot.slane %v3008_v61, 4  ;;  %v2756_v47 = vsel %vm1988_vm15, %v6029_v10, -inf  ;;  %vm1957_vm0 = vcmp.gt.f32.partialorder %v1181_v12, 0.5 }
 0x2e1   : > { %v3520_v22 = vsel %vm771_vm10, %v2977_v13, %v2940_v41  ;;  %v6387_v11 = vsel %vm2903_vm12, %v2756_v47, -inf  ;;  %v2725_v60 = vsel %vm1957_vm0, %v6169_v45, -inf }
 0x2e2   : > { %v3010_v56 = vmax.f32 %v3008_v61, %v3009_v28  ;;  %v3152_v54 = vmax.f32 %v6292_v50, %v6387_v11  ;;  %v3079_v34 = vsel %vm2903_vm12, %v2725_v60, -inf  ;;  %v1500_v44 = vpop.permute.xlu1 %1499 }
 0x2e3   : > { %v6396_v59 = vmax.f32 %v3078_v18, %v3079_v34  ;;  %vm2038_vm3 = vcmp.gt.f32.partialorder %v1500_v44, 0.5  ;;  %v1437_v14 = vpop.permute.xlu0 %1436 }
 0x2e4   : > { %v3011_v9 = vrot.slane %v3010_v56, 2  ;;  %v2806_v26 = vsel %vm2038_vm3, %v6314_v16, -inf  ;;  %vm2022_vm4 = vcmp.gt.f32.partialorder %v1437_v14, 0.5 }
 0x2e5   : > { %v3266_v31 = vsel %vm2903_vm12, %v2806_v26, -inf  ;;  %v2790_v27 = vsel %vm2022_vm4, %v6314_v16, -inf }
 0x2e6   : > { %v3012_v4 = vmax.f32 %v3010_v56, %v3011_v9  ;;  %v3267_v38 = vmax.f32 %v6305_v40, %v3266_v31  ;;  %v3229_v35 = vsel %vm2903_vm12, %v2790_v27, -inf  ;;  %v1744_v24 = vpop.permute.xlu1 %1743 }
 0x2e7   : > { %v3230_v53 = vmax.f32 %v6311_v15, %v3229_v35  ;;  %vm2100_vm7 = vcmp.gt.f32.partialorder %v1744_v24, 0.5  ;;  %v1622_v25 = vpop.permute.xlu0 %1621 }
 0x2e8   : > { %v3013_v18 = vrot.slane %v3012_v4, 1  ;;  %v3268_v17 = vrot.slane %v3267_v38, 4  ;;  %v2868_v46 = vsel %vm2100_vm7, %v6029_v10, -inf  ;;  %vm2069_vm8 = vcmp.gt.f32.partialorder %v1622_v25, 0.5 }
 0x2e9   : > { %v3231_v5 = vrot.slane %v3230_v53, 4  ;;  %v6406_v21 = vsel %vm2903_vm12, %v2868_v46, -inf  ;;  %v2837_v55 = vsel %vm2069_vm8, %v6169_v45, -inf }
 0x2ea   : > { %v3014_v2 = vmax.f32 %v3012_v4, %v3013_v18  ;;  %v3269_v40 = vmax.f32 %v3267_v38, %v3268_v17  ;;  %v3411_v36 = vmax.f32 %v6322_v29, %v6406_v21  ;;  %v3338_v15 = vsel %vm2903_vm12, %v2837_v55, -inf  ;;  %v1122_v62 = vpop.permute.xlu1 %1121 }
 0x2eb   : > { %v3232_v32 = vmax.f32 %v3230_v53, %v3231_v5  ;;  %v6415_v58 = vmax.f32 %v3337_v42, %v3338_v15  ;;  %vm1942_vm9 = vcmp.gt.f32.partialorder %v1122_v62, 0.5  ;;  %v1866_v61 = vpop.permute.xlu0 %1865 }
 0x2ec   : > { %v3521_v30 = vsel %vm773_vm13, %v3014_v2, %v3520_v22  ;;  %v3270_v48 = vrot.slane %v3269_v40, 2  ;;  %v2710_v41 = vsel %vm1942_vm9, %v6314_v16, -inf  ;;  %vm2131_vm11 = vcmp.gt.f32.partialorder %v1866_v61, 0.5 }
 0x2ed   : > { %v3233_v13 = vrot.slane %v3232_v32, 2  ;;  %v3044_v12 = vsel %vm2903_vm12, %v2710_v41, -inf  ;;  %v2899_v28 = vsel %vm2131_vm11, %v5904_v63, -inf }
 0x2ee   : > { %v3271_v47 = vmax.f32 %v3269_v40, %v3270_v48  ;;  %v3045_v60 = vmax.f32 %v6344_v3, %v3044_v12  ;;  %v3482_v49 = vsel %vm2903_vm12, %v2899_v28, -inf  ;;  %v1366_v20 = vpop.permute.xlu1 %1365 }
 0x2ef   : > { %v3234_v42 = vmax.f32 %v3232_v32, %v3233_v13  ;;  %v6426_v22 = vmax.f32 %v3481_v23, %v3482_v49  ;;  %vm2004_vm15 = vcmp.gt.f32.partialorder %v1366_v20, 0.5  ;;  %v1244_v56 = vpop.permute.xlu0 %1243 }
 0x2f0   : > { %v3272_v34 = vrot.slane %v3271_v47, 1  ;;  %v3046_v44 = vrot.slane %v3045_v60, 4  ;;  %v2772_v14 = vsel %vm2004_vm15, %v6029_v10, -inf  ;;  %vm1973_vm0 = vcmp.gt.f32.partialorder %v1244_v56, 0.5 }
 0x2f1   : > { %v3235_v63 = vrot.slane %v3234_v42, 1  ;;  %v6430_v9 = vsel %vm2903_vm12, %v2772_v14, -inf  ;;  %v2741_v3 = vsel %vm1973_vm0, %v6169_v45, -inf }
 0x2f2   : > { %v3273_v26 = vmax.f32 %v3271_v47, %v3272_v34  ;;  %v3047_v31 = vmax.f32 %v3045_v60, %v3046_v44  ;;  %v3189_v51 = vmax.f32 %v6354_v6, %v6430_v9  ;;  %v3116_v33 = vsel %vm2903_vm12, %v2741_v3, -inf  ;;  %v1685_v23 = vpop.permute.xlu1 %1684 }
 0x2f3   : > { %v3236_v27 = vmax.f32 %v3234_v42, %v3235_v63  ;;  %v6439_v4 = vmax.f32 %v3115_v39, %v3116_v33  ;;  %vm2085_vm3 = vcmp.gt.f32.partialorder %v1685_v23, 0.5  ;;  %v1563_v38 = vpop.permute.xlu0 %1562 }
 0x2f4   : > { %v3048_v35 = vrot.slane %v3047_v31, 2  ;;  %v2853_v24 = vsel %vm2085_vm3, %v6169_v45, -inf  ;;  %vm2054_vm4 = vcmp.gt.f32.partialorder %v1563_v38, 0.5 }
 0x2f5   : > { %v3527_v53 = vsel %vm771_vm10, %v3273_v26, %v3236_v27  ;;  %v3375_v25 = vsel %vm2903_vm12, %v2853_v24, -inf  ;;  %v2822_v18 = vsel %vm2054_vm4, %v6314_v16, -inf }
 0x2f6   : > { %v3049_v17 = vmax.f32 %v3047_v31, %v3048_v35  ;;  %v6448_v46 = vmax.f32 %v3374_v43, %v3375_v25  ;;  %v3303_v52 = vsel %vm2903_vm12, %v2822_v18, -inf  ;;  %v1185_v57 = vpop.permute.xlu1 %1184 }
 0x2f7   : > { %v3304_v39 = vmax.f32 %v6372_v0, %v3303_v52  ;;  %vm1958_vm7 = vcmp.gt.f32.partialorder %v1185_v57, 0.5  ;;  %v1807_v5 = vpop.permute.xlu0 %1806 }
 0x2f8   : > { %v3050_v55 = vrot.slane %v3049_v17, 1  ;;  %v2726_v2 = vsel %vm1958_vm7, %v6314_v16, -inf  ;;  %vm2116_vm10 = vcmp.gt.f32.partialorder %v1807_v5, 0.5 }
 0x2f9   : > { %v3305_v40 = vrot.slane %v3304_v39, 4  ;;  %v3081_v15 = vsel %vm2903_vm12, %v2726_v2, -inf  ;;  %v2884_v62 = vsel %vm2116_vm10, %v6029_v10, -inf }
 0x2fa   : > { %v3051_v32 = vmax.f32 %v3049_v17, %v3050_v55  ;;  %v3082_v19 = vmax.f32 %v6396_v59, %v3081_v15  ;;  %v3447_v7 = vsel %vm2903_vm12, %v2884_v62, -inf  ;;  %v1626_v43 = vpop.permute.xlu1 %1625 }
 0x2fb   : > { %v3306_v61 = vmax.f32 %v3304_v39, %v3305_v40  ;;  %v3448_v0 = vmax.f32 %v6382_v1, %v3447_v7  ;;  %vm2070_vm8 = vcmp.gt.f32.partialorder %v1626_v43, 0.5  ;;  %v1307_v48 = vpop.permute.xlu0 %1306 }
 0x2fc   : > { %v3083_v41 = vrot.slane %v3082_v19, 4  ;;  %v2838_v13 = vsel %vm2070_vm8, %v6314_v16, -inf  ;;  %vm1989_vm9 = vcmp.gt.f32.partialorder %v1307_v48, 0.5  ;;  %v3522_v12 = vsel %vm775_vm14, %v3051_v32, %v3521_v30 }
 0x2fd   : > { %v3307_v28 = vrot.slane %v3306_v61, 2  ;;  %v3340_v47 = vsel %vm2903_vm12, %v2838_v13, -inf  ;;  %v2757_v60 = vsel %vm1989_vm9, %v6169_v45, -inf }
 0x2fe   : > { %v3084_v59 = vmax.f32 %v3082_v19, %v3083_v41  ;;  %v3341_v49 = vmax.f32 %v6415_v58, %v3340_v47  ;;  %v3153_v20 = vsel %vm2903_vm12, %v2757_v60, -inf  ;;  %v1870_v42 = vpop.permute.xlu1 %1869 }
 0x2ff   : > { %v3308_v1 = vmax.f32 %v3306_v61, %v3307_v28  ;;  %v3154_v56 = vmax.f32 %v3152_v54, %v3153_v20  ;;  %vm2132_vm11 = vcmp.gt.f32.partialorder %v1870_v42, 0.5  ;;  %v1748_v34 = vpop.permute.xlu0 %1747 }
 0x300   : > { %v3085_v44 = vrot.slane %v3084_v59, 2  ;;  %v3342_v30 = vrot.slane %v3341_v49, 4  ;;  %v2900_v14 = vsel %vm2132_vm11, %v6029_v10, -inf  ;;  %vm2101_vm15 = vcmp.gt.f32.partialorder %v1748_v34, 0.5 }
 0x301   : > { %v3309_v63 = vrot.slane %v3308_v1, 1  ;;  %v6469_v3 = vsel %vm2903_vm12, %v2900_v14, -inf  ;;  %v2869_v58 = vsel %vm2101_vm15, %v6169_v45, -inf }
 0x302   : > { %v3086_v26 = vmax.f32 %v3084_v59, %v3085_v44  ;;  %v3343_v31 = vmax.f32 %v3341_v49, %v3342_v30  ;;  %v3485_v33 = vmax.f32 %v6426_v22, %v6469_v3  ;;  %v3412_v50 = vsel %vm2903_vm12, %v2869_v58, -inf  ;;  %v1370_v11 = vpop.permute.xlu1 %1369 }
 0x303   : > { %v3310_v54 = vmax.f32 %v3308_v1, %v3309_v63  ;;  %v3413_v10 = vmax.f32 %v3411_v36, %v3412_v50  ;;  %vm2005_vm0 = vcmp.gt.f32.partialorder %v1370_v11, 0.5  ;;  %v1248_v23 = vpop.permute.xlu0 %1247 }
 0x304   : > { %v3087_v27 = vrot.slane %v3086_v26, 1  ;;  %v3344_v38 = vrot.slane %v3343_v31, 2  ;;  %v2773_v35 = vsel %vm2005_vm0, %v6169_v45, -inf  ;;  %vm1974_vm3 = vcmp.gt.f32.partialorder %v1248_v23, 0.5 }
 0x305   : > { %v3528_v24 = vsel %vm773_vm13, %v3310_v54, %v3527_v53  ;;  %v3190_v25 = vsel %vm2903_vm12, %v2773_v35, -inf  ;;  %v2742_v18 = vsel %vm1974_vm3, %v6314_v16, -inf }
 0x306   : > { %v3088_v17 = vmax.f32 %v3086_v26, %v3087_v27  ;;  %v3345_v52 = vmax.f32 %v3343_v31, %v3344_v38  ;;  %v3191_v29 = vmax.f32 %v3189_v51, %v3190_v25  ;;  %v3118_v21 = vsel %vm2903_vm12, %v2742_v18, -inf  ;;  %v1811_v36 = vpop.permute.xlu1 %1810 }
 0x307   : > { %v3119_v57 = vmax.f32 %v6439_v4, %v3118_v21  ;;  %vm2117_vm4 = vcmp.gt.f32.partialorder %v1811_v36, 0.5  ;;  %v1689_v39 = vpop.permute.xlu0 %1688 }
 0x308   : > { %v3346_v5 = vrot.slane %v3345_v52, 1  ;;  %v2885_v53 = vsel %vm2117_vm4, %v6169_v45, -inf  ;;  %vm2086_vm13 = vcmp.gt.f32.partialorder %v1689_v39, 0.5  ;;  %v6489_v55 = vsel %vm777_vm1, %v3088_v17, %v3522_v12 }
 0x309   : > { %v3120_v2 = vrot.slane %v3119_v57, 4  ;;  %v3449_v40 = vsel %vm2903_vm12, %v2885_v53, -inf  ;;  %v2854_v6 = vsel %vm2086_vm13, %v6314_v16, -inf }
 0x30a   : > { %v3347_v9 = vmax.f32 %v3345_v52, %v3346_v5  ;;  %v3450_v51 = vmax.f32 %v3448_v0, %v3449_v40  ;;  %v3377_v15 = vsel %vm2903_vm12, %v2854_v6, -inf  ;;  %v1752_v62 = vpop.permute.xlu1 %1751 }
 0x30b   : > { %v3121_v4 = vmax.f32 %v3119_v57, %v3120_v2  ;;  %v3378_v32 = vmax.f32 %v6448_v46, %v3377_v15  ;;  %vm2102_vm7 = vcmp.gt.f32.partialorder %v1752_v62, 0.5  ;;  %v1311_v19 = vpop.permute.xlu0 %1310 }
 0x30c   : > { %v3529_v7 = vsel %vm775_vm14, %v3347_v9, %v3528_v24  ;;  %v2870_v43 = vsel %vm2102_vm7, %v6314_v16, -inf  ;;  %vm1990_vm10 = vcmp.gt.f32.partialorder %v1311_v19, 0.5 }
 0x30d   : > { %v3122_v61 = vrot.slane %v3121_v4, 2  ;;  %v3379_v48 = vrot.slane %v3378_v32, 4  ;;  %v3414_v41 = vsel %vm2903_vm12, %v2870_v43, -inf  ;;  %v2758_v13 = vsel %vm1990_vm10, %v6314_v16, -inf }
 0x30e   : > { %v3415_v0 = vmax.f32 %v3413_v10, %v3414_v41  ;;  %v3155_v12 = vsel %vm2903_vm12, %v2758_v13, -inf  ;;  %v1374_v28 = vpop.permute.xlu1 %1373 }
 0x30f   : > { %v3123_v47 = vmax.f32 %v3121_v4, %v3122_v61  ;;  %v3380_v60 = vmax.f32 %v3378_v32, %v3379_v48  ;;  %v3156_v46 = vmax.f32 %v3154_v56, %v3155_v12  ;;  %vm2006_vm8 = vcmp.gt.f32.partialorder %v1374_v28, 0.5  ;;  %v1874_v59 = vpop.permute.xlu0 %1873  ;;  %v3717_v28 = vld [vmem:[%s6599_s5 + $0x60] sm:$0xff] }
 0x310   : > { %v3416_v49 = vrot.slane %v3415_v0, 4  ;;  %v2774_v20 = vsel %vm2006_vm8, %v6314_v16, -inf  ;;  %vm2133_vm14 = vcmp.gt.f32.partialorder %v1874_v59, 0.5  ;;  %v3720_v59 = vld [vmem:[%s6599_s5 + $0x78] sm:$0xff] }
 0x311   : > { %v3124_v42 = vrot.slane %v3123_v47, 1  ;;  %v3381_v1 = vrot.slane %v3380_v60, 2  ;;  %v3157_v34 = vrot.slane %v3156_v46, 4  ;;  %v3192_v44 = vsel %vm2903_vm12, %v2774_v20, -inf }
 0x312   : > { %v3417_v30 = vmax.f32 %v3415_v0, %v3416_v49  ;;  %v3193_v14 = vmax.f32 %v3191_v29, %v3192_v44  ;;  %v2901_v63 = vsel %vm2133_vm14, %v6169_v45, -inf  ;;  %v1878_v58 = vpop.permute.xlu1 %1877 }
 0x313   : > { %v3125_v26 = vmax.f32 %v3123_v47, %v3124_v42  ;;  %v3382_v31 = vmax.f32 %v3380_v60, %v3381_v1  ;;  %v3158_v50 = vmax.f32 %v3156_v46, %v3157_v34  ;;  %v3486_v56 = vsel %vm2903_vm12, %v2901_v63, -inf  ;;  %v1815_v11 = vpop.permute.xlu0 %1814  ;;  %v3718_v47 = vld [vmem:[%s6599_s5 + $0x68] sm:$0xff]  ;;  %v3719_v46 = vld [vmem:[%s6599_s5 + $0x70] sm:$0xff]  ;;  %v3956_v42 = vld [vmem:[%s6598_s4] ss:$0 sm:$0xff] }
 0x314   : > { %v3418_v54 = vrot.slane %v3417_v30, 2  ;;  %v3194_v10 = vrot.slane %v3193_v14, 4  ;;  %v3487_v23 = vmax.f32 %v3485_v33, %v3486_v56  ;;  %vm2134_vm9 = vcmp.gt.f32.partialorder %v1878_v58, 0.5 }
 0x315   : > { %v3383_v27 = vrot.slane %v3382_v31, 1  ;;  %v3159_v38 = vrot.slane %v3158_v50, 2  ;;  %v2902_v35 = vsel %vm2134_vm9, %v6314_v16, -inf  ;;  %vm2118_vm11 = vcmp.gt.f32.partialorder %v1815_v11, 0.5 }
 0x316   : > { %v3419_v45 = vmax.f32 %v3417_v30, %v3418_v54  ;;  %v3195_v24 = vmax.f32 %v3193_v14, %v3194_v10  ;;  %v3488_v25 = vsel %vm2903_vm12, %v2902_v35, -inf  ;;  %v2886_v18 = vsel %vm2118_vm11, %v6314_v16, -inf }
 0x317   : > { %v3384_v17 = vmax.f32 %v3382_v31, %v3383_v27  ;;  %v3160_v52 = vmax.f32 %v3158_v50, %v3159_v38  ;;  %v3489_v29 = vmax.f32 %v3487_v23, %v3488_v25  ;;  %v3451_v21 = vsel %vm2903_vm12, %v2886_v18, -inf }
 0x318   : > { %v3420_v36 = vrot.slane %v3419_v45, 1  ;;  %v3196_v22 = vrot.slane %v3195_v24, 2  ;;  %v3452_v3 = vmax.f32 %v3450_v51, %v3451_v21  ;;  %v3524_v33 = vsel %vm779_vm2, %v3125_v26, %v6489_v55  ;;  %v3957_v26 = vld [vmem:[%s6600_s6] ss:$0 sm:$0xff] }
 0x319   : > { %v3161_v57 = vrot.slane %v3160_v52, 1  ;;  %v3490_v39 = vrot.slane %v3489_v29, 4  ;;  %v3530_v5 = vsel %vm777_vm1, %v3384_v17, %v3529_v7  ;;  %v4216_v60 = vpack.c.bf16 %v3718_v47, %v3717_v28 }
 0x31a   : > { %v3421_v53 = vmax.f32 %v3419_v45, %v3420_v36  ;;  %v3197_v2 = vmax.f32 %v3195_v24, %v3196_v22  ;;  %v3453_v40 = vrot.slane %v3452_v3, 4  ;;  %v4220_v49 = vpack.c.bf16 %v3720_v59, %v3719_v46 }
 0x31b   : > { %v3162_v6 = vmax.f32 %v3160_v52, %v3161_v57  ;;  %v3491_v16 = vmax.f32 %v3489_v29, %v3490_v39  ;;  %4217 = vmatprep.subr.bf16.mxu1 %v4216_v60  ;;  %vm3814_vm1 = vcmask 523264   ;;  %v3822_v35 = vstv %s3821_s10 }
 0x31c   : > { %v3198_v9 = vrot.slane %v3197_v2, 1  ;;  %v3454_v15 = vmax.f32 %v3452_v3, %v3453_v40  ;;  %v3531_v62 = vsel %vm779_vm2, %v3421_v53, %v3530_v5  ;;  %4219 = vmatpush3.bf16.msra.mxu1 %v4216_v60 }
 0x31d   : > { %v3492_v4 = vrot.slane %v3491_v16, 2  ;;  %v3525_v32 = vsel %vm781_vm5, %v3162_v6, %v3524_v33  ;;  %4221 = vmatprep.subr.bf16.mxu1 %v4220_v49 }
 0x31e   : > { %v3455_v51 = vrot.slane %v3454_v15, 2  ;;  %v3199_v19 = vmax.f32 %v3197_v2, %v3198_v9 }
 0x31f   : > { %v3493_v43 = vmax.f32 %v3491_v16, %v3492_v4 }
 0x320   : > { %v3456_v55 = vmax.f32 %v3454_v15, %v3455_v51  ;;  %v3526_v61 = vsel %vm783_vm6, %v3199_v19, %v3525_v32  ;;  %4223 = vmatpush3.bf16.msra.mxu1 %v4220_v49 }
 0x321   : > { %v3494_v48 = vrot.slane %v3493_v43, 1  ;;  %4095 = vmatprep.mubr.msk.f32.mxu0 %vm2903_vm12, %v3526_v61 }
 0x322   : > { %v3457_v7 = vrot.slane %v3456_v55, 1 }
 0x323   : > { %v3495_v41 = vmax.f32 %v3493_v43, %v3494_v48 }
 0x324   : > { %v3458_v13 = vmax.f32 %v3456_v55, %v3457_v7 }
 0x326   : > { %v3532_v0 = vsel %vm781_vm5, %v3458_v13, %v3531_v62 }
 0x327   : > { %v3533_v12 = vsel %vm783_vm6, %v3495_v41, %v3532_v0 }
 0x328   : > { %4096 = vmatmul.mubr.msk.f32.vlgmr.msra.gmra.mrb[2].mxu0 %vm2903_vm12, %v3533_v12 }
 0x3fb   : > { %v4097_v20 = vpop.f32.mrb[2].mxu0 }
 0x3fc   : > { %v3691_v1 = vadd.f32 %v6033_v8, %v4097_v20  ;;  %v3604_v34 = vpop.f32.mrb[3].mxu0  ;;  %v3958_v8 = vld [vmem:[%s6601_s7] ss:$0 sm:$0xff] }
 0x3fd   : > { %v3686_v44 = vadd.f32 %v6038_v37, %v3604_v34 }
 0x3fe   : > { %v3702_v30 = vadd.f32 %v3956_v42, %v3691_v1 }
 0x3ff   : > { %v3701_v14 = vadd.f32 %v3956_v42, %v3686_v44 }
 0x400   : > { %v3704_v58 = vmax.f32 %v3702_v30, 0.0 }
 0x401   : > { %v3703_v63 = vmax.f32 %v3701_v14, 0.0 }
 0x403   : > { %4141 = vmatprep.mubr.f32.mxu1 %v3703_v63 }
 0x404   : > { %4142 = vmatmul.mubr.f32.vlgmr.msra.gmra.mrb[2].mxu1 %v3704_v58 }
 0x4d7   : > { %v4143_v31 = vpop.f32.mrb[2].mxu1 }
 0x4d8   : > { %v3800_v50 = vadd.f32 %v4143_v31, %v3957_v26  ;;  %v3794_v56 = vpop.f32.mrb[3].mxu1 }
 0x4d9   : > { %v3795_v11 = vadd.f32 %v3957_v26, %v3794_v56 }
 0x4da   : > { %v3804_v54 = vmax.f32 %v3800_v50, 0.0 }
 0x4db   : > { %v3803_v37 = vmax.f32 %v3795_v11, 0.0 }
 0x4dc   : > { %v3813_v10 = vmul.f32 %v3958_v8, %v3804_v54 }
 0x4dd   : > { %v3812_v23 = vmul.f32 %v3958_v8, %v3803_v37 }
 0x4de   : > { %v3818_v27 = vsel %vm3814_vm1, %v3813_v10, 0.0 }
 0x4df   : > { %3819 = vadd.xlane.f32.xlu1 %v3818_v27  ;;  %v3815_v38 = vsel %vm3814_vm1, %v3812_v23, 0.0 }
 0x4e0   : > { %3816 = vadd.xlane.f32.xlu0 %v3815_v38 }
 0x56c   : > { %v3820_v45 = vpop.xlane.xlu1 %3819 }
 0x56d   : > { %v3824_v24 = vadd.f32 %v3822_v35, %v3820_v45  ;;  %v3817_v25 = vpop.xlane.xlu0 %3816 }
 0x56e   : > { %v3823_v18 = vadd.f32 %v3822_v35, %v3817_v25 }
 0x56f   : > { %v3826_v17 = vsub.f32 0.0, %v3824_v24 }
 0x570   : > { %v3825_v52 = vsub.f32 0.0, %v3823_v18 }
 0x571   : > { %v3829_v29 = vmul.f32 1.442695, %v3826_v17 }
 0x572   : > { %v3827_v21 = vmul.f32 1.442695, %v3825_v52 }
 0x573   : > { %4268 = vpow2.f32 %v3829_v29 }
 0x574   : > { %4270 = vpow2.f32 %v3827_v21 }
 0x57d   : > { %v4269_v36 = vpop.eup %4268 }
 0x57e   : > { %v4271_v22 = vpop.eup %4270  ;;  %v3832_v3 = vadd.f32 1.0, %v4269_v36 }
 0x57f   : > { %v3831_v33 = vadd.f32 1.0, %v4271_v22 }
 0x580   : > { %4272 = vrcp.f32 %v3832_v3 }
 0x581   : > { %4274 = vrcp.f32 %v3831_v33 }
 0x58a   : > { %v4273_v57 = vpop.eup %4272 }
 0x58b   : > { %v4275_v39 = vpop.eup %4274  ;;  %3836 = vst [vmem:[%s327_s22 + $0x8] sm:$0xff] %v4273_v57 }
 0x58c   : > { %3835 = vst [vmem:[%s327_s22] sm:$0xff] %v4275_v39 }
 0x58d   : > { %4295 = shalt.err (!%p4292_p3)
}
 0x58e   : > { %s4296_s10 = scalar_lea.hbm %s6549_s26, 256  ;;  %s4300_s18 = scalar_lea.hbm %s6603_s9, 1024 }
 0x58f   : > { %p4297_p4 = scmp.ne.s32.totalorder %s6549_s26, %s4296_s10  ;;  %p4301_p9 = scmp.lt.u32.totalorder %s6549_s26, %s6603_s9 }
 0x590   : > { %p4302_p10 = scmp.lt.u32.totalorder %s4300_s18, %s4296_s10  ;;  %p4304_p12 = scmp.lt.u32.totalorder %s4296_s10, %s6549_s26 }
 0x591   : > { %p4298_p7 = pnand %p4297_p4, %p4441_p5 }
 0x592   : > { %p4303_p11 = por %p4302_p10, %p4301_p9 }
 0x593   : > { %p4299_p8 = pneg %p4298_p7 }
 0x594   : > { %p4305_p13 = por %p4304_p12, %p4303_p11 }
 0x596   : > { %p4306_p0 = pnand %p4305_p13, %p4299_p8 }
 0x598   : > { %4309 = shalt.err (!%p4306_p0)
}
 0x599   : > { %s4348_s25 = smov 128   ;;  %s4349_s28 = smov 8  }
 0x59a   : > { %4226 = dma.vmem_to_hbm [thread:$0]  (%p4441_p5), %s6551_s23, 256, %s6549_s26, %s6553_s27, %s4348_s25, %s4348_s25, %s4349_s28  }
 0x59b PF: > { %p4232_p1 = scmp.ge.s32.totalorder %s4344_s14, 2  ;;  %s3866_s8 = sand.u32 1, %s4332_s11  }
 0x59c   : > { %s3867_s29 = scalar_lea.sflag [#allocation4], %s3866_s8 }
 0x59d   : > { %p4229_p2 = pnand %p4232_p1, %p4445_p6 }
 0x59f   : > { %4327 = dma.done.wait (!%p4229_p2), %s3867_s29, 256  }
 0x5a0   : > { %4329 = vsyncadd (!%p4229_p2), %s3867_s29, 4294967040  ;;  %p20_p3 = scmp.ge.s32.totalorder %s4428_s16, 6   ;;  %s6619_s11 = smov %s4336_s12 }
 0x5a1   : > { %s6620_s12 = smov %s4340_s13  ;;  %s6621_s13 = smov %s4439_s19 }
 0x5a2   : > { %s6622_s14 = smov %s4428_s16  ;;  %22 = sbr.rel (!%p20_p3) target bundleno = 5 (0x5), region = 91 }
 0x5a9   :  { %3872 = vsyncpa [#allocation4], 1 }
 0x5aa   :  { %3874 = vsyncpa [#allocation4 + $0x1], 1 }

</bundles_post_ra>
